<compile_context>
chip_gen: v7x
topology: tpu7x:2x2x1
jax: 0.10.0
libtpu: 0.0.40
codegen_flags: <defaults>
</compile_context>

<pallas_src>
import functools

import jax
import jax.numpy as jnp
from jax import lax
from jax.experimental import pallas as pl
from jax.experimental.pallas import tpu as pltpu


def _round_up(n: int, m: int) -> int:
    return ((n + m - 1) // m) * m


# ---------------------------------------------------------------------------
# Kernel
# ---------------------------------------------------------------------------
def speaker_encoder_kernel(x_ref,
                           w_ih0_ref, w_hh0_ref, b0_ref,
                           w_ih1_ref, w_hh1_ref, b1_ref,
                           w_ih2_ref, w_hh2_ref, b2_ref,
                           w_emb_ref, b_emb_ref,
                           out_ref,
                           z_ref, seq_ref,
                           *, seq_len, hidden_p, unroll):
    """3-layer LSTM + linear + L2 normalize for one batch tile.

    x_ref:   (T, Bt, Dp)    f32, time-major, zero-padded
    w_ih*:   (Din_p, 4*Hp)  compute dtype (pre-transposed, gate-padded)
    w_hh*:   (Hp, 4*Hp)     compute dtype
    b*:      (1, 4*Hp)      f32 (b_ih + b_hh folded host-side)
    w_emb:   (Hp, Ep)       compute dtype;  b_emb: (1, Ep) f32
    out_ref: (Bt, Ep)       f32
    z_ref:   (T, Bt, 4*Hp)  f32 VMEM scratch (pre-activations for all timesteps)
    seq_ref: (T, Bt, Hp)    f32 VMEM scratch (per-layer hidden outputs, reused)
    """
    T, Hp = seq_len, hidden_p
    Bt = out_ref.shape[0]
    cdt = w_hh0_ref.dtype                      # MXU operand dtype (bf16 or f32)

    def project_inputs(inp, w_ih_ref, b_ref):
        # One (T*Bt, Din) x (Din, 4*Hp) MXU call for all timesteps; bias added once.
        z = jnp.dot(inp.astype(cdt), w_ih_ref[...],
                    preferred_element_type=jnp.float32)
        z_ref[...] = z.reshape(T, Bt, 4 * Hp) + b_ref[...]

    def run_layer(w_hh_ref, *, write_seq):
        w_hh = w_hh_ref[...]                   # loop-invariant recurrent weights

        def step(t, carry):
            h, c = carry
            z = z_ref[t] + jnp.dot(h.astype(cdt), w_hh,
                                   preferred_element_type=jnp.float32)
            i_g = jax.nn.sigmoid(z[:, 0 * Hp:1 * Hp])
            f_g = jax.nn.sigmoid(z[:, 1 * Hp:2 * Hp])
            g_g = jnp.tanh(z[:, 2 * Hp:3 * Hp])
            o_g = jax.nn.sigmoid(z[:, 3 * Hp:4 * Hp])
            c = f_g * c + i_g * g_g
            h = o_g * jnp.tanh(c)
            if write_seq:
                seq_ref[t] = h
            return h, c

        h0 = jnp.zeros((Bt, Hp), jnp.float32)
        c0 = jnp.zeros((Bt, Hp), jnp.float32)
        return lax.fori_loop(0, T, step, (h0, c0), unroll=unroll)

    # Layer 0.
    project_inputs(x_ref[...].reshape(T * Bt, x_ref.shape[-1]), w_ih0_ref, b0_ref)
    run_layer(w_hh0_ref, write_seq=True)
    # Layer 1.
    project_inputs(seq_ref[...].reshape(T * Bt, Hp), w_ih1_ref, b1_ref)
    run_layer(w_hh1_ref, write_seq=True)
    # Layer 2 (only the final hidden state is needed).
    project_inputs(seq_ref[...].reshape(T * Bt, Hp), w_ih2_ref, b2_ref)
    h_last, _ = run_layer(w_hh2_ref, write_seq=False)

    # Linear head + L2 normalization (rsqrt on EUP; guard only hits all-zero rows).
    emb = (jnp.dot(h_last.astype(cdt), w_emb_ref[...],
                   preferred_element_type=jnp.float32) + b_emb_ref[...])
    inv_norm = lax.rsqrt(
        jnp.maximum(jnp.sum(emb * emb, axis=-1, keepdims=True), 1e-30))
    out_ref[...] = (emb * inv_norm).astype(out_ref.dtype)


# ---------------------------------------------------------------------------
# Host-side weight packing (PyTorch layouts -> padded, pre-transposed)
# ---------------------------------------------------------------------------
def _pack_lstm_layer(w_ih, w_hh, b_ih, b_hh, *, hidden, hidden_p,
                     in_dim, in_dim_p, dtype):
    """PyTorch (4H, Din)/(4H, H) gate-major weights -> padded, pre-transposed
    (Din_p, 4*Hp)/(Hp, 4*Hp) with each [i,f,g,o] gate block 128-lane aligned.
    Zero padding keeps padded hidden units exactly zero through the recurrence."""
    H, Hp = hidden, hidden_p
    w_ih_p = jnp.zeros((4, Hp, in_dim_p), jnp.float32)
    w_ih_p = w_ih_p.at[:, :H, :in_dim].set(w_ih.reshape(4, H, in_dim))
    w_hh_p = jnp.zeros((4, Hp, Hp), jnp.float32)
    w_hh_p = w_hh_p.at[:, :H, :H].set(w_hh.reshape(4, H, H))
    b_p = jnp.zeros((4, Hp), jnp.float32).at[:, :H].set((b_ih + b_hh).reshape(4, H))
    w_ih_t = jnp.transpose(w_ih_p, (2, 0, 1)).reshape(in_dim_p, 4 * Hp).astype(dtype)
    w_hh_t = jnp.transpose(w_hh_p, (2, 0, 1)).reshape(Hp, 4 * Hp).astype(dtype)
    return w_ih_t, w_hh_t, b_p.reshape(1, 4 * Hp)


def speaker_encoder_forward(x, params, *, dim_input, hidden, dim_emb,
                            compute_dtype=jnp.bfloat16, batch_tile=8):
    """AutoVC D_VECTOR forward: x (B, T, dim_input) -> L2-normalized (B, dim_emb)."""
    assert batch_tile % 8 == 0
    B, T, D = x.shape
    assert D == dim_input
    Bp = _round_up(max(B, batch_tile), batch_tile)
    Dp = _round_up(dim_input, 128)
    Hp = _round_up(hidden, 128)
    Ep = _round_up(dim_emb, 128)

    (w_ih0, w_hh0, b_ih0, b_hh0,
     w_ih1, w_hh1, b_ih1, b_hh1,
     w_ih2, w_hh2, b_ih2, b_hh2,
     w_emb, b_emb) = params

    pack = functools.partial(_pack_lstm_layer, hidden=hidden, hidden_p=Hp,
                             dtype=compute_dtype)
    w0, u0, bb0 = pack(w_ih0, w_hh0, b_ih0, b_hh0, in_dim=dim_input, in_dim_p=Dp)
    w1, u1, bb1 = pack(w_ih1, w_hh1, b_ih1, b_hh1, in_dim=hidden, in_dim_p=Hp)
    w2, u2, bb2 = pack(w_ih2, w_hh2, b_ih2, b_hh2, in_dim=hidden, in_dim_p=Hp)

    w_emb_p = (jnp.zeros((Hp, Ep), jnp.float32)
               .at[:hidden, :dim_emb].set(w_emb.T)).astype(compute_dtype)
    b_emb_p = jnp.zeros((1, Ep), jnp.float32).at[:, :dim_emb].set(b_emb.reshape(1, -1))

    # Time-major, zero-padded input (padding never perturbs the real outputs).
    x_p = (jnp.zeros((T, Bp, Dp), jnp.float32)
           .at[:, :B, :D].set(jnp.transpose(x, (1, 0, 2)).astype(jnp.float32)))

    inputs = (x_p, w0, u0, bb0, w1, u1, bb1, w2, u2, bb2, w_emb_p, b_emb_p)

    # Weights/biases: whole-array resident in VMEM (no per-step re-tiling).
    whole = pl.BlockSpec(memory_space=pltpu.MemorySpace.VMEM)
    in_specs = ([pl.BlockSpec((T, batch_tile, Dp), lambda b: (0, b, 0))]
                + [whole] * (len(inputs) - 1))
    out_specs = pl.BlockSpec((batch_tile, Ep), lambda b: (b, 0))
    scratch_shapes = [pltpu.VMEM((T, batch_tile, 4 * Hp), jnp.float32),
                      pltpu.VMEM((T, batch_tile, Hp), jnp.float32)]

    scratch_bytes = (T * batch_tile * 4 * Hp + T * batch_tile * Hp) * 4
    est = sum(a.size * a.dtype.itemsize for a in inputs) + Bp * Ep * 4 + scratch_bytes
    vmem_limit = int(min(64 * 2 ** 20, max(2 * est + (2 << 20), 4 * 2 ** 20)))

    kernel = functools.partial(speaker_encoder_kernel, seq_len=T, hidden_p=Hp,
                               unroll=(T <= 16))

    out_p = pl.pallas_call(
        kernel,
        out_shape=jax.ShapeDtypeStruct((Bp, Ep), jnp.float32),
        grid=(Bp // batch_tile,),
        in_specs=in_specs,
        out_specs=out_specs,
        scratch_shapes=scratch_shapes,
        compiler_params=pltpu.CompilerParams(
            dimension_semantics=("parallel",),   # v7x: two TCs split batch tiles
            vmem_limit_bytes=vmem_limit),
    )(*inputs)

    return out_p[:B, :dim_emb]


# ---------------------------------------------------------------------------
# Synthetic parameters + pure-JAX reference (PyTorch conventions)
# ---------------------------------------------------------------------------
def make_params(key, dim_input, hidden, dim_emb):
    """Deterministic synthetic parameters, PyTorch-style U(-1/sqrt(H), 1/sqrt(H)),
    in PyTorch layouts: per layer (W_ih (4H,Din), W_hh (4H,H), b_ih, b_hh),
    then Linear (W (E,H), b (E,))."""
    scale = 1.0 / float(hidden) ** 0.5
    keys = iter(jax.random.split(key, 14))

    def u(shape):
        return jax.random.uniform(next(keys), shape, jnp.float32, -scale, scale)

    params = []
    in_dims = [dim_input, hidden, hidden]
    for layer in range(3):
        params += [u((4 * hidden, in_dims[layer])), u((4 * hidden, hidden)),
                   u((4 * hidden,)), u((4 * hidden,))]
    params += [u((dim_emb, hidden)), u((dim_emb,))]
    return tuple(params)


def reference_forward(x, params, *, hidden, dim_emb):
    """Pure-JAX reference mirroring the PyTorch D_VECTOR forward."""
    (w_ih0, w_hh0, b_ih0, b_hh0,
     w_ih1, w_hh1, b_ih1, b_hh1,
     w_ih2, w_hh2, b_ih2, b_hh2,
     w_emb, b_emb) = params
    B, T, _ = x.shape
    H = hidden

    def layer(seq, w_ih, w_hh, b_ih, b_hh):
        h = jnp.zeros((B, H), jnp.float32)
        c = jnp.zeros((B, H), jnp.float32)
        outs = []
        for t in range(T):
            z = seq[t] @ w_ih.T + h @ w_hh.T + b_ih + b_hh
            i = jax.nn.sigmoid(z[:, 0 * H:1 * H])
            f = jax.nn.sigmoid(z[:, 1 * H:2 * H])
            g = jnp.tanh(z[:, 2 * H:3 * H])
            o = jax.nn.sigmoid(z[:, 3 * H:4 * H])
            c = f * c + i * g
            h = o * jnp.tanh(c)
            outs.append(h)
        return outs

    seq = [x[:, t, :] for t in range(T)]
    for wi, wh, bi, bh in ((w_ih0, w_hh0, b_ih0, b_hh0),
                           (w_ih1, w_hh1, b_ih1, b_hh1),
                           (w_ih2, w_hh2, b_ih2, b_hh2)):
        seq = layer(seq, wi, wh, bi, bh)
    emb = seq[-1] @ w_emb.T + b_emb
    return emb / jnp.linalg.norm(emb, axis=-1, keepdims=True)


if __name__ == "__main__":
    # Small shapes consistent with the module's constructor-tunable dims.
    BATCH, SEQ = 2, 8
    DIM_INPUT, DIM_CELL, DIM_EMB = 16, 32, 16

    kx, kp = jax.random.split(jax.random.PRNGKey(0))
    x = jax.random.normal(kx, (BATCH, SEQ, DIM_INPUT), jnp.float32)
    params = make_params(kp, DIM_INPUT, DIM_CELL, DIM_EMB)

    ref = reference_forward(x, params, hidden=DIM_CELL, dim_emb=DIM_EMB)

    # f32 compute path: semantics check against the pure-JAX reference.
    out_f32 = jax.block_until_ready(
        speaker_encoder_forward(x, params, dim_input=DIM_INPUT, hidden=DIM_CELL,
                                dim_emb=DIM_EMB, compute_dtype=jnp.float32))
    assert out_f32.shape == (BATCH, DIM_EMB)
    assert jnp.allclose(out_f32, ref, rtol=3e-2, atol=3e-2), "f32 kernel mismatch"

    # bf16 compute path (fast MXU path): loose check, f32 accumulation inside.
    out_bf16 = jax.block_until_ready(
        speaker_encoder_forward(x, params, dim_input=DIM_INPUT, hidden=DIM_CELL,
                                dim_emb=DIM_EMB, compute_dtype=jnp.bfloat16))
    assert out_bf16.shape == (BATCH, DIM_EMB)
    assert jnp.allclose(out_bf16, ref, rtol=5e-2, atol=5e-2), "bf16 kernel mismatch"

    print("KERNEL_OK")
</pallas_src>

<mosaic_0001>
module attributes {stable_mosaic.version = 11 : i64} {
  func.func @speaker_encoder_kernel(%arg0: i32, %arg1: memref<8x8x128xf32, #tpu.memory_space<vmem>>, %arg2: memref<128x512xf32, #tpu.memory_space<vmem>>, %arg3: memref<128x512xf32, #tpu.memory_space<vmem>>, %arg4: memref<1x512xf32, #tpu.memory_space<vmem>>, %arg5: memref<128x512xf32, #tpu.memory_space<vmem>>, %arg6: memref<128x512xf32, #tpu.memory_space<vmem>>, %arg7: memref<1x512xf32, #tpu.memory_space<vmem>>, %arg8: memref<128x512xf32, #tpu.memory_space<vmem>>, %arg9: memref<128x512xf32, #tpu.memory_space<vmem>>, %arg10: memref<1x512xf32, #tpu.memory_space<vmem>>, %arg11: memref<128x128xf32, #tpu.memory_space<vmem>>, %arg12: memref<1x128xf32, #tpu.memory_space<vmem>>, %arg13: memref<8x128xf32, #tpu.memory_space<vmem>>, %arg14: memref<8x8x512xf32, #tpu.memory_space<vmem>>, %arg15: memref<8x8x128xf32, #tpu.memory_space<vmem>>) attributes {dimension_semantics = [#tpu.dimension_semantics<parallel>], iteration_bounds = array<i64: 1>, scalar_prefetch = 0 : i64, scratch_operands = 2 : i64, tpu.core_type = #tpu.core_type<tc>, window_params = [{transform_indices = @transform_0, window_bounds = array<i64: 8, 8, 128>}, {pipeline_mode = #tpu.pipeline_mode<synchronous>, transform_indices = @transform_1, window_bounds = array<i64: 128, 512>}, {pipeline_mode = #tpu.pipeline_mode<synchronous>, transform_indices = @transform_2, window_bounds = array<i64: 128, 512>}, {pipeline_mode = #tpu.pipeline_mode<synchronous>, transform_indices = @transform_3, window_bounds = array<i64: 1, 512>}, {pipeline_mode = #tpu.pipeline_mode<synchronous>, transform_indices = @transform_4, window_bounds = array<i64: 128, 512>}, {pipeline_mode = #tpu.pipeline_mode<synchronous>, transform_indices = @transform_5, window_bounds = array<i64: 128, 512>}, {pipeline_mode = #tpu.pipeline_mode<synchronous>, transform_indices = @transform_6, window_bounds = array<i64: 1, 512>}, {pipeline_mode = #tpu.pipeline_mode<synchronous>, transform_indices = @transform_7, window_bounds = array<i64: 128, 512>}, {pipeline_mode = #tpu.pipeline_mode<synchronous>, transform_indices = @transform_8, window_bounds = array<i64: 128, 512>}, {pipeline_mode = #tpu.pipeline_mode<synchronous>, transform_indices = @transform_9, window_bounds = array<i64: 1, 512>}, {pipeline_mode = #tpu.pipeline_mode<synchronous>, transform_indices = @transform_10, window_bounds = array<i64: 128, 128>}, {pipeline_mode = #tpu.pipeline_mode<synchronous>, transform_indices = @transform_11, window_bounds = array<i64: 1, 128>}, {transform_indices = @transform_12, window_bounds = array<i64: 8, 128>}]} {
    %c0 = arith.constant 0 : index
    %c0_0 = arith.constant 0 : index
    %c0_1 = arith.constant 0 : index
    %0 = vector.load %arg1[%c0, %c0_0, %c0_1] : memref<8x8x128xf32, #tpu.memory_space<vmem>>, vector<8x8x128xf32>
    %1 = vector.shape_cast %0 : vector<8x8x128xf32> to vector<64x128xf32>
    %c0_2 = arith.constant 0 : index
    %c0_3 = arith.constant 0 : index
    %2 = vector.load %arg2[%c0_2, %c0_3] : memref<128x512xf32, #tpu.memory_space<vmem>>, vector<128x512xf32>
    %cst = arith.constant dense<0.000000e+00> : vector<64x512xf32>
    %3 = tpu.matmul %1, %2, %cst {dimension_numbers = #tpu.dot_dimension_numbers<[1], [0], [0], [1], [0, 0, 1, 1], [], []>} : vector<64x128xf32>, vector<128x512xf32>, vector<64x512xf32> -> vector<64x512xf32>
    %4 = vector.shape_cast %3 : vector<64x512xf32> to vector<8x8x512xf32>
    %c0_4 = arith.constant 0 : index
    %c0_5 = arith.constant 0 : index
    %5 = vector.load %arg4[%c0_4, %c0_5] : memref<1x512xf32, #tpu.memory_space<vmem>>, vector<1x512xf32>
    %6 = vector.shape_cast %5 : vector<1x512xf32> to vector<1x1x512xf32>
    %7 = vector.broadcast %6 : vector<1x1x512xf32> to vector<8x8x512xf32>
    %8 = arith.addf %4, %7 : vector<8x8x512xf32>
    %c0_6 = arith.constant 0 : index
    %c0_7 = arith.constant 0 : index
    %c0_8 = arith.constant 0 : index
    %9 = vector.load %arg14[%c0_6, %c0_7, %c0_8] : memref<8x8x512xf32, #tpu.memory_space<vmem>>, vector<8x8x512xf32>
    tpu.vector_store %arg14[%c0_6, %c0_7, %c0_8], %8 {strides = array<i32>} : memref<8x8x512xf32, #tpu.memory_space<vmem>>, vector<8x8x512xf32>,
    %c0_9 = arith.constant 0 : index
    %c0_10 = arith.constant 0 : index
    %10 = vector.load %arg3[%c0_9, %c0_10] : memref<128x512xf32, #tpu.memory_space<vmem>>, vector<128x512xf32>
    %cst_11 = arith.constant 0.000000e+00 : f32
    %11 = vector.broadcast %cst_11 : f32 to vector<8x128xf32>
    %cst_12 = arith.constant 0.000000e+00 : f32
    %12 = vector.broadcast %cst_12 : f32 to vector<8x128xf32>
    %c0_i32 = arith.constant 0 : i32
    %13 = arith.index_cast %c0_i32 : i32 to index
    %c0_13 = arith.constant 0 : index
    %c0_14 = arith.constant 0 : index
    %14 = vector.load %arg14[%13, %c0_13, %c0_14] : memref<8x8x512xf32, #tpu.memory_space<vmem>>, vector<1x8x512xf32>
    %15 = vector.shape_cast %14 : vector<1x8x512xf32> to vector<8x512xf32>
    %cst_15 = arith.constant dense<0.000000e+00> : vector<8x512xf32>
    %16 = tpu.matmul %11, %10, %cst_15 {dimension_numbers = #tpu.dot_dimension_numbers<[1], [0], [0], [1], [0, 0, 1, 1], [], []>} : vector<8x128xf32>, vector<128x512xf32>, vector<8x512xf32> -> vector<8x512xf32>
    %17 = arith.addf %15, %16 : vector<8x512xf32>
    %18 = vector.extract_strided_slice %17 {offsets = [0, 0], sizes = [8, 128], strides = [1, 1]} : vector<8x512xf32> to vector<8x128xf32>
    %19 = arith.negf %18 : vector<8x128xf32>
    %20 = math.exp %19 : vector<8x128xf32>
    %cst_16 = arith.constant 1.000000e+00 : f32
    %21 = vector.broadcast %cst_16 : f32 to vector<8x128xf32>
    %22 = arith.addf %21, %20 : vector<8x128xf32>
    %23 = arith.divf %21, %22 : vector<8x128xf32>
    %24 = vector.extract_strided_slice %17 {offsets = [0, 128], sizes = [8, 128], strides = [1, 1]} : vector<8x512xf32> to vector<8x128xf32>
    %25 = arith.negf %24 : vector<8x128xf32>
    %26 = math.exp %25 : vector<8x128xf32>
    %cst_17 = arith.constant 1.000000e+00 : f32
    %27 = vector.broadcast %cst_17 : f32 to vector<8x128xf32>
    %28 = arith.addf %27, %26 : vector<8x128xf32>
    %29 = arith.divf %27, %28 : vector<8x128xf32>
    %30 = vector.extract_strided_slice %17 {offsets = [0, 256], sizes = [8, 128], strides = [1, 1]} : vector<8x512xf32> to vector<8x128xf32>
    %31 = math.tanh %30 : vector<8x128xf32>
    %32 = vector.extract_strided_slice %17 {offsets = [0, 384], sizes = [8, 128], strides = [1, 1]} : vector<8x512xf32> to vector<8x128xf32>
    %33 = arith.negf %32 : vector<8x128xf32>
    %34 = math.exp %33 : vector<8x128xf32>
    %cst_18 = arith.constant 1.000000e+00 : f32
    %35 = vector.broadcast %cst_18 : f32 to vector<8x128xf32>
    %36 = arith.addf %35, %34 : vector<8x128xf32>
    %37 = arith.divf %35, %36 : vector<8x128xf32>
    %38 = arith.mulf %29, %12 : vector<8x128xf32>
    %39 = arith.mulf %23, %31 : vector<8x128xf32>
    %40 = arith.addf %38, %39 : vector<8x128xf32>
    %41 = math.tanh %40 : vector<8x128xf32>
    %42 = arith.mulf %37, %41 : vector<8x128xf32>
    %43 = arith.index_cast %c0_i32 : i32 to index
    %c0_19 = arith.constant 0 : index
    %c0_20 = arith.constant 0 : index
    %44 = vector.load %arg15[%43, %c0_19, %c0_20] : memref<8x8x128xf32, #tpu.memory_space<vmem>>, vector<1x8x128xf32>
    %45 = vector.shape_cast %44 : vector<1x8x128xf32> to vector<8x128xf32>
    %46 = vector.shape_cast %42 : vector<8x128xf32> to vector<1x8x128xf32>
    tpu.vector_store %arg15[%43, %c0_19, %c0_20], %46 {strides = array<i32>} : memref<8x8x128xf32, #tpu.memory_space<vmem>>, vector<1x8x128xf32>,
    %c1_i32 = arith.constant 1 : i32
    %47 = arith.index_cast %c1_i32 : i32 to index
    %c0_21 = arith.constant 0 : index
    %c0_22 = arith.constant 0 : index
    %48 = vector.load %arg14[%47, %c0_21, %c0_22] : memref<8x8x512xf32, #tpu.memory_space<vmem>>, vector<1x8x512xf32>
    %49 = vector.shape_cast %48 : vector<1x8x512xf32> to vector<8x512xf32>
    %cst_23 = arith.constant dense<0.000000e+00> : vector<8x512xf32>
    %50 = tpu.matmul %42, %10, %cst_23 {dimension_numbers = #tpu.dot_dimension_numbers<[1], [0], [0], [1], [0, 0, 1, 1], [], []>} : vector<8x128xf32>, vector<128x512xf32>, vector<8x512xf32> -> vector<8x512xf32>
    %51 = arith.addf %49, %50 : vector<8x512xf32>
    %52 = vector.extract_strided_slice %51 {offsets = [0, 0], sizes = [8, 128], strides = [1, 1]} : vector<8x512xf32> to vector<8x128xf32>
    %53 = arith.negf %52 : vector<8x128xf32>
    %54 = math.exp %53 : vector<8x128xf32>
    %cst_24 = arith.constant 1.000000e+00 : f32
    %55 = vector.broadcast %cst_24 : f32 to vector<8x128xf32>
    %56 = arith.addf %55, %54 : vector<8x128xf32>
    %57 = arith.divf %55, %56 : vector<8x128xf32>
    %58 = vector.extract_strided_slice %51 {offsets = [0, 128], sizes = [8, 128], strides = [1, 1]} : vector<8x512xf32> to vector<8x128xf32>
    %59 = arith.negf %58 : vector<8x128xf32>
    %60 = math.exp %59 : vector<8x128xf32>
    %cst_25 = arith.constant 1.000000e+00 : f32
    %61 = vector.broadcast %cst_25 : f32 to vector<8x128xf32>
    %62 = arith.addf %61, %60 : vector<8x128xf32>
    %63 = arith.divf %61, %62 : vector<8x128xf32>
    %64 = vector.extract_strided_slice %51 {offsets = [0, 256], sizes = [8, 128], strides = [1, 1]} : vector<8x512xf32> to vector<8x128xf32>
    %65 = math.tanh %64 : vector<8x128xf32>
    %66 = vector.extract_strided_slice %51 {offsets = [0, 384], sizes = [8, 128], strides = [1, 1]} : vector<8x512xf32> to vector<8x128xf32>
    %67 = arith.negf %66 : vector<8x128xf32>
    %68 = math.exp %67 : vector<8x128xf32>
    %cst_26 = arith.constant 1.000000e+00 : f32
    %69 = vector.broadcast %cst_26 : f32 to vector<8x128xf32>
    %70 = arith.addf %69, %68 : vector<8x128xf32>
    %71 = arith.divf %69, %70 : vector<8x128xf32>
    %72 = arith.mulf %63, %40 : vector<8x128xf32>
    %73 = arith.mulf %57, %65 : vector<8x128xf32>
    %74 = arith.addf %72, %73 : vector<8x128xf32>
    %75 = math.tanh %74 : vector<8x128xf32>
    %76 = arith.mulf %71, %75 : vector<8x128xf32>
    %77 = arith.index_cast %c1_i32 : i32 to index
    %c0_27 = arith.constant 0 : index
    %c0_28 = arith.constant 0 : index
    %78 = vector.load %arg15[%77, %c0_27, %c0_28] : memref<8x8x128xf32, #tpu.memory_space<vmem>>, vector<1x8x128xf32>
    %79 = vector.shape_cast %78 : vector<1x8x128xf32> to vector<8x128xf32>
    %80 = vector.shape_cast %76 : vector<8x128xf32> to vector<1x8x128xf32>
    tpu.vector_store %arg15[%77, %c0_27, %c0_28], %80 {strides = array<i32>} : memref<8x8x128xf32, #tpu.memory_space<vmem>>, vector<1x8x128xf32>,
    %c2_i32 = arith.constant 2 : i32
    %81 = arith.index_cast %c2_i32 : i32 to index
    %c0_29 = arith.constant 0 : index
    %c0_30 = arith.constant 0 : index
    %82 = vector.load %arg14[%81, %c0_29, %c0_30] : memref<8x8x512xf32, #tpu.memory_space<vmem>>, vector<1x8x512xf32>
    %83 = vector.shape_cast %82 : vector<1x8x512xf32> to vector<8x512xf32>
    %cst_31 = arith.constant dense<0.000000e+00> : vector<8x512xf32>
    %84 = tpu.matmul %76, %10, %cst_31 {dimension_numbers = #tpu.dot_dimension_numbers<[1], [0], [0], [1], [0, 0, 1, 1], [], []>} : vector<8x128xf32>, vector<128x512xf32>, vector<8x512xf32> -> vector<8x512xf32>
    %85 = arith.addf %83, %84 : vector<8x512xf32>
    %86 = vector.extract_strided_slice %85 {offsets = [0, 0], sizes = [8, 128], strides = [1, 1]} : vector<8x512xf32> to vector<8x128xf32>
    %87 = arith.negf %86 : vector<8x128xf32>
    %88 = math.exp %87 : vector<8x128xf32>
    %cst_32 = arith.constant 1.000000e+00 : f32
    %89 = vector.broadcast %cst_32 : f32 to vector<8x128xf32>
    %90 = arith.addf %89, %88 : vector<8x128xf32>
    %91 = arith.divf %89, %90 : vector<8x128xf32>
    %92 = vector.extract_strided_slice %85 {offsets = [0, 128], sizes = [8, 128], strides = [1, 1]} : vector<8x512xf32> to vector<8x128xf32>
    %93 = arith.negf %92 : vector<8x128xf32>
    %94 = math.exp %93 : vector<8x128xf32>
    %cst_33 = arith.constant 1.000000e+00 : f32
    %95 = vector.broadcast %cst_33 : f32 to vector<8x128xf32>
    %96 = arith.addf %95, %94 : vector<8x128xf32>
    %97 = arith.divf %95, %96 : vector<8x128xf32>
    %98 = vector.extract_strided_slice %85 {offsets = [0, 256], sizes = [8, 128], strides = [1, 1]} : vector<8x512xf32> to vector<8x128xf32>
    %99 = math.tanh %98 : vector<8x128xf32>
    %100 = vector.extract_strided_slice %85 {offsets = [0, 384], sizes = [8, 128], strides = [1, 1]} : vector<8x512xf32> to vector<8x128xf32>
    %101 = arith.negf %100 : vector<8x128xf32>
    %102 = math.exp %101 : vector<8x128xf32>
    %cst_34 = arith.constant 1.000000e+00 : f32
    %103 = vector.broadcast %cst_34 : f32 to vector<8x128xf32>
    %104 = arith.addf %103, %102 : vector<8x128xf32>
    %105 = arith.divf %103, %104 : vector<8x128xf32>
    %106 = arith.mulf %97, %74 : vector<8x128xf32>
    %107 = arith.mulf %91, %99 : vector<8x128xf32>
    %108 = arith.addf %106, %107 : vector<8x128xf32>
    %109 = math.tanh %108 : vector<8x128xf32>
    %110 = arith.mulf %105, %109 : vector<8x128xf32>
    %111 = arith.index_cast %c2_i32 : i32 to index
    %c0_35 = arith.constant 0 : index
    %c0_36 = arith.constant 0 : index
    %112 = vector.load %arg15[%111, %c0_35, %c0_36] : memref<8x8x128xf32, #tpu.memory_space<vmem>>, vector<1x8x128xf32>
    %113 = vector.shape_cast %112 : vector<1x8x128xf32> to vector<8x128xf32>
    %114 = vector.shape_cast %110 : vector<8x128xf32> to vector<1x8x128xf32>
    tpu.vector_store %arg15[%111, %c0_35, %c0_36], %114 {strides = array<i32>} : memref<8x8x128xf32, #tpu.memory_space<vmem>>, vector<1x8x128xf32>,
    %c3_i32 = arith.constant 3 : i32
    %115 = arith.index_cast %c3_i32 : i32 to index
    %c0_37 = arith.constant 0 : index
    %c0_38 = arith.constant 0 : index
    %116 = vector.load %arg14[%115, %c0_37, %c0_38] : memref<8x8x512xf32, #tpu.memory_space<vmem>>, vector<1x8x512xf32>
    %117 = vector.shape_cast %116 : vector<1x8x512xf32> to vector<8x512xf32>
    %cst_39 = arith.constant dense<0.000000e+00> : vector<8x512xf32>
    %118 = tpu.matmul %110, %10, %cst_39 {dimension_numbers = #tpu.dot_dimension_numbers<[1], [0], [0], [1], [0, 0, 1, 1], [], []>} : vector<8x128xf32>, vector<128x512xf32>, vector<8x512xf32> -> vector<8x512xf32>
    %119 = arith.addf %117, %118 : vector<8x512xf32>
    %120 = vector.extract_strided_slice %119 {offsets = [0, 0], sizes = [8, 128], strides = [1, 1]} : vector<8x512xf32> to vector<8x128xf32>
    %121 = arith.negf %120 : vector<8x128xf32>
    %122 = math.exp %121 : vector<8x128xf32>
    %cst_40 = arith.constant 1.000000e+00 : f32
    %123 = vector.broadcast %cst_40 : f32 to vector<8x128xf32>
    %124 = arith.addf %123, %122 : vector<8x128xf32>
    %125 = arith.divf %123, %124 : vector<8x128xf32>
    %126 = vector.extract_strided_slice %119 {offsets = [0, 128], sizes = [8, 128], strides = [1, 1]} : vector<8x512xf32> to vector<8x128xf32>
    %127 = arith.negf %126 : vector<8x128xf32>
    %128 = math.exp %127 : vector<8x128xf32>
    %cst_41 = arith.constant 1.000000e+00 : f32
    %129 = vector.broadcast %cst_41 : f32 to vector<8x128xf32>
    %130 = arith.addf %129, %128 : vector<8x128xf32>
    %131 = arith.divf %129, %130 : vector<8x128xf32>
    %132 = vector.extract_strided_slice %119 {offsets = [0, 256], sizes = [8, 128], strides = [1, 1]} : vector<8x512xf32> to vector<8x128xf32>
    %133 = math.tanh %132 : vector<8x128xf32>
    %134 = vector.extract_strided_slice %119 {offsets = [0, 384], sizes = [8, 128], strides = [1, 1]} : vector<8x512xf32> to vector<8x128xf32>
    %135 = arith.negf %134 : vector<8x128xf32>
    %136 = math.exp %135 : vector<8x128xf32>
    %cst_42 = arith.constant 1.000000e+00 : f32
    %137 = vector.broadcast %cst_42 : f32 to vector<8x128xf32>
    %138 = arith.addf %137, %136 : vector<8x128xf32>
    %139 = arith.divf %137, %138 : vector<8x128xf32>
    %140 = arith.mulf %131, %108 : vector<8x128xf32>
    %141 = arith.mulf %125, %133 : vector<8x128xf32>
    %142 = arith.addf %140, %141 : vector<8x128xf32>
    %143 = math.tanh %142 : vector<8x128xf32>
    %144 = arith.mulf %139, %143 : vector<8x128xf32>
    %145 = arith.index_cast %c3_i32 : i32 to index
    %c0_43 = arith.constant 0 : index
    %c0_44 = arith.constant 0 : index
    %146 = vector.load %arg15[%145, %c0_43, %c0_44] : memref<8x8x128xf32, #tpu.memory_space<vmem>>, vector<1x8x128xf32>
    %147 = vector.shape_cast %146 : vector<1x8x128xf32> to vector<8x128xf32>
    %148 = vector.shape_cast %144 : vector<8x128xf32> to vector<1x8x128xf32>
    tpu.vector_store %arg15[%145, %c0_43, %c0_44], %148 {strides = array<i32>} : memref<8x8x128xf32, #tpu.memory_space<vmem>>, vector<1x8x128xf32>,
    %c4_i32 = arith.constant 4 : i32
    %149 = arith.index_cast %c4_i32 : i32 to index
    %c0_45 = arith.constant 0 : index
    %c0_46 = arith.constant 0 : index
    %150 = vector.load %arg14[%149, %c0_45, %c0_46] : memref<8x8x512xf32, #tpu.memory_space<vmem>>, vector<1x8x512xf32>
    %151 = vector.shape_cast %150 : vector<1x8x512xf32> to vector<8x512xf32>
    %cst_47 = arith.constant dense<0.000000e+00> : vector<8x512xf32>
    %152 = tpu.matmul %144, %10, %cst_47 {dimension_numbers = #tpu.dot_dimension_numbers<[1], [0], [0], [1], [0, 0, 1, 1], [], []>} : vector<8x128xf32>, vector<128x512xf32>, vector<8x512xf32> -> vector<8x512xf32>
    %153 = arith.addf %151, %152 : vector<8x512xf32>
    %154 = vector.extract_strided_slice %153 {offsets = [0, 0], sizes = [8, 128], strides = [1, 1]} : vector<8x512xf32> to vector<8x128xf32>
    %155 = arith.negf %154 : vector<8x128xf32>
    %156 = math.exp %155 : vector<8x128xf32>
    %cst_48 = arith.constant 1.000000e+00 : f32
    %157 = vector.broadcast %cst_48 : f32 to vector<8x128xf32>
    %158 = arith.addf %157, %156 : vector<8x128xf32>
    %159 = arith.divf %157, %158 : vector<8x128xf32>
    %160 = vector.extract_strided_slice %153 {offsets = [0, 128], sizes = [8, 128], strides = [1, 1]} : vector<8x512xf32> to vector<8x128xf32>
    %161 = arith.negf %160 : vector<8x128xf32>
    %162 = math.exp %161 : vector<8x128xf32>
    %cst_49 = arith.constant 1.000000e+00 : f32
    %163 = vector.broadcast %cst_49 : f32 to vector<8x128xf32>
    %164 = arith.addf %163, %162 : vector<8x128xf32>
    %165 = arith.divf %163, %164 : vector<8x128xf32>
    %166 = vector.extract_strided_slice %153 {offsets = [0, 256], sizes = [8, 128], strides = [1, 1]} : vector<8x512xf32> to vector<8x128xf32>
    %167 = math.tanh %166 : vector<8x128xf32>
    %168 = vector.extract_strided_slice %153 {offsets = [0, 384], sizes = [8, 128], strides = [1, 1]} : vector<8x512xf32> to vector<8x128xf32>
    %169 = arith.negf %168 : vector<8x128xf32>
    %170 = math.exp %169 : vector<8x128xf32>
    %cst_50 = arith.constant 1.000000e+00 : f32
    %171 = vector.broadcast %cst_50 : f32 to vector<8x128xf32>
    %172 = arith.addf %171, %170 : vector<8x128xf32>
    %173 = arith.divf %171, %172 : vector<8x128xf32>
    %174 = arith.mulf %165, %142 : vector<8x128xf32>
    %175 = arith.mulf %159, %167 : vector<8x128xf32>
    %176 = arith.addf %174, %175 : vector<8x128xf32>
    %177 = math.tanh %176 : vector<8x128xf32>
    %178 = arith.mulf %173, %177 : vector<8x128xf32>
    %179 = arith.index_cast %c4_i32 : i32 to index
    %c0_51 = arith.constant 0 : index
    %c0_52 = arith.constant 0 : index
    %180 = vector.load %arg15[%179, %c0_51, %c0_52] : memref<8x8x128xf32, #tpu.memory_space<vmem>>, vector<1x8x128xf32>
    %181 = vector.shape_cast %180 : vector<1x8x128xf32> to vector<8x128xf32>
    %182 = vector.shape_cast %178 : vector<8x128xf32> to vector<1x8x128xf32>
    tpu.vector_store %arg15[%179, %c0_51, %c0_52], %182 {strides = array<i32>} : memref<8x8x128xf32, #tpu.memory_space<vmem>>, vector<1x8x128xf32>,
    %c5_i32 = arith.constant 5 : i32
    %183 = arith.index_cast %c5_i32 : i32 to index
    %c0_53 = arith.constant 0 : index
    %c0_54 = arith.constant 0 : index
    %184 = vector.load %arg14[%183, %c0_53, %c0_54] : memref<8x8x512xf32, #tpu.memory_space<vmem>>, vector<1x8x512xf32>
    %185 = vector.shape_cast %184 : vector<1x8x512xf32> to vector<8x512xf32>
    %cst_55 = arith.constant dense<0.000000e+00> : vector<8x512xf32>
    %186 = tpu.matmul %178, %10, %cst_55 {dimension_numbers = #tpu.dot_dimension_numbers<[1], [0], [0], [1], [0, 0, 1, 1], [], []>} : vector<8x128xf32>, vector<128x512xf32>, vector<8x512xf32> -> vector<8x512xf32>
    %187 = arith.addf %185, %186 : vector<8x512xf32>
    %188 = vector.extract_strided_slice %187 {offsets = [0, 0], sizes = [8, 128], strides = [1, 1]} : vector<8x512xf32> to vector<8x128xf32>
    %189 = arith.negf %188 : vector<8x128xf32>
    %190 = math.exp %189 : vector<8x128xf32>
    %cst_56 = arith.constant 1.000000e+00 : f32
    %191 = vector.broadcast %cst_56 : f32 to vector<8x128xf32>
    %192 = arith.addf %191, %190 : vector<8x128xf32>
    %193 = arith.divf %191, %192 : vector<8x128xf32>
    %194 = vector.extract_strided_slice %187 {offsets = [0, 128], sizes = [8, 128], strides = [1, 1]} : vector<8x512xf32> to vector<8x128xf32>
    %195 = arith.negf %194 : vector<8x128xf32>
    %196 = math.exp %195 : vector<8x128xf32>
    %cst_57 = arith.constant 1.000000e+00 : f32
    %197 = vector.broadcast %cst_57 : f32 to vector<8x128xf32>
    %198 = arith.addf %197, %196 : vector<8x128xf32>
    %199 = arith.divf %197, %198 : vector<8x128xf32>
    %200 = vector.extract_strided_slice %187 {offsets = [0, 256], sizes = [8, 128], strides = [1, 1]} : vector<8x512xf32> to vector<8x128xf32>
    %201 = math.tanh %200 : vector<8x128xf32>
    %202 = vector.extract_strided_slice %187 {offsets = [0, 384], sizes = [8, 128], strides = [1, 1]} : vector<8x512xf32> to vector<8x128xf32>
    %203 = arith.negf %202 : vector<8x128xf32>
    %204 = math.exp %203 : vector<8x128xf32>
    %cst_58 = arith.constant 1.000000e+00 : f32
    %205 = vector.broadcast %cst_58 : f32 to vector<8x128xf32>
    %206 = arith.addf %205, %204 : vector<8x128xf32>
    %207 = arith.divf %205, %206 : vector<8x128xf32>
    %208 = arith.mulf %199, %176 : vector<8x128xf32>
    %209 = arith.mulf %193, %201 : vector<8x128xf32>
    %210 = arith.addf %208, %209 : vector<8x128xf32>
    %211 = math.tanh %210 : vector<8x128xf32>
    %212 = arith.mulf %207, %211 : vector<8x128xf32>
    %213 = arith.index_cast %c5_i32 : i32 to index
    %c0_59 = arith.constant 0 : index
    %c0_60 = arith.constant 0 : index
    %214 = vector.load %arg15[%213, %c0_59, %c0_60] : memref<8x8x128xf32, #tpu.memory_space<vmem>>, vector<1x8x128xf32>
    %215 = vector.shape_cast %214 : vector<1x8x128xf32> to vector<8x128xf32>
    %216 = vector.shape_cast %212 : vector<8x128xf32> to vector<1x8x128xf32>
    tpu.vector_store %arg15[%213, %c0_59, %c0_60], %216 {strides = array<i32>} : memref<8x8x128xf32, #tpu.memory_space<vmem>>, vector<1x8x128xf32>,
    %c6_i32 = arith.constant 6 : i32
    %217 = arith.index_cast %c6_i32 : i32 to index
    %c0_61 = arith.constant 0 : index
    %c0_62 = arith.constant 0 : index
    %218 = vector.load %arg14[%217, %c0_61, %c0_62] : memref<8x8x512xf32, #tpu.memory_space<vmem>>, vector<1x8x512xf32>
    %219 = vector.shape_cast %218 : vector<1x8x512xf32> to vector<8x512xf32>
    %cst_63 = arith.constant dense<0.000000e+00> : vector<8x512xf32>
    %220 = tpu.matmul %212, %10, %cst_63 {dimension_numbers = #tpu.dot_dimension_numbers<[1], [0], [0], [1], [0, 0, 1, 1], [], []>} : vector<8x128xf32>, vector<128x512xf32>, vector<8x512xf32> -> vector<8x512xf32>
    %221 = arith.addf %219, %220 : vector<8x512xf32>
    %222 = vector.extract_strided_slice %221 {offsets = [0, 0], sizes = [8, 128], strides = [1, 1]} : vector<8x512xf32> to vector<8x128xf32>
    %223 = arith.negf %222 : vector<8x128xf32>
    %224 = math.exp %223 : vector<8x128xf32>
    %cst_64 = arith.constant 1.000000e+00 : f32
    %225 = vector.broadcast %cst_64 : f32 to vector<8x128xf32>
    %226 = arith.addf %225, %224 : vector<8x128xf32>
    %227 = arith.divf %225, %226 : vector<8x128xf32>
    %228 = vector.extract_strided_slice %221 {offsets = [0, 128], sizes = [8, 128], strides = [1, 1]} : vector<8x512xf32> to vector<8x128xf32>
    %229 = arith.negf %228 : vector<8x128xf32>
    %230 = math.exp %229 : vector<8x128xf32>
    %cst_65 = arith.constant 1.000000e+00 : f32
    %231 = vector.broadcast %cst_65 : f32 to vector<8x128xf32>
    %232 = arith.addf %231, %230 : vector<8x128xf32>
    %233 = arith.divf %231, %232 : vector<8x128xf32>
    %234 = vector.extract_strided_slice %221 {offsets = [0, 256], sizes = [8, 128], strides = [1, 1]} : vector<8x512xf32> to vector<8x128xf32>
    %235 = math.tanh %234 : vector<8x128xf32>
    %236 = vector.extract_strided_slice %221 {offsets = [0, 384], sizes = [8, 128], strides = [1, 1]} : vector<8x512xf32> to vector<8x128xf32>
    %237 = arith.negf %236 : vector<8x128xf32>
    %238 = math.exp %237 : vector<8x128xf32>
    %cst_66 = arith.constant 1.000000e+00 : f32
    %239 = vector.broadcast %cst_66 : f32 to vector<8x128xf32>
    %240 = arith.addf %239, %238 : vector<8x128xf32>
    %241 = arith.divf %239, %240 : vector<8x128xf32>
    %242 = arith.mulf %233, %210 : vector<8x128xf32>
    %243 = arith.mulf %227, %235 : vector<8x128xf32>
    %244 = arith.addf %242, %243 : vector<8x128xf32>
    %245 = math.tanh %244 : vector<8x128xf32>
    %246 = arith.mulf %241, %245 : vector<8x128xf32>
    %247 = arith.index_cast %c6_i32 : i32 to index
    %c0_67 = arith.constant 0 : index
    %c0_68 = arith.constant 0 : index
    %248 = vector.load %arg15[%247, %c0_67, %c0_68] : memref<8x8x128xf32, #tpu.memory_space<vmem>>, vector<1x8x128xf32>
    %249 = vector.shape_cast %248 : vector<1x8x128xf32> to vector<8x128xf32>
    %250 = vector.shape_cast %246 : vector<8x128xf32> to vector<1x8x128xf32>
    tpu.vector_store %arg15[%247, %c0_67, %c0_68], %250 {strides = array<i32>} : memref<8x8x128xf32, #tpu.memory_space<vmem>>, vector<1x8x128xf32>,
    %c7_i32 = arith.constant 7 : i32
    %251 = arith.index_cast %c7_i32 : i32 to index
    %c0_69 = arith.constant 0 : index
    %c0_70 = arith.constant 0 : index
    %252 = vector.load %arg14[%251, %c0_69, %c0_70] : memref<8x8x512xf32, #tpu.memory_space<vmem>>, vector<1x8x512xf32>
    %253 = vector.shape_cast %252 : vector<1x8x512xf32> to vector<8x512xf32>
    %cst_71 = arith.constant dense<0.000000e+00> : vector<8x512xf32>
    %254 = tpu.matmul %246, %10, %cst_71 {dimension_numbers = #tpu.dot_dimension_numbers<[1], [0], [0], [1], [0, 0, 1, 1], [], []>} : vector<8x128xf32>, vector<128x512xf32>, vector<8x512xf32> -> vector<8x512xf32>
    %255 = arith.addf %253, %254 : vector<8x512xf32>
    %256 = vector.extract_strided_slice %255 {offsets = [0, 0], sizes = [8, 128], strides = [1, 1]} : vector<8x512xf32> to vector<8x128xf32>
    %257 = arith.negf %256 : vector<8x128xf32>
    %258 = math.exp %257 : vector<8x128xf32>
    %cst_72 = arith.constant 1.000000e+00 : f32
    %259 = vector.broadcast %cst_72 : f32 to vector<8x128xf32>
    %260 = arith.addf %259, %258 : vector<8x128xf32>
    %261 = arith.divf %259, %260 : vector<8x128xf32>
    %262 = vector.extract_strided_slice %255 {offsets = [0, 128], sizes = [8, 128], strides = [1, 1]} : vector<8x512xf32> to vector<8x128xf32>
    %263 = arith.negf %262 : vector<8x128xf32>
    %264 = math.exp %263 : vector<8x128xf32>
    %cst_73 = arith.constant 1.000000e+00 : f32
    %265 = vector.broadcast %cst_73 : f32 to vector<8x128xf32>
    %266 = arith.addf %265, %264 : vector<8x128xf32>
    %267 = arith.divf %265, %266 : vector<8x128xf32>
    %268 = vector.extract_strided_slice %255 {offsets = [0, 256], sizes = [8, 128], strides = [1, 1]} : vector<8x512xf32> to vector<8x128xf32>
    %269 = math.tanh %268 : vector<8x128xf32>
    %270 = vector.extract_strided_slice %255 {offsets = [0, 384], sizes = [8, 128], strides = [1, 1]} : vector<8x512xf32> to vector<8x128xf32>
    %271 = arith.negf %270 : vector<8x128xf32>
    %272 = math.exp %271 : vector<8x128xf32>
    %cst_74 = arith.constant 1.000000e+00 : f32
    %273 = vector.broadcast %cst_74 : f32 to vector<8x128xf32>
    %274 = arith.addf %273, %272 : vector<8x128xf32>
    %275 = arith.divf %273, %274 : vector<8x128xf32>
    %276 = arith.mulf %267, %244 : vector<8x128xf32>
    %277 = arith.mulf %261, %269 : vector<8x128xf32>
    %278 = arith.addf %276, %277 : vector<8x128xf32>
    %279 = math.tanh %278 : vector<8x128xf32>
    %280 = arith.mulf %275, %279 : vector<8x128xf32>
    %281 = arith.index_cast %c7_i32 : i32 to index
    %c0_75 = arith.constant 0 : index
    %c0_76 = arith.constant 0 : index
    %282 = vector.load %arg15[%281, %c0_75, %c0_76] : memref<8x8x128xf32, #tpu.memory_space<vmem>>, vector<1x8x128xf32>
    %283 = vector.shape_cast %282 : vector<1x8x128xf32> to vector<8x128xf32>
    %284 = vector.shape_cast %280 : vector<8x128xf32> to vector<1x8x128xf32>
    tpu.vector_store %arg15[%281, %c0_75, %c0_76], %284 {strides = array<i32>} : memref<8x8x128xf32, #tpu.memory_space<vmem>>, vector<1x8x128xf32>,
    %c8_i32 = arith.constant 8 : i32
    %c0_77 = arith.constant 0 : index
    %c0_78 = arith.constant 0 : index
    %c0_79 = arith.constant 0 : index
    %285 = vector.load %arg15[%c0_77, %c0_78, %c0_79] : memref<8x8x128xf32, #tpu.memory_space<vmem>>, vector<8x8x128xf32>
    %286 = vector.shape_cast %285 : vector<8x8x128xf32> to vector<64x128xf32>
    %c0_80 = arith.constant 0 : index
    %c0_81 = arith.constant 0 : index
    %287 = vector.load %arg5[%c0_80, %c0_81] : memref<128x512xf32, #tpu.memory_space<vmem>>, vector<128x512xf32>
    %cst_82 = arith.constant dense<0.000000e+00> : vector<64x512xf32>
    %288 = tpu.matmul %286, %287, %cst_82 {dimension_numbers = #tpu.dot_dimension_numbers<[1], [0], [0], [1], [0, 0, 1, 1], [], []>} : vector<64x128xf32>, vector<128x512xf32>, vector<64x512xf32> -> vector<64x512xf32>
    %289 = vector.shape_cast %288 : vector<64x512xf32> to vector<8x8x512xf32>
    %c0_83 = arith.constant 0 : index
    %c0_84 = arith.constant 0 : index
    %290 = vector.load %arg7[%c0_83, %c0_84] : memref<1x512xf32, #tpu.memory_space<vmem>>, vector<1x512xf32>
    %291 = vector.shape_cast %290 : vector<1x512xf32> to vector<1x1x512xf32>
    %292 = vector.broadcast %291 : vector<1x1x512xf32> to vector<8x8x512xf32>
    %293 = arith.addf %289, %292 : vector<8x8x512xf32>
    %c0_85 = arith.constant 0 : index
    %c0_86 = arith.constant 0 : index
    %c0_87 = arith.constant 0 : index
    %294 = vector.load %arg14[%c0_85, %c0_86, %c0_87] : memref<8x8x512xf32, #tpu.memory_space<vmem>>, vector<8x8x512xf32>
    tpu.vector_store %arg14[%c0_85, %c0_86, %c0_87], %293 {strides = array<i32>} : memref<8x8x512xf32, #tpu.memory_space<vmem>>, vector<8x8x512xf32>,
    %c0_88 = arith.constant 0 : index
    %c0_89 = arith.constant 0 : index
    %295 = vector.load %arg6[%c0_88, %c0_89] : memref<128x512xf32, #tpu.memory_space<vmem>>, vector<128x512xf32>
    %cst_90 = arith.constant 0.000000e+00 : f32
    %296 = vector.broadcast %cst_90 : f32 to vector<8x128xf32>
    %cst_91 = arith.constant 0.000000e+00 : f32
    %297 = vector.broadcast %cst_91 : f32 to vector<8x128xf32>
    %c0_i32_92 = arith.constant 0 : i32
    %298 = arith.index_cast %c0_i32_92 : i32 to index
    %c0_93 = arith.constant 0 : index
    %c0_94 = arith.constant 0 : index
    %299 = vector.load %arg14[%298, %c0_93, %c0_94] : memref<8x8x512xf32, #tpu.memory_space<vmem>>, vector<1x8x512xf32>
    %300 = vector.shape_cast %299 : vector<1x8x512xf32> to vector<8x512xf32>
    %cst_95 = arith.constant dense<0.000000e+00> : vector<8x512xf32>
    %301 = tpu.matmul %296, %295, %cst_95 {dimension_numbers = #tpu.dot_dimension_numbers<[1], [0], [0], [1], [0, 0, 1, 1], [], []>} : vector<8x128xf32>, vector<128x512xf32>, vector<8x512xf32> -> vector<8x512xf32>
    %302 = arith.addf %300, %301 : vector<8x512xf32>
    %303 = vector.extract_strided_slice %302 {offsets = [0, 0], sizes = [8, 128], strides = [1, 1]} : vector<8x512xf32> to vector<8x128xf32>
    %304 = arith.negf %303 : vector<8x128xf32>
    %305 = math.exp %304 : vector<8x128xf32>
    %cst_96 = arith.constant 1.000000e+00 : f32
    %306 = vector.broadcast %cst_96 : f32 to vector<8x128xf32>
    %307 = arith.addf %306, %305 : vector<8x128xf32>
    %308 = arith.divf %306, %307 : vector<8x128xf32>
    %309 = vector.extract_strided_slice %302 {offsets = [0, 128], sizes = [8, 128], strides = [1, 1]} : vector<8x512xf32> to vector<8x128xf32>
    %310 = arith.negf %309 : vector<8x128xf32>
    %311 = math.exp %310 : vector<8x128xf32>
    %cst_97 = arith.constant 1.000000e+00 : f32
    %312 = vector.broadcast %cst_97 : f32 to vector<8x128xf32>
    %313 = arith.addf %312, %311 : vector<8x128xf32>
    %314 = arith.divf %312, %313 : vector<8x128xf32>
    %315 = vector.extract_strided_slice %302 {offsets = [0, 256], sizes = [8, 128], strides = [1, 1]} : vector<8x512xf32> to vector<8x128xf32>
    %316 = math.tanh %315 : vector<8x128xf32>
    %317 = vector.extract_strided_slice %302 {offsets = [0, 384], sizes = [8, 128], strides = [1, 1]} : vector<8x512xf32> to vector<8x128xf32>
    %318 = arith.negf %317 : vector<8x128xf32>
    %319 = math.exp %318 : vector<8x128xf32>
    %cst_98 = arith.constant 1.000000e+00 : f32
    %320 = vector.broadcast %cst_98 : f32 to vector<8x128xf32>
    %321 = arith.addf %320, %319 : vector<8x128xf32>
    %322 = arith.divf %320, %321 : vector<8x128xf32>
    %323 = arith.mulf %314, %297 : vector<8x128xf32>
    %324 = arith.mulf %308, %316 : vector<8x128xf32>
    %325 = arith.addf %323, %324 : vector<8x128xf32>
    %326 = math.tanh %325 : vector<8x128xf32>
    %327 = arith.mulf %322, %326 : vector<8x128xf32>
    %328 = arith.index_cast %c0_i32_92 : i32 to index
    %c0_99 = arith.constant 0 : index
    %c0_100 = arith.constant 0 : index
    %329 = vector.load %arg15[%328, %c0_99, %c0_100] : memref<8x8x128xf32, #tpu.memory_space<vmem>>, vector<1x8x128xf32>
    %330 = vector.shape_cast %329 : vector<1x8x128xf32> to vector<8x128xf32>
    %331 = vector.shape_cast %327 : vector<8x128xf32> to vector<1x8x128xf32>
    tpu.vector_store %arg15[%328, %c0_99, %c0_100], %331 {strides = array<i32>} : memref<8x8x128xf32, #tpu.memory_space<vmem>>, vector<1x8x128xf32>,
    %c1_i32_101 = arith.constant 1 : i32
    %332 = arith.index_cast %c1_i32_101 : i32 to index
    %c0_102 = arith.constant 0 : index
    %c0_103 = arith.constant 0 : index
    %333 = vector.load %arg14[%332, %c0_102, %c0_103] : memref<8x8x512xf32, #tpu.memory_space<vmem>>, vector<1x8x512xf32>
    %334 = vector.shape_cast %333 : vector<1x8x512xf32> to vector<8x512xf32>
    %cst_104 = arith.constant dense<0.000000e+00> : vector<8x512xf32>
    %335 = tpu.matmul %327, %295, %cst_104 {dimension_numbers = #tpu.dot_dimension_numbers<[1], [0], [0], [1], [0, 0, 1, 1], [], []>} : vector<8x128xf32>, vector<128x512xf32>, vector<8x512xf32> -> vector<8x512xf32>
    %336 = arith.addf %334, %335 : vector<8x512xf32>
    %337 = vector.extract_strided_slice %336 {offsets = [0, 0], sizes = [8, 128], strides = [1, 1]} : vector<8x512xf32> to vector<8x128xf32>
    %338 = arith.negf %337 : vector<8x128xf32>
    %339 = math.exp %338 : vector<8x128xf32>
    %cst_105 = arith.constant 1.000000e+00 : f32
    %340 = vector.broadcast %cst_105 : f32 to vector<8x128xf32>
    %341 = arith.addf %340, %339 : vector<8x128xf32>
    %342 = arith.divf %340, %341 : vector<8x128xf32>
    %343 = vector.extract_strided_slice %336 {offsets = [0, 128], sizes = [8, 128], strides = [1, 1]} : vector<8x512xf32> to vector<8x128xf32>
    %344 = arith.negf %343 : vector<8x128xf32>
    %345 = math.exp %344 : vector<8x128xf32>
    %cst_106 = arith.constant 1.000000e+00 : f32
    %346 = vector.broadcast %cst_106 : f32 to vector<8x128xf32>
    %347 = arith.addf %346, %345 : vector<8x128xf32>
    %348 = arith.divf %346, %347 : vector<8x128xf32>
    %349 = vector.extract_strided_slice %336 {offsets = [0, 256], sizes = [8, 128], strides = [1, 1]} : vector<8x512xf32> to vector<8x128xf32>
    %350 = math.tanh %349 : vector<8x128xf32>
    %351 = vector.extract_strided_slice %336 {offsets = [0, 384], sizes = [8, 128], strides = [1, 1]} : vector<8x512xf32> to vector<8x128xf32>
    %352 = arith.negf %351 : vector<8x128xf32>
    %353 = math.exp %352 : vector<8x128xf32>
    %cst_107 = arith.constant 1.000000e+00 : f32
    %354 = vector.broadcast %cst_107 : f32 to vector<8x128xf32>
    %355 = arith.addf %354, %353 : vector<8x128xf32>
    %356 = arith.divf %354, %355 : vector<8x128xf32>
    %357 = arith.mulf %348, %325 : vector<8x128xf32>
    %358 = arith.mulf %342, %350 : vector<8x128xf32>
    %359 = arith.addf %357, %358 : vector<8x128xf32>
    %360 = math.tanh %359 : vector<8x128xf32>
    %361 = arith.mulf %356, %360 : vector<8x128xf32>
    %362 = arith.index_cast %c1_i32_101 : i32 to index
    %c0_108 = arith.constant 0 : index
    %c0_109 = arith.constant 0 : index
    %363 = vector.load %arg15[%362, %c0_108, %c0_109] : memref<8x8x128xf32, #tpu.memory_space<vmem>>, vector<1x8x128xf32>
    %364 = vector.shape_cast %363 : vector<1x8x128xf32> to vector<8x128xf32>
    %365 = vector.shape_cast %361 : vector<8x128xf32> to vector<1x8x128xf32>
    tpu.vector_store %arg15[%362, %c0_108, %c0_109], %365 {strides = array<i32>} : memref<8x8x128xf32, #tpu.memory_space<vmem>>, vector<1x8x128xf32>,
    %c2_i32_110 = arith.constant 2 : i32
    %366 = arith.index_cast %c2_i32_110 : i32 to index
    %c0_111 = arith.constant 0 : index
    %c0_112 = arith.constant 0 : index
    %367 = vector.load %arg14[%366, %c0_111, %c0_112] : memref<8x8x512xf32, #tpu.memory_space<vmem>>, vector<1x8x512xf32>
    %368 = vector.shape_cast %367 : vector<1x8x512xf32> to vector<8x512xf32>
    %cst_113 = arith.constant dense<0.000000e+00> : vector<8x512xf32>
    %369 = tpu.matmul %361, %295, %cst_113 {dimension_numbers = #tpu.dot_dimension_numbers<[1], [0], [0], [1], [0, 0, 1, 1], [], []>} : vector<8x128xf32>, vector<128x512xf32>, vector<8x512xf32> -> vector<8x512xf32>
    %370 = arith.addf %368, %369 : vector<8x512xf32>
    %371 = vector.extract_strided_slice %370 {offsets = [0, 0], sizes = [8, 128], strides = [1, 1]} : vector<8x512xf32> to vector<8x128xf32>
    %372 = arith.negf %371 : vector<8x128xf32>
    %373 = math.exp %372 : vector<8x128xf32>
    %cst_114 = arith.constant 1.000000e+00 : f32
    %374 = vector.broadcast %cst_114 : f32 to vector<8x128xf32>
    %375 = arith.addf %374, %373 : vector<8x128xf32>
    %376 = arith.divf %374, %375 : vector<8x128xf32>
    %377 = vector.extract_strided_slice %370 {offsets = [0, 128], sizes = [8, 128], strides = [1, 1]} : vector<8x512xf32> to vector<8x128xf32>
    %378 = arith.negf %377 : vector<8x128xf32>
    %379 = math.exp %378 : vector<8x128xf32>
    %cst_115 = arith.constant 1.000000e+00 : f32
    %380 = vector.broadcast %cst_115 : f32 to vector<8x128xf32>
    %381 = arith.addf %380, %379 : vector<8x128xf32>
    %382 = arith.divf %380, %381 : vector<8x128xf32>
    %383 = vector.extract_strided_slice %370 {offsets = [0, 256], sizes = [8, 128], strides = [1, 1]} : vector<8x512xf32> to vector<8x128xf32>
    %384 = math.tanh %383 : vector<8x128xf32>
    %385 = vector.extract_strided_slice %370 {offsets = [0, 384], sizes = [8, 128], strides = [1, 1]} : vector<8x512xf32> to vector<8x128xf32>
    %386 = arith.negf %385 : vector<8x128xf32>
    %387 = math.exp %386 : vector<8x128xf32>
    %cst_116 = arith.constant 1.000000e+00 : f32
    %388 = vector.broadcast %cst_116 : f32 to vector<8x128xf32>
    %389 = arith.addf %388, %387 : vector<8x128xf32>
    %390 = arith.divf %388, %389 : vector<8x128xf32>
    %391 = arith.mulf %382, %359 : vector<8x128xf32>
    %392 = arith.mulf %376, %384 : vector<8x128xf32>
    %393 = arith.addf %391, %392 : vector<8x128xf32>
    %394 = math.tanh %393 : vector<8x128xf32>
    %395 = arith.mulf %390, %394 : vector<8x128xf32>
    %396 = arith.index_cast %c2_i32_110 : i32 to index
    %c0_117 = arith.constant 0 : index
    %c0_118 = arith.constant 0 : index
    %397 = vector.load %arg15[%396, %c0_117, %c0_118] : memref<8x8x128xf32, #tpu.memory_space<vmem>>, vector<1x8x128xf32>
    %398 = vector.shape_cast %397 : vector<1x8x128xf32> to vector<8x128xf32>
    %399 = vector.shape_cast %395 : vector<8x128xf32> to vector<1x8x128xf32>
    tpu.vector_store %arg15[%396, %c0_117, %c0_118], %399 {strides = array<i32>} : memref<8x8x128xf32, #tpu.memory_space<vmem>>, vector<1x8x128xf32>,
    %c3_i32_119 = arith.constant 3 : i32
    %400 = arith.index_cast %c3_i32_119 : i32 to index
    %c0_120 = arith.constant 0 : index
    %c0_121 = arith.constant 0 : index
    %401 = vector.load %arg14[%400, %c0_120, %c0_121] : memref<8x8x512xf32, #tpu.memory_space<vmem>>, vector<1x8x512xf32>
    %402 = vector.shape_cast %401 : vector<1x8x512xf32> to vector<8x512xf32>
    %cst_122 = arith.constant dense<0.000000e+00> : vector<8x512xf32>
    %403 = tpu.matmul %395, %295, %cst_122 {dimension_numbers = #tpu.dot_dimension_numbers<[1], [0], [0], [1], [0, 0, 1, 1], [], []>} : vector<8x128xf32>, vector<128x512xf32>, vector<8x512xf32> -> vector<8x512xf32>
    %404 = arith.addf %402, %403 : vector<8x512xf32>
    %405 = vector.extract_strided_slice %404 {offsets = [0, 0], sizes = [8, 128], strides = [1, 1]} : vector<8x512xf32> to vector<8x128xf32>
    %406 = arith.negf %405 : vector<8x128xf32>
    %407 = math.exp %406 : vector<8x128xf32>
    %cst_123 = arith.constant 1.000000e+00 : f32
    %408 = vector.broadcast %cst_123 : f32 to vector<8x128xf32>
    %409 = arith.addf %408, %407 : vector<8x128xf32>
    %410 = arith.divf %408, %409 : vector<8x128xf32>
    %411 = vector.extract_strided_slice %404 {offsets = [0, 128], sizes = [8, 128], strides = [1, 1]} : vector<8x512xf32> to vector<8x128xf32>
    %412 = arith.negf %411 : vector<8x128xf32>
    %413 = math.exp %412 : vector<8x128xf32>
    %cst_124 = arith.constant 1.000000e+00 : f32
    %414 = vector.broadcast %cst_124 : f32 to vector<8x128xf32>
    %415 = arith.addf %414, %413 : vector<8x128xf32>
    %416 = arith.divf %414, %415 : vector<8x128xf32>
    %417 = vector.extract_strided_slice %404 {offsets = [0, 256], sizes = [8, 128], strides = [1, 1]} : vector<8x512xf32> to vector<8x128xf32>
    %418 = math.tanh %417 : vector<8x128xf32>
    %419 = vector.extract_strided_slice %404 {offsets = [0, 384], sizes = [8, 128], strides = [1, 1]} : vector<8x512xf32> to vector<8x128xf32>
    %420 = arith.negf %419 : vector<8x128xf32>
    %421 = math.exp %420 : vector<8x128xf32>
    %cst_125 = arith.constant 1.000000e+00 : f32
    %422 = vector.broadcast %cst_125 : f32 to vector<8x128xf32>
    %423 = arith.addf %422, %421 : vector<8x128xf32>
    %424 = arith.divf %422, %423 : vector<8x128xf32>
    %425 = arith.mulf %416, %393 : vector<8x128xf32>
    %426 = arith.mulf %410, %418 : vector<8x128xf32>
    %427 = arith.addf %425, %426 : vector<8x128xf32>
    %428 = math.tanh %427 : vector<8x128xf32>
    %429 = arith.mulf %424, %428 : vector<8x128xf32>
    %430 = arith.index_cast %c3_i32_119 : i32 to index
    %c0_126 = arith.constant 0 : index
    %c0_127 = arith.constant 0 : index
    %431 = vector.load %arg15[%430, %c0_126, %c0_127] : memref<8x8x128xf32, #tpu.memory_space<vmem>>, vector<1x8x128xf32>
    %432 = vector.shape_cast %431 : vector<1x8x128xf32> to vector<8x128xf32>
    %433 = vector.shape_cast %429 : vector<8x128xf32> to vector<1x8x128xf32>
    tpu.vector_store %arg15[%430, %c0_126, %c0_127], %433 {strides = array<i32>} : memref<8x8x128xf32, #tpu.memory_space<vmem>>, vector<1x8x128xf32>,
    %c4_i32_128 = arith.constant 4 : i32
    %434 = arith.index_cast %c4_i32_128 : i32 to index
    %c0_129 = arith.constant 0 : index
    %c0_130 = arith.constant 0 : index
    %435 = vector.load %arg14[%434, %c0_129, %c0_130] : memref<8x8x512xf32, #tpu.memory_space<vmem>>, vector<1x8x512xf32>
    %436 = vector.shape_cast %435 : vector<1x8x512xf32> to vector<8x512xf32>
    %cst_131 = arith.constant dense<0.000000e+00> : vector<8x512xf32>
    %437 = tpu.matmul %429, %295, %cst_131 {dimension_numbers = #tpu.dot_dimension_numbers<[1], [0], [0], [1], [0, 0, 1, 1], [], []>} : vector<8x128xf32>, vector<128x512xf32>, vector<8x512xf32> -> vector<8x512xf32>
    %438 = arith.addf %436, %437 : vector<8x512xf32>
    %439 = vector.extract_strided_slice %438 {offsets = [0, 0], sizes = [8, 128], strides = [1, 1]} : vector<8x512xf32> to vector<8x128xf32>
    %440 = arith.negf %439 : vector<8x128xf32>
    %441 = math.exp %440 : vector<8x128xf32>
    %cst_132 = arith.constant 1.000000e+00 : f32
    %442 = vector.broadcast %cst_132 : f32 to vector<8x128xf32>
    %443 = arith.addf %442, %441 : vector<8x128xf32>
    %444 = arith.divf %442, %443 : vector<8x128xf32>
    %445 = vector.extract_strided_slice %438 {offsets = [0, 128], sizes = [8, 128], strides = [1, 1]} : vector<8x512xf32> to vector<8x128xf32>
    %446 = arith.negf %445 : vector<8x128xf32>
    %447 = math.exp %446 : vector<8x128xf32>
    %cst_133 = arith.constant 1.000000e+00 : f32
    %448 = vector.broadcast %cst_133 : f32 to vector<8x128xf32>
    %449 = arith.addf %448, %447 : vector<8x128xf32>
    %450 = arith.divf %448, %449 : vector<8x128xf32>
    %451 = vector.extract_strided_slice %438 {offsets = [0, 256], sizes = [8, 128], strides = [1, 1]} : vector<8x512xf32> to vector<8x128xf32>
    %452 = math.tanh %451 : vector<8x128xf32>
    %453 = vector.extract_strided_slice %438 {offsets = [0, 384], sizes = [8, 128], strides = [1, 1]} : vector<8x512xf32> to vector<8x128xf32>
    %454 = arith.negf %453 : vector<8x128xf32>
    %455 = math.exp %454 : vector<8x128xf32>
    %cst_134 = arith.constant 1.000000e+00 : f32
    %456 = vector.broadcast %cst_134 : f32 to vector<8x128xf32>
    %457 = arith.addf %456, %455 : vector<8x128xf32>
    %458 = arith.divf %456, %457 : vector<8x128xf32>
    %459 = arith.mulf %450, %427 : vector<8x128xf32>
    %460 = arith.mulf %444, %452 : vector<8x128xf32>
    %461 = arith.addf %459, %460 : vector<8x128xf32>
    %462 = math.tanh %461 : vector<8x128xf32>
    %463 = arith.mulf %458, %462 : vector<8x128xf32>
    %464 = arith.index_cast %c4_i32_128 : i32 to index
    %c0_135 = arith.constant 0 : index
    %c0_136 = arith.constant 0 : index
    %465 = vector.load %arg15[%464, %c0_135, %c0_136] : memref<8x8x128xf32, #tpu.memory_space<vmem>>, vector<1x8x128xf32>
    %466 = vector.shape_cast %465 : vector<1x8x128xf32> to vector<8x128xf32>
    %467 = vector.shape_cast %463 : vector<8x128xf32> to vector<1x8x128xf32>
    tpu.vector_store %arg15[%464, %c0_135, %c0_136], %467 {strides = array<i32>} : memref<8x8x128xf32, #tpu.memory_space<vmem>>, vector<1x8x128xf32>,
    %c5_i32_137 = arith.constant 5 : i32
    %468 = arith.index_cast %c5_i32_137 : i32 to index
    %c0_138 = arith.constant 0 : index
    %c0_139 = arith.constant 0 : index
    %469 = vector.load %arg14[%468, %c0_138, %c0_139] : memref<8x8x512xf32, #tpu.memory_space<vmem>>, vector<1x8x512xf32>
    %470 = vector.shape_cast %469 : vector<1x8x512xf32> to vector<8x512xf32>
    %cst_140 = arith.constant dense<0.000000e+00> : vector<8x512xf32>
    %471 = tpu.matmul %463, %295, %cst_140 {dimension_numbers = #tpu.dot_dimension_numbers<[1], [0], [0], [1], [0, 0, 1, 1], [], []>} : vector<8x128xf32>, vector<128x512xf32>, vector<8x512xf32> -> vector<8x512xf32>
    %472 = arith.addf %470, %471 : vector<8x512xf32>
    %473 = vector.extract_strided_slice %472 {offsets = [0, 0], sizes = [8, 128], strides = [1, 1]} : vector<8x512xf32> to vector<8x128xf32>
    %474 = arith.negf %473 : vector<8x128xf32>
    %475 = math.exp %474 : vector<8x128xf32>
    %cst_141 = arith.constant 1.000000e+00 : f32
    %476 = vector.broadcast %cst_141 : f32 to vector<8x128xf32>
    %477 = arith.addf %476, %475 : vector<8x128xf32>
    %478 = arith.divf %476, %477 : vector<8x128xf32>
    %479 = vector.extract_strided_slice %472 {offsets = [0, 128], sizes = [8, 128], strides = [1, 1]} : vector<8x512xf32> to vector<8x128xf32>
    %480 = arith.negf %479 : vector<8x128xf32>
    %481 = math.exp %480 : vector<8x128xf32>
    %cst_142 = arith.constant 1.000000e+00 : f32
    %482 = vector.broadcast %cst_142 : f32 to vector<8x128xf32>
    %483 = arith.addf %482, %481 : vector<8x128xf32>
    %484 = arith.divf %482, %483 : vector<8x128xf32>
    %485 = vector.extract_strided_slice %472 {offsets = [0, 256], sizes = [8, 128], strides = [1, 1]} : vector<8x512xf32> to vector<8x128xf32>
    %486 = math.tanh %485 : vector<8x128xf32>
    %487 = vector.extract_strided_slice %472 {offsets = [0, 384], sizes = [8, 128], strides = [1, 1]} : vector<8x512xf32> to vector<8x128xf32>
    %488 = arith.negf %487 : vector<8x128xf32>
    %489 = math.exp %488 : vector<8x128xf32>
    %cst_143 = arith.constant 1.000000e+00 : f32
    %490 = vector.broadcast %cst_143 : f32 to vector<8x128xf32>
    %491 = arith.addf %490, %489 : vector<8x128xf32>
    %492 = arith.divf %490, %491 : vector<8x128xf32>
    %493 = arith.mulf %484, %461 : vector<8x128xf32>
    %494 = arith.mulf %478, %486 : vector<8x128xf32>
    %495 = arith.addf %493, %494 : vector<8x128xf32>
    %496 = math.tanh %495 : vector<8x128xf32>
    %497 = arith.mulf %492, %496 : vector<8x128xf32>
    %498 = arith.index_cast %c5_i32_137 : i32 to index
    %c0_144 = arith.constant 0 : index
    %c0_145 = arith.constant 0 : index
    %499 = vector.load %arg15[%498, %c0_144, %c0_145] : memref<8x8x128xf32, #tpu.memory_space<vmem>>, vector<1x8x128xf32>
    %500 = vector.shape_cast %499 : vector<1x8x128xf32> to vector<8x128xf32>
    %501 = vector.shape_cast %497 : vector<8x128xf32> to vector<1x8x128xf32>
    tpu.vector_store %arg15[%498, %c0_144, %c0_145], %501 {strides = array<i32>} : memref<8x8x128xf32, #tpu.memory_space<vmem>>, vector<1x8x128xf32>,
    %c6_i32_146 = arith.constant 6 : i32
    %502 = arith.index_cast %c6_i32_146 : i32 to index
    %c0_147 = arith.constant 0 : index
    %c0_148 = arith.constant 0 : index
    %503 = vector.load %arg14[%502, %c0_147, %c0_148] : memref<8x8x512xf32, #tpu.memory_space<vmem>>, vector<1x8x512xf32>
    %504 = vector.shape_cast %503 : vector<1x8x512xf32> to vector<8x512xf32>
    %cst_149 = arith.constant dense<0.000000e+00> : vector<8x512xf32>
    %505 = tpu.matmul %497, %295, %cst_149 {dimension_numbers = #tpu.dot_dimension_numbers<[1], [0], [0], [1], [0, 0, 1, 1], [], []>} : vector<8x128xf32>, vector<128x512xf32>, vector<8x512xf32> -> vector<8x512xf32>
    %506 = arith.addf %504, %505 : vector<8x512xf32>
    %507 = vector.extract_strided_slice %506 {offsets = [0, 0], sizes = [8, 128], strides = [1, 1]} : vector<8x512xf32> to vector<8x128xf32>
    %508 = arith.negf %507 : vector<8x128xf32>
    %509 = math.exp %508 : vector<8x128xf32>
    %cst_150 = arith.constant 1.000000e+00 : f32
    %510 = vector.broadcast %cst_150 : f32 to vector<8x128xf32>
    %511 = arith.addf %510, %509 : vector<8x128xf32>
    %512 = arith.divf %510, %511 : vector<8x128xf32>
    %513 = vector.extract_strided_slice %506 {offsets = [0, 128], sizes = [8, 128], strides = [1, 1]} : vector<8x512xf32> to vector<8x128xf32>
    %514 = arith.negf %513 : vector<8x128xf32>
    %515 = math.exp %514 : vector<8x128xf32>
    %cst_151 = arith.constant 1.000000e+00 : f32
    %516 = vector.broadcast %cst_151 : f32 to vector<8x128xf32>
    %517 = arith.addf %516, %515 : vector<8x128xf32>
    %518 = arith.divf %516, %517 : vector<8x128xf32>
    %519 = vector.extract_strided_slice %506 {offsets = [0, 256], sizes = [8, 128], strides = [1, 1]} : vector<8x512xf32> to vector<8x128xf32>
    %520 = math.tanh %519 : vector<8x128xf32>
    %521 = vector.extract_strided_slice %506 {offsets = [0, 384], sizes = [8, 128], strides = [1, 1]} : vector<8x512xf32> to vector<8x128xf32>
    %522 = arith.negf %521 : vector<8x128xf32>
    %523 = math.exp %522 : vector<8x128xf32>
    %cst_152 = arith.constant 1.000000e+00 : f32
    %524 = vector.broadcast %cst_152 : f32 to vector<8x128xf32>
    %525 = arith.addf %524, %523 : vector<8x128xf32>
    %526 = arith.divf %524, %525 : vector<8x128xf32>
    %527 = arith.mulf %518, %495 : vector<8x128xf32>
    %528 = arith.mulf %512, %520 : vector<8x128xf32>
    %529 = arith.addf %527, %528 : vector<8x128xf32>
    %530 = math.tanh %529 : vector<8x128xf32>
    %531 = arith.mulf %526, %530 : vector<8x128xf32>
    %532 = arith.index_cast %c6_i32_146 : i32 to index
    %c0_153 = arith.constant 0 : index
    %c0_154 = arith.constant 0 : index
    %533 = vector.load %arg15[%532, %c0_153, %c0_154] : memref<8x8x128xf32, #tpu.memory_space<vmem>>, vector<1x8x128xf32>
    %534 = vector.shape_cast %533 : vector<1x8x128xf32> to vector<8x128xf32>
    %535 = vector.shape_cast %531 : vector<8x128xf32> to vector<1x8x128xf32>
    tpu.vector_store %arg15[%532, %c0_153, %c0_154], %535 {strides = array<i32>} : memref<8x8x128xf32, #tpu.memory_space<vmem>>, vector<1x8x128xf32>,
    %c7_i32_155 = arith.constant 7 : i32
    %536 = arith.index_cast %c7_i32_155 : i32 to index
    %c0_156 = arith.constant 0 : index
    %c0_157 = arith.constant 0 : index
    %537 = vector.load %arg14[%536, %c0_156, %c0_157] : memref<8x8x512xf32, #tpu.memory_space<vmem>>, vector<1x8x512xf32>
    %538 = vector.shape_cast %537 : vector<1x8x512xf32> to vector<8x512xf32>
    %cst_158 = arith.constant dense<0.000000e+00> : vector<8x512xf32>
    %539 = tpu.matmul %531, %295, %cst_158 {dimension_numbers = #tpu.dot_dimension_numbers<[1], [0], [0], [1], [0, 0, 1, 1], [], []>} : vector<8x128xf32>, vector<128x512xf32>, vector<8x512xf32> -> vector<8x512xf32>
    %540 = arith.addf %538, %539 : vector<8x512xf32>
    %541 = vector.extract_strided_slice %540 {offsets = [0, 0], sizes = [8, 128], strides = [1, 1]} : vector<8x512xf32> to vector<8x128xf32>
    %542 = arith.negf %541 : vector<8x128xf32>
    %543 = math.exp %542 : vector<8x128xf32>
    %cst_159 = arith.constant 1.000000e+00 : f32
    %544 = vector.broadcast %cst_159 : f32 to vector<8x128xf32>
    %545 = arith.addf %544, %543 : vector<8x128xf32>
    %546 = arith.divf %544, %545 : vector<8x128xf32>
    %547 = vector.extract_strided_slice %540 {offsets = [0, 128], sizes = [8, 128], strides = [1, 1]} : vector<8x512xf32> to vector<8x128xf32>
    %548 = arith.negf %547 : vector<8x128xf32>
    %549 = math.exp %548 : vector<8x128xf32>
    %cst_160 = arith.constant 1.000000e+00 : f32
    %550 = vector.broadcast %cst_160 : f32 to vector<8x128xf32>
    %551 = arith.addf %550, %549 : vector<8x128xf32>
    %552 = arith.divf %550, %551 : vector<8x128xf32>
    %553 = vector.extract_strided_slice %540 {offsets = [0, 256], sizes = [8, 128], strides = [1, 1]} : vector<8x512xf32> to vector<8x128xf32>
    %554 = math.tanh %553 : vector<8x128xf32>
    %555 = vector.extract_strided_slice %540 {offsets = [0, 384], sizes = [8, 128], strides = [1, 1]} : vector<8x512xf32> to vector<8x128xf32>
    %556 = arith.negf %555 : vector<8x128xf32>
    %557 = math.exp %556 : vector<8x128xf32>
    %cst_161 = arith.constant 1.000000e+00 : f32
    %558 = vector.broadcast %cst_161 : f32 to vector<8x128xf32>
    %559 = arith.addf %558, %557 : vector<8x128xf32>
    %560 = arith.divf %558, %559 : vector<8x128xf32>
    %561 = arith.mulf %552, %529 : vector<8x128xf32>
    %562 = arith.mulf %546, %554 : vector<8x128xf32>
    %563 = arith.addf %561, %562 : vector<8x128xf32>
    %564 = math.tanh %563 : vector<8x128xf32>
    %565 = arith.mulf %560, %564 : vector<8x128xf32>
    %566 = arith.index_cast %c7_i32_155 : i32 to index
    %c0_162 = arith.constant 0 : index
    %c0_163 = arith.constant 0 : index
    %567 = vector.load %arg15[%566, %c0_162, %c0_163] : memref<8x8x128xf32, #tpu.memory_space<vmem>>, vector<1x8x128xf32>
    %568 = vector.shape_cast %567 : vector<1x8x128xf32> to vector<8x128xf32>
    %569 = vector.shape_cast %565 : vector<8x128xf32> to vector<1x8x128xf32>
    tpu.vector_store %arg15[%566, %c0_162, %c0_163], %569 {strides = array<i32>} : memref<8x8x128xf32, #tpu.memory_space<vmem>>, vector<1x8x128xf32>,
    %c8_i32_164 = arith.constant 8 : i32
    %c0_165 = arith.constant 0 : index
    %c0_166 = arith.constant 0 : index
    %c0_167 = arith.constant 0 : index
    %570 = vector.load %arg15[%c0_165, %c0_166, %c0_167] : memref<8x8x128xf32, #tpu.memory_space<vmem>>, vector<8x8x128xf32>
    %571 = vector.shape_cast %570 : vector<8x8x128xf32> to vector<64x128xf32>
    %c0_168 = arith.constant 0 : index
    %c0_169 = arith.constant 0 : index
    %572 = vector.load %arg8[%c0_168, %c0_169] : memref<128x512xf32, #tpu.memory_space<vmem>>, vector<128x512xf32>
    %cst_170 = arith.constant dense<0.000000e+00> : vector<64x512xf32>
    %573 = tpu.matmul %571, %572, %cst_170 {dimension_numbers = #tpu.dot_dimension_numbers<[1], [0], [0], [1], [0, 0, 1, 1], [], []>} : vector<64x128xf32>, vector<128x512xf32>, vector<64x512xf32> -> vector<64x512xf32>
    %574 = vector.shape_cast %573 : vector<64x512xf32> to vector<8x8x512xf32>
    %c0_171 = arith.constant 0 : index
    %c0_172 = arith.constant 0 : index
    %575 = vector.load %arg10[%c0_171, %c0_172] : memref<1x512xf32, #tpu.memory_space<vmem>>, vector<1x512xf32>
    %576 = vector.shape_cast %575 : vector<1x512xf32> to vector<1x1x512xf32>
    %577 = vector.broadcast %576 : vector<1x1x512xf32> to vector<8x8x512xf32>
    %578 = arith.addf %574, %577 : vector<8x8x512xf32>
    %c0_173 = arith.constant 0 : index
    %c0_174 = arith.constant 0 : index
    %c0_175 = arith.constant 0 : index
    %579 = vector.load %arg14[%c0_173, %c0_174, %c0_175] : memref<8x8x512xf32, #tpu.memory_space<vmem>>, vector<8x8x512xf32>
    tpu.vector_store %arg14[%c0_173, %c0_174, %c0_175], %578 {strides = array<i32>} : memref<8x8x512xf32, #tpu.memory_space<vmem>>, vector<8x8x512xf32>,
    %c0_176 = arith.constant 0 : index
    %c0_177 = arith.constant 0 : index
    %580 = vector.load %arg9[%c0_176, %c0_177] : memref<128x512xf32, #tpu.memory_space<vmem>>, vector<128x512xf32>
    %cst_178 = arith.constant 0.000000e+00 : f32
    %581 = vector.broadcast %cst_178 : f32 to vector<8x128xf32>
    %cst_179 = arith.constant 0.000000e+00 : f32
    %582 = vector.broadcast %cst_179 : f32 to vector<8x128xf32>
    %c0_i32_180 = arith.constant 0 : i32
    %583 = arith.index_cast %c0_i32_180 : i32 to index
    %c0_181 = arith.constant 0 : index
    %c0_182 = arith.constant 0 : index
    %584 = vector.load %arg14[%583, %c0_181, %c0_182] : memref<8x8x512xf32, #tpu.memory_space<vmem>>, vector<1x8x512xf32>
    %585 = vector.shape_cast %584 : vector<1x8x512xf32> to vector<8x512xf32>
    %cst_183 = arith.constant dense<0.000000e+00> : vector<8x512xf32>
    %586 = tpu.matmul %581, %580, %cst_183 {dimension_numbers = #tpu.dot_dimension_numbers<[1], [0], [0], [1], [0, 0, 1, 1], [], []>} : vector<8x128xf32>, vector<128x512xf32>, vector<8x512xf32> -> vector<8x512xf32>
    %587 = arith.addf %585, %586 : vector<8x512xf32>
    %588 = vector.extract_strided_slice %587 {offsets = [0, 0], sizes = [8, 128], strides = [1, 1]} : vector<8x512xf32> to vector<8x128xf32>
    %589 = arith.negf %588 : vector<8x128xf32>
    %590 = math.exp %589 : vector<8x128xf32>
    %cst_184 = arith.constant 1.000000e+00 : f32
    %591 = vector.broadcast %cst_184 : f32 to vector<8x128xf32>
    %592 = arith.addf %591, %590 : vector<8x128xf32>
    %593 = arith.divf %591, %592 : vector<8x128xf32>
    %594 = vector.extract_strided_slice %587 {offsets = [0, 128], sizes = [8, 128], strides = [1, 1]} : vector<8x512xf32> to vector<8x128xf32>
    %595 = arith.negf %594 : vector<8x128xf32>
    %596 = math.exp %595 : vector<8x128xf32>
    %cst_185 = arith.constant 1.000000e+00 : f32
    %597 = vector.broadcast %cst_185 : f32 to vector<8x128xf32>
    %598 = arith.addf %597, %596 : vector<8x128xf32>
    %599 = arith.divf %597, %598 : vector<8x128xf32>
    %600 = vector.extract_strided_slice %587 {offsets = [0, 256], sizes = [8, 128], strides = [1, 1]} : vector<8x512xf32> to vector<8x128xf32>
    %601 = math.tanh %600 : vector<8x128xf32>
    %602 = vector.extract_strided_slice %587 {offsets = [0, 384], sizes = [8, 128], strides = [1, 1]} : vector<8x512xf32> to vector<8x128xf32>
    %603 = arith.negf %602 : vector<8x128xf32>
    %604 = math.exp %603 : vector<8x128xf32>
    %cst_186 = arith.constant 1.000000e+00 : f32
    %605 = vector.broadcast %cst_186 : f32 to vector<8x128xf32>
    %606 = arith.addf %605, %604 : vector<8x128xf32>
    %607 = arith.divf %605, %606 : vector<8x128xf32>
    %608 = arith.mulf %599, %582 : vector<8x128xf32>
    %609 = arith.mulf %593, %601 : vector<8x128xf32>
    %610 = arith.addf %608, %609 : vector<8x128xf32>
    %611 = math.tanh %610 : vector<8x128xf32>
    %612 = arith.mulf %607, %611 : vector<8x128xf32>
    %c1_i32_187 = arith.constant 1 : i32
    %613 = arith.index_cast %c1_i32_187 : i32 to index
    %c0_188 = arith.constant 0 : index
    %c0_189 = arith.constant 0 : index
    %614 = vector.load %arg14[%613, %c0_188, %c0_189] : memref<8x8x512xf32, #tpu.memory_space<vmem>>, vector<1x8x512xf32>
    %615 = vector.shape_cast %614 : vector<1x8x512xf32> to vector<8x512xf32>
    %cst_190 = arith.constant dense<0.000000e+00> : vector<8x512xf32>
    %616 = tpu.matmul %612, %580, %cst_190 {dimension_numbers = #tpu.dot_dimension_numbers<[1], [0], [0], [1], [0, 0, 1, 1], [], []>} : vector<8x128xf32>, vector<128x512xf32>, vector<8x512xf32> -> vector<8x512xf32>
    %617 = arith.addf %615, %616 : vector<8x512xf32>
    %618 = vector.extract_strided_slice %617 {offsets = [0, 0], sizes = [8, 128], strides = [1, 1]} : vector<8x512xf32> to vector<8x128xf32>
    %619 = arith.negf %618 : vector<8x128xf32>
    %620 = math.exp %619 : vector<8x128xf32>
    %cst_191 = arith.constant 1.000000e+00 : f32
    %621 = vector.broadcast %cst_191 : f32 to vector<8x128xf32>
    %622 = arith.addf %621, %620 : vector<8x128xf32>
    %623 = arith.divf %621, %622 : vector<8x128xf32>
    %624 = vector.extract_strided_slice %617 {offsets = [0, 128], sizes = [8, 128], strides = [1, 1]} : vector<8x512xf32> to vector<8x128xf32>
    %625 = arith.negf %624 : vector<8x128xf32>
    %626 = math.exp %625 : vector<8x128xf32>
    %cst_192 = arith.constant 1.000000e+00 : f32
    %627 = vector.broadcast %cst_192 : f32 to vector<8x128xf32>
    %628 = arith.addf %627, %626 : vector<8x128xf32>
    %629 = arith.divf %627, %628 : vector<8x128xf32>
    %630 = vector.extract_strided_slice %617 {offsets = [0, 256], sizes = [8, 128], strides = [1, 1]} : vector<8x512xf32> to vector<8x128xf32>
    %631 = math.tanh %630 : vector<8x128xf32>
    %632 = vector.extract_strided_slice %617 {offsets = [0, 384], sizes = [8, 128], strides = [1, 1]} : vector<8x512xf32> to vector<8x128xf32>
    %633 = arith.negf %632 : vector<8x128xf32>
    %634 = math.exp %633 : vector<8x128xf32>
    %cst_193 = arith.constant 1.000000e+00 : f32
    %635 = vector.broadcast %cst_193 : f32 to vector<8x128xf32>
    %636 = arith.addf %635, %634 : vector<8x128xf32>
    %637 = arith.divf %635, %636 : vector<8x128xf32>
    %638 = arith.mulf %629, %610 : vector<8x128xf32>
    %639 = arith.mulf %623, %631 : vector<8x128xf32>
    %640 = arith.addf %638, %639 : vector<8x128xf32>
    %641 = math.tanh %640 : vector<8x128xf32>
    %642 = arith.mulf %637, %641 : vector<8x128xf32>
    %c2_i32_194 = arith.constant 2 : i32
    %643 = arith.index_cast %c2_i32_194 : i32 to index
    %c0_195 = arith.constant 0 : index
    %c0_196 = arith.constant 0 : index
    %644 = vector.load %arg14[%643, %c0_195, %c0_196] : memref<8x8x512xf32, #tpu.memory_space<vmem>>, vector<1x8x512xf32>
    %645 = vector.shape_cast %644 : vector<1x8x512xf32> to vector<8x512xf32>
    %cst_197 = arith.constant dense<0.000000e+00> : vector<8x512xf32>
    %646 = tpu.matmul %642, %580, %cst_197 {dimension_numbers = #tpu.dot_dimension_numbers<[1], [0], [0], [1], [0, 0, 1, 1], [], []>} : vector<8x128xf32>, vector<128x512xf32>, vector<8x512xf32> -> vector<8x512xf32>
    %647 = arith.addf %645, %646 : vector<8x512xf32>
    %648 = vector.extract_strided_slice %647 {offsets = [0, 0], sizes = [8, 128], strides = [1, 1]} : vector<8x512xf32> to vector<8x128xf32>
    %649 = arith.negf %648 : vector<8x128xf32>
    %650 = math.exp %649 : vector<8x128xf32>
    %cst_198 = arith.constant 1.000000e+00 : f32
    %651 = vector.broadcast %cst_198 : f32 to vector<8x128xf32>
    %652 = arith.addf %651, %650 : vector<8x128xf32>
    %653 = arith.divf %651, %652 : vector<8x128xf32>
    %654 = vector.extract_strided_slice %647 {offsets = [0, 128], sizes = [8, 128], strides = [1, 1]} : vector<8x512xf32> to vector<8x128xf32>
    %655 = arith.negf %654 : vector<8x128xf32>
    %656 = math.exp %655 : vector<8x128xf32>
    %cst_199 = arith.constant 1.000000e+00 : f32
    %657 = vector.broadcast %cst_199 : f32 to vector<8x128xf32>
    %658 = arith.addf %657, %656 : vector<8x128xf32>
    %659 = arith.divf %657, %658 : vector<8x128xf32>
    %660 = vector.extract_strided_slice %647 {offsets = [0, 256], sizes = [8, 128], strides = [1, 1]} : vector<8x512xf32> to vector<8x128xf32>
    %661 = math.tanh %660 : vector<8x128xf32>
    %662 = vector.extract_strided_slice %647 {offsets = [0, 384], sizes = [8, 128], strides = [1, 1]} : vector<8x512xf32> to vector<8x128xf32>
    %663 = arith.negf %662 : vector<8x128xf32>
    %664 = math.exp %663 : vector<8x128xf32>
    %cst_200 = arith.constant 1.000000e+00 : f32
    %665 = vector.broadcast %cst_200 : f32 to vector<8x128xf32>
    %666 = arith.addf %665, %664 : vector<8x128xf32>
    %667 = arith.divf %665, %666 : vector<8x128xf32>
    %668 = arith.mulf %659, %640 : vector<8x128xf32>
    %669 = arith.mulf %653, %661 : vector<8x128xf32>
    %670 = arith.addf %668, %669 : vector<8x128xf32>
    %671 = math.tanh %670 : vector<8x128xf32>
    %672 = arith.mulf %667, %671 : vector<8x128xf32>
    %c3_i32_201 = arith.constant 3 : i32
    %673 = arith.index_cast %c3_i32_201 : i32 to index
    %c0_202 = arith.constant 0 : index
    %c0_203 = arith.constant 0 : index
    %674 = vector.load %arg14[%673, %c0_202, %c0_203] : memref<8x8x512xf32, #tpu.memory_space<vmem>>, vector<1x8x512xf32>
    %675 = vector.shape_cast %674 : vector<1x8x512xf32> to vector<8x512xf32>
    %cst_204 = arith.constant dense<0.000000e+00> : vector<8x512xf32>
    %676 = tpu.matmul %672, %580, %cst_204 {dimension_numbers = #tpu.dot_dimension_numbers<[1], [0], [0], [1], [0, 0, 1, 1], [], []>} : vector<8x128xf32>, vector<128x512xf32>, vector<8x512xf32> -> vector<8x512xf32>
    %677 = arith.addf %675, %676 : vector<8x512xf32>
    %678 = vector.extract_strided_slice %677 {offsets = [0, 0], sizes = [8, 128], strides = [1, 1]} : vector<8x512xf32> to vector<8x128xf32>
    %679 = arith.negf %678 : vector<8x128xf32>
    %680 = math.exp %679 : vector<8x128xf32>
    %cst_205 = arith.constant 1.000000e+00 : f32
    %681 = vector.broadcast %cst_205 : f32 to vector<8x128xf32>
    %682 = arith.addf %681, %680 : vector<8x128xf32>
    %683 = arith.divf %681, %682 : vector<8x128xf32>
    %684 = vector.extract_strided_slice %677 {offsets = [0, 128], sizes = [8, 128], strides = [1, 1]} : vector<8x512xf32> to vector<8x128xf32>
    %685 = arith.negf %684 : vector<8x128xf32>
    %686 = math.exp %685 : vector<8x128xf32>
    %cst_206 = arith.constant 1.000000e+00 : f32
    %687 = vector.broadcast %cst_206 : f32 to vector<8x128xf32>
    %688 = arith.addf %687, %686 : vector<8x128xf32>
    %689 = arith.divf %687, %688 : vector<8x128xf32>
    %690 = vector.extract_strided_slice %677 {offsets = [0, 256], sizes = [8, 128], strides = [1, 1]} : vector<8x512xf32> to vector<8x128xf32>
    %691 = math.tanh %690 : vector<8x128xf32>
    %692 = vector.extract_strided_slice %677 {offsets = [0, 384], sizes = [8, 128], strides = [1, 1]} : vector<8x512xf32> to vector<8x128xf32>
    %693 = arith.negf %692 : vector<8x128xf32>
    %694 = math.exp %693 : vector<8x128xf32>
    %cst_207 = arith.constant 1.000000e+00 : f32
    %695 = vector.broadcast %cst_207 : f32 to vector<8x128xf32>
    %696 = arith.addf %695, %694 : vector<8x128xf32>
    %697 = arith.divf %695, %696 : vector<8x128xf32>
    %698 = arith.mulf %689, %670 : vector<8x128xf32>
    %699 = arith.mulf %683, %691 : vector<8x128xf32>
    %700 = arith.addf %698, %699 : vector<8x128xf32>
    %701 = math.tanh %700 : vector<8x128xf32>
    %702 = arith.mulf %697, %701 : vector<8x128xf32>
    %c4_i32_208 = arith.constant 4 : i32
    %703 = arith.index_cast %c4_i32_208 : i32 to index
    %c0_209 = arith.constant 0 : index
    %c0_210 = arith.constant 0 : index
    %704 = vector.load %arg14[%703, %c0_209, %c0_210] : memref<8x8x512xf32, #tpu.memory_space<vmem>>, vector<1x8x512xf32>
    %705 = vector.shape_cast %704 : vector<1x8x512xf32> to vector<8x512xf32>
    %cst_211 = arith.constant dense<0.000000e+00> : vector<8x512xf32>
    %706 = tpu.matmul %702, %580, %cst_211 {dimension_numbers = #tpu.dot_dimension_numbers<[1], [0], [0], [1], [0, 0, 1, 1], [], []>} : vector<8x128xf32>, vector<128x512xf32>, vector<8x512xf32> -> vector<8x512xf32>
    %707 = arith.addf %705, %706 : vector<8x512xf32>
    %708 = vector.extract_strided_slice %707 {offsets = [0, 0], sizes = [8, 128], strides = [1, 1]} : vector<8x512xf32> to vector<8x128xf32>
    %709 = arith.negf %708 : vector<8x128xf32>
    %710 = math.exp %709 : vector<8x128xf32>
    %cst_212 = arith.constant 1.000000e+00 : f32
    %711 = vector.broadcast %cst_212 : f32 to vector<8x128xf32>
    %712 = arith.addf %711, %710 : vector<8x128xf32>
    %713 = arith.divf %711, %712 : vector<8x128xf32>
    %714 = vector.extract_strided_slice %707 {offsets = [0, 128], sizes = [8, 128], strides = [1, 1]} : vector<8x512xf32> to vector<8x128xf32>
    %715 = arith.negf %714 : vector<8x128xf32>
    %716 = math.exp %715 : vector<8x128xf32>
    %cst_213 = arith.constant 1.000000e+00 : f32
    %717 = vector.broadcast %cst_213 : f32 to vector<8x128xf32>
    %718 = arith.addf %717, %716 : vector<8x128xf32>
    %719 = arith.divf %717, %718 : vector<8x128xf32>
    %720 = vector.extract_strided_slice %707 {offsets = [0, 256], sizes = [8, 128], strides = [1, 1]} : vector<8x512xf32> to vector<8x128xf32>
    %721 = math.tanh %720 : vector<8x128xf32>
    %722 = vector.extract_strided_slice %707 {offsets = [0, 384], sizes = [8, 128], strides = [1, 1]} : vector<8x512xf32> to vector<8x128xf32>
    %723 = arith.negf %722 : vector<8x128xf32>
    %724 = math.exp %723 : vector<8x128xf32>
    %cst_214 = arith.constant 1.000000e+00 : f32
    %725 = vector.broadcast %cst_214 : f32 to vector<8x128xf32>
    %726 = arith.addf %725, %724 : vector<8x128xf32>
    %727 = arith.divf %725, %726 : vector<8x128xf32>
    %728 = arith.mulf %719, %700 : vector<8x128xf32>
    %729 = arith.mulf %713, %721 : vector<8x128xf32>
    %730 = arith.addf %728, %729 : vector<8x128xf32>
    %731 = math.tanh %730 : vector<8x128xf32>
    %732 = arith.mulf %727, %731 : vector<8x128xf32>
    %c5_i32_215 = arith.constant 5 : i32
    %733 = arith.index_cast %c5_i32_215 : i32 to index
    %c0_216 = arith.constant 0 : index
    %c0_217 = arith.constant 0 : index
    %734 = vector.load %arg14[%733, %c0_216, %c0_217] : memref<8x8x512xf32, #tpu.memory_space<vmem>>, vector<1x8x512xf32>
    %735 = vector.shape_cast %734 : vector<1x8x512xf32> to vector<8x512xf32>
    %cst_218 = arith.constant dense<0.000000e+00> : vector<8x512xf32>
    %736 = tpu.matmul %732, %580, %cst_218 {dimension_numbers = #tpu.dot_dimension_numbers<[1], [0], [0], [1], [0, 0, 1, 1], [], []>} : vector<8x128xf32>, vector<128x512xf32>, vector<8x512xf32> -> vector<8x512xf32>
    %737 = arith.addf %735, %736 : vector<8x512xf32>
    %738 = vector.extract_strided_slice %737 {offsets = [0, 0], sizes = [8, 128], strides = [1, 1]} : vector<8x512xf32> to vector<8x128xf32>
    %739 = arith.negf %738 : vector<8x128xf32>
    %740 = math.exp %739 : vector<8x128xf32>
    %cst_219 = arith.constant 1.000000e+00 : f32
    %741 = vector.broadcast %cst_219 : f32 to vector<8x128xf32>
    %742 = arith.addf %741, %740 : vector<8x128xf32>
    %743 = arith.divf %741, %742 : vector<8x128xf32>
    %744 = vector.extract_strided_slice %737 {offsets = [0, 128], sizes = [8, 128], strides = [1, 1]} : vector<8x512xf32> to vector<8x128xf32>
    %745 = arith.negf %744 : vector<8x128xf32>
    %746 = math.exp %745 : vector<8x128xf32>
    %cst_220 = arith.constant 1.000000e+00 : f32
    %747 = vector.broadcast %cst_220 : f32 to vector<8x128xf32>
    %748 = arith.addf %747, %746 : vector<8x128xf32>
    %749 = arith.divf %747, %748 : vector<8x128xf32>
    %750 = vector.extract_strided_slice %737 {offsets = [0, 256], sizes = [8, 128], strides = [1, 1]} : vector<8x512xf32> to vector<8x128xf32>
    %751 = math.tanh %750 : vector<8x128xf32>
    %752 = vector.extract_strided_slice %737 {offsets = [0, 384], sizes = [8, 128], strides = [1, 1]} : vector<8x512xf32> to vector<8x128xf32>
    %753 = arith.negf %752 : vector<8x128xf32>
    %754 = math.exp %753 : vector<8x128xf32>
    %cst_221 = arith.constant 1.000000e+00 : f32
    %755 = vector.broadcast %cst_221 : f32 to vector<8x128xf32>
    %756 = arith.addf %755, %754 : vector<8x128xf32>
    %757 = arith.divf %755, %756 : vector<8x128xf32>
    %758 = arith.mulf %749, %730 : vector<8x128xf32>
    %759 = arith.mulf %743, %751 : vector<8x128xf32>
    %760 = arith.addf %758, %759 : vector<8x128xf32>
    %761 = math.tanh %760 : vector<8x128xf32>
    %762 = arith.mulf %757, %761 : vector<8x128xf32>
    %c6_i32_222 = arith.constant 6 : i32
    %763 = arith.index_cast %c6_i32_222 : i32 to index
    %c0_223 = arith.constant 0 : index
    %c0_224 = arith.constant 0 : index
    %764 = vector.load %arg14[%763, %c0_223, %c0_224] : memref<8x8x512xf32, #tpu.memory_space<vmem>>, vector<1x8x512xf32>
    %765 = vector.shape_cast %764 : vector<1x8x512xf32> to vector<8x512xf32>
    %cst_225 = arith.constant dense<0.000000e+00> : vector<8x512xf32>
    %766 = tpu.matmul %762, %580, %cst_225 {dimension_numbers = #tpu.dot_dimension_numbers<[1], [0], [0], [1], [0, 0, 1, 1], [], []>} : vector<8x128xf32>, vector<128x512xf32>, vector<8x512xf32> -> vector<8x512xf32>
    %767 = arith.addf %765, %766 : vector<8x512xf32>
    %768 = vector.extract_strided_slice %767 {offsets = [0, 0], sizes = [8, 128], strides = [1, 1]} : vector<8x512xf32> to vector<8x128xf32>
    %769 = arith.negf %768 : vector<8x128xf32>
    %770 = math.exp %769 : vector<8x128xf32>
    %cst_226 = arith.constant 1.000000e+00 : f32
    %771 = vector.broadcast %cst_226 : f32 to vector<8x128xf32>
    %772 = arith.addf %771, %770 : vector<8x128xf32>
    %773 = arith.divf %771, %772 : vector<8x128xf32>
    %774 = vector.extract_strided_slice %767 {offsets = [0, 128], sizes = [8, 128], strides = [1, 1]} : vector<8x512xf32> to vector<8x128xf32>
    %775 = arith.negf %774 : vector<8x128xf32>
    %776 = math.exp %775 : vector<8x128xf32>
    %cst_227 = arith.constant 1.000000e+00 : f32
    %777 = vector.broadcast %cst_227 : f32 to vector<8x128xf32>
    %778 = arith.addf %777, %776 : vector<8x128xf32>
    %779 = arith.divf %777, %778 : vector<8x128xf32>
    %780 = vector.extract_strided_slice %767 {offsets = [0, 256], sizes = [8, 128], strides = [1, 1]} : vector<8x512xf32> to vector<8x128xf32>
    %781 = math.tanh %780 : vector<8x128xf32>
    %782 = vector.extract_strided_slice %767 {offsets = [0, 384], sizes = [8, 128], strides = [1, 1]} : vector<8x512xf32> to vector<8x128xf32>
    %783 = arith.negf %782 : vector<8x128xf32>
    %784 = math.exp %783 : vector<8x128xf32>
    %cst_228 = arith.constant 1.000000e+00 : f32
    %785 = vector.broadcast %cst_228 : f32 to vector<8x128xf32>
    %786 = arith.addf %785, %784 : vector<8x128xf32>
    %787 = arith.divf %785, %786 : vector<8x128xf32>
    %788 = arith.mulf %779, %760 : vector<8x128xf32>
    %789 = arith.mulf %773, %781 : vector<8x128xf32>
    %790 = arith.addf %788, %789 : vector<8x128xf32>
    %791 = math.tanh %790 : vector<8x128xf32>
    %792 = arith.mulf %787, %791 : vector<8x128xf32>
    %c7_i32_229 = arith.constant 7 : i32
    %793 = arith.index_cast %c7_i32_229 : i32 to index
    %c0_230 = arith.constant 0 : index
    %c0_231 = arith.constant 0 : index
    %794 = vector.load %arg14[%793, %c0_230, %c0_231] : memref<8x8x512xf32, #tpu.memory_space<vmem>>, vector<1x8x512xf32>
    %795 = vector.shape_cast %794 : vector<1x8x512xf32> to vector<8x512xf32>
    %cst_232 = arith.constant dense<0.000000e+00> : vector<8x512xf32>
    %796 = tpu.matmul %792, %580, %cst_232 {dimension_numbers = #tpu.dot_dimension_numbers<[1], [0], [0], [1], [0, 0, 1, 1], [], []>} : vector<8x128xf32>, vector<128x512xf32>, vector<8x512xf32> -> vector<8x512xf32>
    %797 = arith.addf %795, %796 : vector<8x512xf32>
    %798 = vector.extract_strided_slice %797 {offsets = [0, 0], sizes = [8, 128], strides = [1, 1]} : vector<8x512xf32> to vector<8x128xf32>
    %799 = arith.negf %798 : vector<8x128xf32>
    %800 = math.exp %799 : vector<8x128xf32>
    %cst_233 = arith.constant 1.000000e+00 : f32
    %801 = vector.broadcast %cst_233 : f32 to vector<8x128xf32>
    %802 = arith.addf %801, %800 : vector<8x128xf32>
    %803 = arith.divf %801, %802 : vector<8x128xf32>
    %804 = vector.extract_strided_slice %797 {offsets = [0, 128], sizes = [8, 128], strides = [1, 1]} : vector<8x512xf32> to vector<8x128xf32>
    %805 = arith.negf %804 : vector<8x128xf32>
    %806 = math.exp %805 : vector<8x128xf32>
    %cst_234 = arith.constant 1.000000e+00 : f32
    %807 = vector.broadcast %cst_234 : f32 to vector<8x128xf32>
    %808 = arith.addf %807, %806 : vector<8x128xf32>
    %809 = arith.divf %807, %808 : vector<8x128xf32>
    %810 = vector.extract_strided_slice %797 {offsets = [0, 256], sizes = [8, 128], strides = [1, 1]} : vector<8x512xf32> to vector<8x128xf32>
    %811 = math.tanh %810 : vector<8x128xf32>
    %812 = vector.extract_strided_slice %797 {offsets = [0, 384], sizes = [8, 128], strides = [1, 1]} : vector<8x512xf32> to vector<8x128xf32>
    %813 = arith.negf %812 : vector<8x128xf32>
    %814 = math.exp %813 : vector<8x128xf32>
    %cst_235 = arith.constant 1.000000e+00 : f32
    %815 = vector.broadcast %cst_235 : f32 to vector<8x128xf32>
    %816 = arith.addf %815, %814 : vector<8x128xf32>
    %817 = arith.divf %815, %816 : vector<8x128xf32>
    %818 = arith.mulf %809, %790 : vector<8x128xf32>
    %819 = arith.mulf %803, %811 : vector<8x128xf32>
    %820 = arith.addf %818, %819 : vector<8x128xf32>
    %821 = math.tanh %820 : vector<8x128xf32>
    %822 = arith.mulf %817, %821 : vector<8x128xf32>
    %c8_i32_236 = arith.constant 8 : i32
    %c0_237 = arith.constant 0 : index
    %c0_238 = arith.constant 0 : index
    %823 = vector.load %arg11[%c0_237, %c0_238] : memref<128x128xf32, #tpu.memory_space<vmem>>, vector<128x128xf32>
    %cst_239 = arith.constant dense<0.000000e+00> : vector<8x128xf32>
    %824 = tpu.matmul %822, %823, %cst_239 {dimension_numbers = #tpu.dot_dimension_numbers<[1], [0], [0], [1], [0, 0, 1, 1], [], []>} : vector<8x128xf32>, vector<128x128xf32>, vector<8x128xf32> -> vector<8x128xf32>
    %c0_240 = arith.constant 0 : index
    %c0_241 = arith.constant 0 : index
    %825 = vector.load %arg12[%c0_240, %c0_241] : memref<1x128xf32, #tpu.memory_space<vmem>>, vector<1x128xf32>
    %826 = vector.broadcast %825 : vector<1x128xf32> to vector<8x128xf32>
    %827 = arith.addf %824, %826 : vector<8x128xf32>
    %828 = arith.mulf %827, %827 : vector<8x128xf32>
    %cst_242 = arith.constant dense<0.000000e+00> : vector<8xf32>
    %829 = vector.multi_reduction <add>, %828, %cst_242 [1] : vector<8x128xf32> to vector<8xf32>
    %830 = vector.shape_cast %829 : vector<8xf32> to vector<8x1xf32>
    %cst_243 = arith.constant 1.000000e-30 : f32
    %831 = vector.broadcast %cst_243 : f32 to vector<8x1xf32>
    %832 = arith.maximumf %830, %831 : vector<8x1xf32>
    %833 = math.rsqrt %832 : vector<8x1xf32>
    %834 = vector.broadcast %833 : vector<8x1xf32> to vector<8x128xf32>
    %835 = arith.mulf %827, %834 : vector<8x128xf32>
    %c0_244 = arith.constant 0 : index
    %c0_245 = arith.constant 0 : index
    %836 = vector.load %arg13[%c0_244, %c0_245] : memref<8x128xf32, #tpu.memory_space<vmem>>, vector<8x128xf32>
    tpu.vector_store %arg13[%c0_244, %c0_245], %835 {strides = array<i32>} : memref<8x128xf32, #tpu.memory_space<vmem>>, vector<8x128xf32>,
    return
  }
  func.func @transform_0(%arg0: i32) -> (i32, i32, i32) {
    %c0_i32 = arith.constant 0 : i32
    %c0_i32_0 = arith.constant 0 : i32
    %c0_i32_1 = arith.constant 0 : i32
    return %c0_i32, %arg0, %c0_i32_0 : i32, i32, i32
  }
  func.func @transform_1(%arg0: i32) -> (i32, i32) {
    %c0_i32 = arith.constant 0 : i32
    %c0_i32_0 = arith.constant 0 : i32
    %c0_i32_1 = arith.constant 0 : i32
    return %c0_i32, %c0_i32_0 : i32, i32
  }
  func.func @transform_2(%arg0: i32) -> (i32, i32) {
    %c0_i32 = arith.constant 0 : i32
    %c0_i32_0 = arith.constant 0 : i32
    %c0_i32_1 = arith.constant 0 : i32
    return %c0_i32, %c0_i32_0 : i32, i32
  }
  func.func @transform_3(%arg0: i32) -> (i32, i32) {
    %c0_i32 = arith.constant 0 : i32
    %c0_i32_0 = arith.constant 0 : i32
    %c0_i32_1 = arith.constant 0 : i32
    return %c0_i32, %c0_i32_0 : i32, i32
  }
  func.func @transform_4(%arg0: i32) -> (i32, i32) {
    %c0_i32 = arith.constant 0 : i32
    %c0_i32_0 = arith.constant 0 : i32
    %c0_i32_1 = arith.constant 0 : i32
    return %c0_i32, %c0_i32_0 : i32, i32
  }
  func.func @transform_5(%arg0: i32) -> (i32, i32) {
    %c0_i32 = arith.constant 0 : i32
    %c0_i32_0 = arith.constant 0 : i32
    %c0_i32_1 = arith.constant 0 : i32
    return %c0_i32, %c0_i32_0 : i32, i32
  }
  func.func @transform_6(%arg0: i32) -> (i32, i32) {
    %c0_i32 = arith.constant 0 : i32
    %c0_i32_0 = arith.constant 0 : i32
    %c0_i32_1 = arith.constant 0 : i32
    return %c0_i32, %c0_i32_0 : i32, i32
  }
  func.func @transform_7(%arg0: i32) -> (i32, i32) {
    %c0_i32 = arith.constant 0 : i32
    %c0_i32_0 = arith.constant 0 : i32
    %c0_i32_1 = arith.constant 0 : i32
    return %c0_i32, %c0_i32_0 : i32, i32
  }
  func.func @transform_8(%arg0: i32) -> (i32, i32) {
    %c0_i32 = arith.constant 0 : i32
    %c0_i32_0 = arith.constant 0 : i32
    %c0_i32_1 = arith.constant 0 : i32
    return %c0_i32, %c0_i32_0 : i32, i32
  }
  func.func @transform_9(%arg0: i32) -> (i32, i32) {
    %c0_i32 = arith.constant 0 : i32
    %c0_i32_0 = arith.constant 0 : i32
    %c0_i32_1 = arith.constant 0 : i32
    return %c0_i32, %c0_i32_0 : i32, i32
  }
  func.func @transform_10(%arg0: i32) -> (i32, i32) {
    %c0_i32 = arith.constant 0 : i32
    %c0_i32_0 = arith.constant 0 : i32
    %c0_i32_1 = arith.constant 0 : i32
    return %c0_i32, %c0_i32_0 : i32, i32
  }
  func.func @transform_11(%arg0: i32) -> (i32, i32) {
    %c0_i32 = arith.constant 0 : i32
    %c0_i32_0 = arith.constant 0 : i32
    %c0_i32_1 = arith.constant 0 : i32
    return %c0_i32, %c0_i32_0 : i32, i32
  }
  func.func @transform_12(%arg0: i32) -> (i32, i32) {
    %c0_i32 = arith.constant 0 : i32
    %c0_i32_0 = arith.constant 0 : i32
    return %arg0, %c0_i32 : i32, i32
  }
}

</mosaic_0001>

<bundles_post_ra>
// kernel: tpu_custom_call.1
= control target key start
LH: loop header
LB: loop body
LE: loop exit
PB: predicated region body
PF: predicated region fallthrough
CT: control target
= control target key end

     0   :  { %17 = vsyncpa [#allocation5], 0  ;;  %s10111_s0 = inlined_call_operand.hbm [shape: f32[8,8,128], index: 0, kind: input, shape index: {}]   ;;  %s10112_s1 = inlined_call_operand.hbm [shape: f32[128,512], index: 1, kind: input, shape index: {}]   ;;  %s10113_s2 = inlined_call_operand.hbm [shape: f32[128,512], index: 2, kind: input, shape index: {}]   ;;  %s10114_s3 = inlined_call_operand.vmem [shape: f32[1,512], index: 3, kind: input, shape index: {}]   ;;  %s10115_s4 = inlined_call_operand.hbm [shape: f32[128,512], index: 4, kind: input, shape index: {}]   ;;  %s10116_s5 = inlined_call_operand.hbm [shape: f32[128,512], index: 5, kind: input, shape index: {}]   ;;  %s10117_s6 = inlined_call_operand.vmem [shape: f32[1,512], index: 6, kind: input, shape index: {}]   ;;  %s10118_s7 = inlined_call_operand.hbm [shape: f32[128,512], index: 7, kind: input, shape index: {}]   ;;  %s10119_s8 = inlined_call_operand.hbm [shape: f32[128,512], index: 8, kind: input, shape index: {}]   ;;  %s10120_s9 = inlined_call_operand.vmem [shape: f32[1,512], index: 9, kind: input, shape index: {}]   ;;  %s10121_s10 = inlined_call_operand.hbm [shape: f32[128,128], index: 10, kind: input, shape index: {}]   ;;  %s10122_s11 = inlined_call_operand.vmem [shape: f32[1,128], index: 11, kind: input, shape index: {}]   ;;  %s10123_s12 = inlined_call_operand.hbm [shape: f32[8,128], index: 12, kind: output, shape index: {}]  }
   0x1   :  { %18 = vsyncpa [#allocation8], 0 }
   0x2   :  { %19 = vsyncpa [#allocation11], 0 }
   0x3   :  { %20 = vsyncpa [#allocation14], 0 }
   0x4   :  { %21 = vsyncpa [#allocation17], 0 }
   0x5   :  { %22 = vsyncpa [#allocation6], 0  ;;  %s8501_s21 = smov [#allocation7]   ;;  %s8291_s25 = scalar_lea.hbm %s10112_s1, 8192 }
   0x6   :  { %s40_s22 = sshll.u32 %s8501_s21, 4  ;;  %p8292_p0 = scmp.ne.s32.totalorder %s10112_s1, %s8291_s25  ;;  %s41_s22 = int_to_ptr.vmem [resolvable:$true] %s40_s22 }
   0x7   :  { %p8295_p1 = scmp.lt.u32.totalorder %s8291_s25, %s10112_s1 }
   0x9   :  { %p8297_p2 = pnand %p8295_p1, %p8292_p0 }
   0xb   :  { %8300 = shalt.err (!%p8297_p2)
}
   0xc   :  { %s8301_s30 = scalar_lea.vmem %s41_s22, 8192  ;;  %p8306_p4 = scmp.lt.s32.totalorder %s41_s22, %s41_s22 }
   0xd   :  { %p8302_p3 = scmp.ne.s32.totalorder %s41_s22, %s8301_s30  ;;  %p8307_p5 = scmp.lt.s32.totalorder %s8301_s30, %s8301_s30 }
   0xf   :  { %p8308_p6 = por %p8307_p5, %p8306_p4 }
  0x11   :  { %p8309_p7 = pnand %p8308_p6, %p8302_p3 }
  0x13   :  { %8312 = shalt.err (!%p8309_p7)
}
  0x14   :  { %s8502_s13 = smov 512   ;;  %s8503_s14 = smov 32  }
  0x15   :  { %46 = dma.hbm_to_vmem [thread:$0]  %s10112_s1, 8192, %s41_s22, [#allocation8], %s8502_s13, %s8502_s13, %s8503_s14  }
  0x16   :  { %s8504_s17 = smov [#allocation10]   ;;  %s8505_s19 = smov [#allocation13]  }
  0x17   :  { %s66_s18 = sshll.u32 %s8504_s17, 4  ;;  %s92_s20 = sshll.u32 %s8505_s19, 4  ;;  %s67_s18 = int_to_ptr.vmem [resolvable:$true] %s66_s18  ;;  %s93_s20 = int_to_ptr.vmem [resolvable:$true] %s92_s20 }
  0x18   :  { %s8313_s24 = scalar_lea.hbm %s10115_s4, 8192 }
  0x19   :  { %p8314_p8 = scmp.ne.s32.totalorder %s10115_s4, %s8313_s24  ;;  %p8317_p9 = scmp.lt.u32.totalorder %s8313_s24, %s10115_s4 }
  0x1b   :  { %p8319_p10 = pnand %p8317_p9, %p8314_p8 }
  0x1d   :  { %8322 = shalt.err (!%p8319_p10)
}
  0x1e   :  { %s8323_s1 = scalar_lea.vmem %s67_s18, 8192  ;;  %p8328_p12 = scmp.lt.s32.totalorder %s67_s18, %s67_s18 }
  0x1f   :  { %p8324_p11 = scmp.ne.s32.totalorder %s67_s18, %s8323_s1  ;;  %p8329_p13 = scmp.lt.s32.totalorder %s8323_s1, %s8323_s1 }
  0x21   :  { %p8330_p0 = por %p8329_p13, %p8328_p12 }
  0x23   :  { %p8331_p1 = pnand %p8330_p0, %p8324_p11 }
  0x25   :  { %8334 = shalt.err (!%p8331_p1)
}
  0x26   :  { %72 = dma.hbm_to_vmem [thread:$0]  %s10115_s4, 8192, %s67_s18, [#allocation11], %s8502_s13, %s8502_s13, %s8503_s14  }
  0x27   :  { %s8335_s16 = scalar_lea.hbm %s10118_s7, 8192 }
  0x28   :  { %p8336_p2 = scmp.ne.s32.totalorder %s10118_s7, %s8335_s16  ;;  %p8339_p3 = scmp.lt.u32.totalorder %s8335_s16, %s10118_s7 }
  0x2a   :  { %p8341_p4 = pnand %p8339_p3, %p8336_p2 }
  0x2c   :  { %8344 = shalt.err (!%p8341_p4)
}
  0x2d   :  { %s8345_s24 = scalar_lea.vmem %s93_s20, 8192  ;;  %p8350_p6 = scmp.lt.s32.totalorder %s93_s20, %s93_s20 }
  0x2e   :  { %p8346_p5 = scmp.ne.s32.totalorder %s93_s20, %s8345_s24  ;;  %p8351_p7 = scmp.lt.s32.totalorder %s8345_s24, %s8345_s24 }
  0x30   :  { %p8352_p8 = por %p8351_p7, %p8350_p6 }
  0x32   :  { %p8353_p9 = pnand %p8352_p8, %p8346_p5 }
  0x34   :  { %8356 = shalt.err (!%p8353_p9)
}
  0x35   :  { %98 = dma.hbm_to_vmem [thread:$0]  %s10118_s7, 8192, %s93_s20, [#allocation14], %s8502_s13, %s8502_s13, %s8503_s14  }
  0x36   :  { %s8506_s25 = smov [#allocation4]   ;;  %s8357_s1 = scalar_lea.hbm %s10111_s0, 1024 }
  0x37   :  { %s28_s26 = sshll.u32 %s8506_s25, 4  ;;  %p8358_p10 = scmp.ne.s32.totalorder %s10111_s0, %s8357_s1  ;;  %s29_s26 = int_to_ptr.vmem [resolvable:$true] %s28_s26 }
  0x38   :  { %p8361_p11 = scmp.lt.u32.totalorder %s8357_s1, %s10111_s0 }
  0x3a   :  { %p8363_p12 = pnand %p8361_p11, %p8358_p10 }
  0x3c   :  { %8366 = shalt.err (!%p8363_p12)
}
  0x3d   :  { %s8367_s16 = scalar_lea.vmem %s29_s26, 1024  ;;  %p8372_p0 = scmp.lt.s32.totalorder %s29_s26, %s29_s26 }
  0x3e   :  { %p8368_p13 = scmp.ne.s32.totalorder %s29_s26, %s8367_s16  ;;  %p8373_p1 = scmp.lt.s32.totalorder %s8367_s16, %s8367_s16 }
  0x40   :  { %p8374_p2 = por %p8373_p1, %p8372_p0 }
  0x42   :  { %p8375_p3 = pnand %p8374_p2, %p8368_p13 }
  0x44   :  { %8378 = shalt.err (!%p8375_p3)
}
  0x45   :  { %s8507_s7 = smov 128   ;;  %s8508_s20 = smov 8  }
  0x46   :  { %34 = dma.hbm_to_vmem [thread:$0]  %s10111_s0, 1024, %s29_s26, [#allocation5], %s8507_s7, %s8507_s7, %s8508_s20  }
  0x47   :  { %s8509_s21 = smov [#allocation9]   ;;  %s8510_s24 = smov [#allocation12]  }
  0x48   :  { %s52_s23 = sshll.u32 %s8509_s21, 4  ;;  %s78_s4 = sshll.u32 %s8510_s24, 4  ;;  %s53_s23 = int_to_ptr.vmem [resolvable:$true] %s52_s23  ;;  %s8642_s4 = int_to_ptr.vmem [resolvable:$true] %s78_s4 }
  0x49   :  { %s8379_s27 = scalar_lea.hbm %s10113_s2, 8192 }
  0x4a   :  { %p8380_p4 = scmp.ne.s32.totalorder %s10113_s2, %s8379_s27  ;;  %p8383_p5 = scmp.lt.u32.totalorder %s8379_s27, %s10113_s2 }
  0x4c   :  { %p8385_p6 = pnand %p8383_p5, %p8380_p4 }
  0x4e   :  { %8388 = shalt.err (!%p8385_p6)
}
  0x4f   :  { %s8389_s0 = scalar_lea.vmem %s53_s23, 8192  ;;  %p8394_p8 = scmp.lt.s32.totalorder %s53_s23, %s53_s23 }
  0x50   :  { %p8390_p7 = scmp.ne.s32.totalorder %s53_s23, %s8389_s0  ;;  %p8395_p9 = scmp.lt.s32.totalorder %s8389_s0, %s8389_s0 }
  0x52   :  { %p8396_p10 = por %p8395_p9, %p8394_p8 }
  0x54   :  { %p8397_p11 = pnand %p8396_p10, %p8390_p7 }
  0x56   :  { %8400 = shalt.err (!%p8397_p11)
}
  0x57   :  { %58 = dma.hbm_to_vmem [thread:$0]  %s10113_s2, 8192, %s53_s23, [#allocation8], %s8502_s13, %s8502_s13, %s8503_s14  }
  0x58   :  { %s8401_s17 = scalar_lea.hbm %s10116_s5, 8192 }
  0x59   :  { %p8402_p12 = scmp.ne.s32.totalorder %s10116_s5, %s8401_s17  ;;  %p8405_p13 = scmp.lt.u32.totalorder %s8401_s17, %s10116_s5 }
  0x5b   :  { %p8407_p0 = pnand %p8405_p13, %p8402_p12 }
  0x5d   :  { %8410 = shalt.err (!%p8407_p0)
}
  0x5e   :  { %s8411_s25 = scalar_lea.vmem %s8642_s4, 8192  ;;  %p8416_p2 = scmp.lt.s32.totalorder %s8642_s4, %s8642_s4 }
  0x5f   :  { %p8412_p1 = scmp.ne.s32.totalorder %s8642_s4, %s8411_s25  ;;  %p8417_p3 = scmp.lt.s32.totalorder %s8411_s25, %s8411_s25 }
  0x61   :  { %p8418_p4 = por %p8417_p3, %p8416_p2 }
  0x63   :  { %p8419_p5 = pnand %p8418_p4, %p8412_p1 }
  0x65   :  { %8422 = shalt.err (!%p8419_p5)
}
  0x66   :  { %84 = dma.hbm_to_vmem [thread:$0]  %s10116_s5, 8192, %s8642_s4, [#allocation11], %s8502_s13, %s8502_s13, %s8503_s14  }
  0x67   :  { %s8511_s27 = smov [#allocation15]   ;;  %s8512_s1 = smov [#allocation16]  }
  0x68   :  { %s104_s28 = sshll.u32 %s8511_s27, 4  ;;  %s118_s22 = sshll.u32 %s8512_s1, 4  ;;  %s105_s28 = int_to_ptr.vmem [resolvable:$true] %s104_s28  ;;  %s8679_s22 = int_to_ptr.vmem [resolvable:$true] %s118_s22 }
  0x69   :  { %s8423_s26 = scalar_lea.hbm %s10119_s8, 8192 }
  0x6a   :  { %p8424_p6 = scmp.ne.s32.totalorder %s10119_s8, %s8423_s26  ;;  %p8427_p7 = scmp.lt.u32.totalorder %s8423_s26, %s10119_s8 }
  0x6c   :  { %p8429_p8 = pnand %p8427_p7, %p8424_p6 }
  0x6e   :  { %8432 = shalt.err (!%p8429_p8)
}
  0x6f   :  { %s8433_s5 = scalar_lea.vmem %s105_s28, 8192  ;;  %p8438_p10 = scmp.lt.s32.totalorder %s105_s28, %s105_s28 }
  0x70   :  { %p8434_p9 = scmp.ne.s32.totalorder %s105_s28, %s8433_s5  ;;  %p8439_p11 = scmp.lt.s32.totalorder %s8433_s5, %s8433_s5 }
  0x72   :  { %p8440_p12 = por %p8439_p11, %p8438_p10 }
  0x74   :  { %p8441_p13 = pnand %p8440_p12, %p8434_p9 }
  0x76   :  { %8444 = shalt.err (!%p8441_p13)
}
  0x77   :  { %110 = dma.hbm_to_vmem [thread:$0]  %s10119_s8, 8192, %s105_s28, [#allocation14], %s8502_s13, %s8502_s13, %s8503_s14  }
  0x78   :  { %s8445_s18 = scalar_lea.hbm %s10121_s10, 2048 }
  0x79   :  { %p8446_p0 = scmp.ne.s32.totalorder %s10121_s10, %s8445_s18  ;;  %p8449_p1 = scmp.lt.u32.totalorder %s8445_s18, %s10121_s10 }
  0x7b   :  { %p8451_p2 = pnand %p8449_p1, %p8446_p0 }
  0x7d   :  { %8454 = shalt.err (!%p8451_p2)
}
  0x7e   :  { %s8455_s1 = scalar_lea.vmem %s8679_s22, 2048  ;;  %p8460_p4 = scmp.lt.s32.totalorder %s8679_s22, %s8679_s22 }
  0x7f   :  { %p8456_p3 = scmp.ne.s32.totalorder %s8679_s22, %s8455_s1  ;;  %p8461_p5 = scmp.lt.s32.totalorder %s8455_s1, %s8455_s1 }
  0x81   :  { %p8462_p6 = por %p8461_p5, %p8460_p4 }
  0x83   :  { %p8463_p7 = pnand %p8462_p6, %p8456_p3 }
  0x85   :  { %8466 = shalt.err (!%p8463_p7)
}
  0x86   :  { %124 = dma.hbm_to_vmem [thread:$0]  %s10121_s10, 2048, %s8679_s22, [#allocation17], %s8507_s7, %s8507_s7, %s8508_s20  }
  0x87   :  { %8489 = dma.done.wait [#allocation5], 1024  }
  0x88   :  { %8490 = vsyncadd [#allocation5], 4294966272 }
  0x89   :  { %8491 = dma.done.wait [#allocation8], 16384  }
  0x8a   :  { %8492 = vsyncadd [#allocation8], 4294950912 }
  0x8b   :  { %8493 = dma.done.wait [#allocation11], 16384  }
  0x8c   :  { %8494 = vsyncadd [#allocation11], 4294950912 }
  0x8d   :  { %8495 = dma.done.wait [#allocation14], 16384  }
  0x8e   :  { %8496 = vsyncadd [#allocation14], 4294950912 }
  0x8f   :  { %8497 = dma.done.wait [#allocation17], 2048  }
  0x90   :  { %8498 = vsyncadd [#allocation17], 4294965248  ;;  %v8513_v0 = vmov 0.0   ;;  %v160_v1 = vld [vmem:[#allocation7 + $0x8] sm:$0xff]  ;;  %v162_v3 = vld [vmem:[#allocation7 + $0x18] sm:$0xff]  ;;  %vm8515_vm0 = vmmov 0  }
  0x91   :  { %287 = vmatprep.mubr.f32.mxu0 %v8513_v0  ;;  %400 = vmatprep.mubr.f32.mxu1 %v8513_v0  ;;  %v164_v2 = vld [vmem:[#allocation7 + $0x28] sm:$0xff]  ;;  %v166_v5 = vld [vmem:[#allocation7 + $0x38] sm:$0xff]  ;;  %v159_v6 = vld [vmem:[#allocation7] sm:$0xff]  ;;  %s8516_s22 = smov [#allocation18]  }
  0x92   :  { %v5945_v4 = vpack.c.bf16 %v164_v2, %v160_v1  ;;  %v163_v7 = vld [vmem:[#allocation7 + $0x20] sm:$0xff]  ;;  %v5977_v8 = vpack.c.bf16 %v166_v5, %v162_v3  ;;  %v161_v10 = vld [vmem:[#allocation7 + $0x10] sm:$0xff]  ;;  %v168_v12 = vld [vmem:[#allocation7 + $0x48] sm:$0xff]  ;;  %s5807_s29 = sshll.u32 %s8516_s22, 4  ;;  %s5808_s29 = int_to_ptr.vmem [resolvable:$true] %s5807_s29 }
  0x93   :  { %v5947_v9 = vpack.c.bf16 %v163_v7, %v159_v6  ;;  %v165_v11 = vld [vmem:[#allocation7 + $0x30] sm:$0xff]  ;;  %v172_v14 = vld [vmem:[#allocation7 + $0x68] sm:$0xff]  ;;  %v170_v15 = vld [vmem:[#allocation7 + $0x58] sm:$0xff]  ;;  %s8467_s0 = scalar_lea.vmem %s5808_s29, 128  ;;  %p8472_p9 = scmp.lt.s32.totalorder %s5808_s29, %s5808_s29 }
  0x94   :  { %5946 = vmatprep.subr.bf16.mxu0 %v5945_v4  ;;  %v5979_v13 = vpack.c.bf16 %v165_v11, %v161_v10  ;;  %v174_v16 = vld [vmem:[#allocation7 + $0x78] sm:$0xff]  ;;  %5978 = vmatprep.subr.bf16.mxu1 %v5977_v8  ;;  %v5949_v17 = vpack.c.bf16 %v172_v14, %v168_v12  ;;  %v167_v19 = vld [vmem:[#allocation7 + $0x40] sm:$0xff]  ;;  %v169_v21 = vld [vmem:[#allocation7 + $0x50] sm:$0xff]  ;;  %p8468_p8 = scmp.ne.s32.totalorder %s5808_s29, %s8467_s0  ;;  %p8473_p10 = scmp.lt.s32.totalorder %s8467_s0, %s8467_s0 }
  0x95   :  { %5948 = vmatpush1.bf16.msra.mxu0 %v5947_v9  ;;  %v5981_v18 = vpack.c.bf16 %v174_v16, %v170_v15  ;;  %v171_v20 = vld [vmem:[#allocation7 + $0x60] sm:$0xff]  ;;  %v173_v23 = vld [vmem:[#allocation7 + $0x70] sm:$0xff]  ;;  %v176_v24 = vld [vmem:[#allocation7 + $0x88] sm:$0xff] }
  0x96   :  { %5980 = vmatpush1.bf16.msra.mxu1 %v5979_v13  ;;  %v5951_v22 = vpack.c.bf16 %v171_v20, %v167_v19  ;;  %v180_v25 = vld [vmem:[#allocation7 + $0xa8] sm:$0xff]  ;;  %5950 = vmatprep.subr.bf16.mxu0 %v5949_v17  ;;  %v5983_v26 = vpack.c.bf16 %v173_v23, %v169_v21  ;;  %v178_v28 = vld [vmem:[#allocation7 + $0x98] sm:$0xff]  ;;  %v175_v30 = vld [vmem:[#allocation7 + $0x80] sm:$0xff]  ;;  %p8474_p11 = por %p8473_p10, %p8472_p9 }
  0x97   :  { %5982 = vmatprep.subr.bf16.mxu1 %v5981_v18  ;;  %v5953_v27 = vpack.c.bf16 %v180_v25, %v176_v24  ;;  %v182_v29 = vld [vmem:[#allocation7 + $0xb8] sm:$0xff]  ;;  %v179_v32 = vld [vmem:[#allocation7 + $0xa0] sm:$0xff]  ;;  %v177_v33 = vld [vmem:[#allocation7 + $0x90] sm:$0xff] }
  0x98   :  { %v5985_v31 = vpack.c.bf16 %v182_v29, %v178_v28  ;;  %v181_v34 = vld [vmem:[#allocation7 + $0xb0] sm:$0xff]  ;;  %v5955_v35 = vpack.c.bf16 %v179_v32, %v175_v30  ;;  %v184_v36 = vld [vmem:[#allocation7 + $0xc8] sm:$0xff]  ;;  %v186_v38 = vld [vmem:[#allocation7 + $0xd8] sm:$0xff]  ;;  %p8475_p12 = pnand %p8474_p11, %p8468_p8 }
  0x99   :  { %5952 = vmatpush1.bf16.msra.mxu0 %v5951_v22  ;;  %v188_v37 = vld [vmem:[#allocation7 + $0xe8] sm:$0xff]  ;;  %v5987_v39 = vpack.c.bf16 %v181_v34, %v177_v33  ;;  %v190_v41 = vld [vmem:[#allocation7 + $0xf8] sm:$0xff]  ;;  %v183_v42 = vld [vmem:[#allocation7 + $0xc0] sm:$0xff] }
  0x9a   :  { %5984 = vmatpush1.bf16.msra.mxu1 %v5983_v26  ;;  %5954 = vmatprep.subr.bf16.mxu0 %v5953_v27  ;;  %v5957_v40 = vpack.c.bf16 %v188_v37, %v184_v36  ;;  %v187_v43 = vld [vmem:[#allocation7 + $0xe0] sm:$0xff]  ;;  %v5989_v44 = vpack.c.bf16 %v190_v41, %v186_v38  ;;  %v185_v45 = vld [vmem:[#allocation7 + $0xd0] sm:$0xff]  ;;  %v192_v47 = vld [vmem:[#allocation7 + $0x108] sm:$0xff] }
  0x9b   :  { %5986 = vmatprep.subr.bf16.mxu1 %v5985_v31  ;;  %v189_v46 = vld [vmem:[#allocation7 + $0xf0] sm:$0xff]  ;;  %v196_v48 = vld [vmem:[#allocation7 + $0x128] sm:$0xff]  ;;  %v194_v49 = vld [vmem:[#allocation7 + $0x118] sm:$0xff]  ;;  %v5959_v51 = vpack.c.bf16 %v187_v43, %v183_v42 }
  0x9c   :  { %v198_v50 = vld [vmem:[#allocation7 + $0x138] sm:$0xff]  ;;  %v5991_v52 = vpack.c.bf16 %v189_v46, %v185_v45  ;;  %v5961_v53 = vpack.c.bf16 %v196_v48, %v192_v47  ;;  %v191_v54 = vld [vmem:[#allocation7 + $0x100] sm:$0xff]  ;;  %v193_v56 = vld [vmem:[#allocation7 + $0x110] sm:$0xff] }
  0x9d   :  { %5956 = vmatpush1.bf16.msra.mxu0 %v5955_v35  ;;  %v195_v55 = vld [vmem:[#allocation7 + $0x120] sm:$0xff]  ;;  %v5993_v57 = vpack.c.bf16 %v198_v50, %v194_v49  ;;  %v197_v58 = vld [vmem:[#allocation7 + $0x130] sm:$0xff]  ;;  %v200_v59 = vld [vmem:[#allocation7 + $0x148] sm:$0xff] }
  0x9e   :  { %5988 = vmatpush1.bf16.msra.mxu1 %v5987_v39  ;;  %5958 = vmatprep.subr.bf16.mxu0 %v5957_v40  ;;  %v204_v60 = vld [vmem:[#allocation7 + $0x168] sm:$0xff]  ;;  %v202_v61 = vld [vmem:[#allocation7 + $0x158] sm:$0xff]  ;;  %v5963_v63 = vpack.c.bf16 %v195_v55, %v191_v54  ;;  %v5995_v1 = vpack.c.bf16 %v197_v58, %v193_v56  ;;  %v199_v3 = vld [vmem:[#allocation7 + $0x140] sm:$0xff] }
  0x9f   :  { %5990 = vmatprep.subr.bf16.mxu1 %v5989_v44  ;;  %v206_v62 = vld [vmem:[#allocation7 + $0x178] sm:$0xff]  ;;  %v5965_v2 = vpack.c.bf16 %v204_v60, %v200_v59  ;;  %v203_v4 = vld [vmem:[#allocation7 + $0x160] sm:$0xff]  ;;  %v201_v5 = vld [vmem:[#allocation7 + $0x150] sm:$0xff] }
  0xa0   :  { %v5997_v6 = vpack.c.bf16 %v206_v62, %v202_v61  ;;  %v205_v7 = vld [vmem:[#allocation7 + $0x170] sm:$0xff]  ;;  %v208_v8 = vld [vmem:[#allocation7 + $0x188] sm:$0xff]  ;;  %v210_v10 = vld [vmem:[#allocation7 + $0x198] sm:$0xff]  ;;  %v5967_v12 = vpack.c.bf16 %v203_v4, %v199_v3 }
  0xa1   :  { %5960 = vmatpush1.bf16.msra.mxu0 %v5959_v51  ;;  %v212_v9 = vld [vmem:[#allocation7 + $0x1a8] sm:$0xff]  ;;  %v214_v11 = vld [vmem:[#allocation7 + $0x1b8] sm:$0xff]  ;;  %v5999_v13 = vpack.c.bf16 %v205_v7, %v201_v5  ;;  %v207_v15 = vld [vmem:[#allocation7 + $0x180] sm:$0xff] }
  0xa2   :  { %5992 = vmatpush1.bf16.msra.mxu1 %v5991_v52  ;;  %5962 = vmatprep.subr.bf16.mxu0 %v5961_v53  ;;  %v5969_v14 = vpack.c.bf16 %v212_v9, %v208_v8  ;;  %v211_v16 = vld [vmem:[#allocation7 + $0x1a0] sm:$0xff]  ;;  %v209_v17 = vld [vmem:[#allocation7 + $0x190] sm:$0xff]  ;;  %v6001_v18 = vpack.c.bf16 %v214_v11, %v210_v10  ;;  %v216_v20 = vld [vmem:[#allocation7 + $0x1c8] sm:$0xff] }
  0xa3   :  { %5994 = vmatprep.subr.bf16.mxu1 %v5993_v57  ;;  %v213_v19 = vld [vmem:[#allocation7 + $0x1b0] sm:$0xff]  ;;  %v220_v21 = vld [vmem:[#allocation7 + $0x1e8] sm:$0xff]  ;;  %v218_v22 = vld [vmem:[#allocation7 + $0x1d8] sm:$0xff]  ;;  %v5971_v24 = vpack.c.bf16 %v211_v16, %v207_v15 }
  0xa4   :  { %v222_v23 = vld [vmem:[#allocation7 + $0x1f8] sm:$0xff]  ;;  %v6003_v25 = vpack.c.bf16 %v213_v19, %v209_v17  ;;  %v5973_v26 = vpack.c.bf16 %v220_v21, %v216_v20  ;;  %v215_v27 = vld [vmem:[#allocation7 + $0x1c0] sm:$0xff]  ;;  %v217_v29 = vld [vmem:[#allocation7 + $0x1d0] sm:$0xff] }
  0xa5   :  { %5964 = vmatpush1.bf16.msra.mxu0 %v5963_v63  ;;  %v219_v28 = vld [vmem:[#allocation7 + $0x1e0] sm:$0xff]  ;;  %v6005_v30 = vpack.c.bf16 %v222_v23, %v218_v22  ;;  %v221_v31 = vld [vmem:[#allocation7 + $0x1f0] sm:$0xff]  ;;  %v536_v32 = vld [vmem:[#allocation9 + $0x8] sm:$0xff] }
  0xa6   :  { %5996 = vmatpush1.bf16.msra.mxu1 %v5995_v1  ;;  %5966 = vmatprep.subr.bf16.mxu0 %v5965_v2  ;;  %v540_v33 = vld [vmem:[#allocation9 + $0x28] sm:$0xff]  ;;  %v538_v34 = vld [vmem:[#allocation9 + $0x18] sm:$0xff]  ;;  %v5975_v36 = vpack.c.bf16 %v219_v28, %v215_v27  ;;  %v6007_v37 = vpack.c.bf16 %v221_v31, %v217_v29  ;;  %v535_v39 = vld [vmem:[#allocation9] sm:$0xff] }
  0xa7   :  { %5998 = vmatprep.subr.bf16.mxu1 %v5997_v6  ;;  %v542_v35 = vld [vmem:[#allocation9 + $0x38] sm:$0xff]  ;;  %v8718_v38 = vpack.c.bf16 %v540_v33, %v536_v32  ;;  %v539_v40 = vld [vmem:[#allocation9 + $0x20] sm:$0xff]  ;;  %v537_v42 = vld [vmem:[#allocation9 + $0x10] sm:$0xff] }
  0xa8   :  { %v8720_v41 = vpack.c.bf16 %v542_v35, %v538_v34  ;;  %v541_v43 = vld [vmem:[#allocation9 + $0x30] sm:$0xff]  ;;  %v544_v44 = vld [vmem:[#allocation9 + $0x48] sm:$0xff]  ;;  %v151_v46 = vld [vmem:[#allocation4] sm:$0xff]  ;;  %v8722_v47 = vpack.c.bf16 %v539_v40, %v535_v39 }
  0xa9   :  { %5968 = vmatpush1.bf16.msra.mxu0 %v5967_v12  ;;  %v548_v45 = vld [vmem:[#allocation9 + $0x68] sm:$0xff]  ;;  %v546_v48 = vld [vmem:[#allocation9 + $0x58] sm:$0xff]  ;;  %v8725_v50 = vpack.c.bf16 %v541_v43, %v537_v42  ;;  %v543_v51 = vld [vmem:[#allocation9 + $0x40] sm:$0xff] }
  0xaa   :  { %6000 = vmatpush1.bf16.msra.mxu1 %v5999_v13  ;;  %5970 = vmatprep.subr.bf16.mxu0 %v5969_v14  ;;  %v550_v49 = vld [vmem:[#allocation9 + $0x78] sm:$0xff]  ;;  %v547_v52 = vld [vmem:[#allocation9 + $0x60] sm:$0xff]  ;;  %v8728_v53 = vpack.c.bf16 %v548_v45, %v544_v44  ;;  %v545_v54 = vld [vmem:[#allocation9 + $0x50] sm:$0xff] }
  0xab   :  { %6002 = vmatprep.subr.bf16.mxu1 %v6001_v18  ;;  %v549_v55 = vld [vmem:[#allocation9 + $0x70] sm:$0xff]  ;;  %v8730_v56 = vpack.c.bf16 %v550_v49, %v546_v48  ;;  %v552_v57 = vld [vmem:[#allocation9 + $0x88] sm:$0xff]  ;;  %v8733_v60 = vpack.c.bf16 %v547_v52, %v543_v51  ;;  %v554_v61 = vld [vmem:[#allocation9 + $0x98] sm:$0xff] }
  0xac   :  { %v556_v58 = vld [vmem:[#allocation9 + $0xa8] sm:$0xff]  ;;  %v558_v62 = vld [vmem:[#allocation9 + $0xb8] sm:$0xff]  ;;  %v8737_v63 = vpack.c.bf16 %v549_v55, %v545_v54  ;;  %v551_v1 = vld [vmem:[#allocation9 + $0x80] sm:$0xff] }
  0xad   :  { %5972 = vmatpush1.bf16.msra.mxu0 %v5971_v24  ;;  %v152_v59 = vld [vmem:[#allocation4 + $0x8] sm:$0xff]  ;;  %v555_v2 = vld [vmem:[#allocation9 + $0xa0] sm:$0xff]  ;;  %v8741_v3 = vpack.c.bf16 %v556_v58, %v552_v57  ;;  %v553_v4 = vld [vmem:[#allocation9 + $0x90] sm:$0xff]  ;;  %v8744_v6 = vpack.c.bf16 %v558_v62, %v554_v61 }
  0xae   :  { %6004 = vmatpush1.bf16.msra.mxu1 %v6003_v25  ;;  %5974 = vmatprep.subr.bf16.mxu0 %v5973_v26  ;;  %v557_v5 = vld [vmem:[#allocation9 + $0xb0] sm:$0xff]  ;;  %v560_v7 = vld [vmem:[#allocation9 + $0xc8] sm:$0xff]  ;;  %v8747_v10 = vpack.c.bf16 %v555_v2, %v551_v1  ;;  %v562_v11 = vld [vmem:[#allocation9 + $0xd8] sm:$0xff] }
  0xaf   :  { %6006 = vmatprep.subr.bf16.mxu1 %v6005_v30  ;;  %v564_v8 = vld [vmem:[#allocation9 + $0xe8] sm:$0xff]  ;;  %v153_v9 = vld [vmem:[#allocation4 + $0x10] sm:$0xff]  ;;  %v566_v12 = vld [vmem:[#allocation9 + $0xf8] sm:$0xff]  ;;  %v8751_v13 = vpack.c.bf16 %v557_v5, %v553_v4 }
  0xb0   :  { %v559_v14 = vld [vmem:[#allocation9 + $0xc0] sm:$0xff]  ;;  %v8755_v16 = vpack.c.bf16 %v564_v8, %v560_v7  ;;  %v561_v17 = vld [vmem:[#allocation9 + $0xd0] sm:$0xff]  ;;  %v8758_v19 = vpack.c.bf16 %v566_v12, %v562_v11  ;;  %v568_v20 = vld [vmem:[#allocation9 + $0x108] sm:$0xff] }
  0xb1   :  { %5976 = vmatpush1.bf16.msra.mxu0 %v5975_v36  ;;  %v563_v15 = vld [vmem:[#allocation9 + $0xe0] sm:$0xff]  ;;  %v565_v18 = vld [vmem:[#allocation9 + $0xf0] sm:$0xff]  ;;  %v572_v21 = vld [vmem:[#allocation9 + $0x128] sm:$0xff] }
  0xb2   :  { %6008 = vmatpush1.bf16.msra.mxu1 %v6007_v37  ;;  %6010 = vmatprep.subr.bf16.mxu0 %v8718_v38  ;;  %v154_v22 = vld [vmem:[#allocation4 + $0x18] sm:$0xff]  ;;  %v8761_v23 = vpack.c.bf16 %v563_v15, %v559_v14  ;;  %v8765_v26 = vpack.c.bf16 %v565_v18, %v561_v17  ;;  %v567_v27 = vld [vmem:[#allocation9 + $0x100] sm:$0xff]  ;;  %v8769_v29 = vpack.c.bf16 %v572_v21, %v568_v20  ;;  %v569_v30 = vld [vmem:[#allocation9 + $0x110] sm:$0xff] }
  0xb3   :  { %6042 = vmatprep.subr.bf16.mxu1 %v8720_v41  ;;  %v570_v24 = vld [vmem:[#allocation9 + $0x118] sm:$0xff]  ;;  %v571_v28 = vld [vmem:[#allocation9 + $0x120] sm:$0xff]  ;;  %v573_v31 = vld [vmem:[#allocation9 + $0x130] sm:$0xff] }
  0xb4   :  { %288 = vmatmul.mubr.f32.vlgmr.msra.gmra.mrb[0].mxu0 %v151_v46  ;;  %v574_v25 = vld [vmem:[#allocation9 + $0x138] sm:$0xff]  ;;  %v576_v33 = vld [vmem:[#allocation9 + $0x148] sm:$0xff]  ;;  %v155_v35 = vld [vmem:[#allocation4 + $0x20] sm:$0xff]  ;;  %v8775_v36 = vpack.c.bf16 %v571_v28, %v567_v27  ;;  %v8779_v40 = vpack.c.bf16 %v573_v31, %v569_v30  ;;  %v451_v28 = vlaneseq }
  0xb5   :  { %401 = vmatmul.mubr.f32.vlgmr.msra.gmra.mrb[0].mxu1 %v151_v46  ;;  %6012 = vmatpush1.bf16.msra.mxu0 %v8722_v47  ;;  %v8772_v32 = vpack.c.bf16 %v574_v25, %v570_v24  ;;  %v580_v34 = vld [vmem:[#allocation9 + $0x168] sm:$0xff]  ;;  %v578_v37 = vld [vmem:[#allocation9 + $0x158] sm:$0xff]  ;;  %v575_v42 = vld [vmem:[#allocation9 + $0x140] sm:$0xff] }
  0xb6   :  { %6044 = vmatpush1.bf16.msra.mxu1 %v8725_v50  ;;  %293 = vmatprep.mubr.f32.mxu0 %v8513_v0  ;;  %v582_v39 = vld [vmem:[#allocation9 + $0x178] sm:$0xff]  ;;  %v579_v43 = vld [vmem:[#allocation9 + $0x160] sm:$0xff]  ;;  %v8783_v44 = vpack.c.bf16 %v580_v34, %v576_v33  ;;  %v577_v45 = vld [vmem:[#allocation9 + $0x150] sm:$0xff]  ;;  %v452_v30 = vshrl.u32 %v451_v28, 7 }
  0xb7   :  { %406 = vmatprep.mubr.f32.mxu1 %v8513_v0  ;;  %6014 = vmatprep.subr.bf16.mxu0 %v8728_v53  ;;  %v581_v46 = vld [vmem:[#allocation9 + $0x170] sm:$0xff]  ;;  %v8786_v48 = vpack.c.bf16 %v582_v39, %v578_v37  ;;  %v584_v49 = vld [vmem:[#allocation9 + $0x188] sm:$0xff]  ;;  %v8789_v54 = vpack.c.bf16 %v579_v43, %v575_v42  ;;  %v586_v55 = vld [vmem:[#allocation9 + $0x198] sm:$0xff] }
  0xb8   :  { %294 = vmatmul.mubr.f32.gmra.mrb[2].mxu0 %v152_v59  ;;  %6046 = vmatprep.subr.bf16.mxu1 %v8730_v56  ;;  %v588_v51 = vld [vmem:[#allocation9 + $0x1a8] sm:$0xff]  ;;  %v590_v57 = vld [vmem:[#allocation9 + $0x1b8] sm:$0xff]  ;;  %v8793_v58 = vpack.c.bf16 %v581_v46, %v577_v45  ;;  %v587_v61 = vld [vmem:[#allocation9 + $0x1a0] sm:$0xff]  ;;  %v8868_v31 = vsub.s32 0, %v452_v30  ;;  %v8873_v34 = vsub.s32 1, %v452_v30  ;;  %v8881_v42 = vsub.s32 3, %v452_v30 }
  0xb9   :  { %407 = vmatmul.mubr.f32.gmra.mrb[2].mxu1 %v152_v59  ;;  %6016 = vmatpush1.bf16.msra.mxu0 %v8733_v60  ;;  %v156_v52 = vld [vmem:[#allocation4 + $0x28] sm:$0xff]  ;;  %v583_v59 = vld [vmem:[#allocation9 + $0x180] sm:$0xff]  ;;  %v8797_v62 = vpack.c.bf16 %v588_v51, %v584_v49  ;;  %v585_v1 = vld [vmem:[#allocation9 + $0x190] sm:$0xff]  ;;  %v8800_v4 = vpack.c.bf16 %v590_v57, %v586_v55 }
  0xba   :  { %6048 = vmatpush1.bf16.msra.mxu1 %v8737_v63  ;;  %299 = vmatprep.mubr.f32.mxu0 %v8513_v0  ;;  %v589_v2 = vld [vmem:[#allocation9 + $0x1b0] sm:$0xff]  ;;  %v592_v5 = vld [vmem:[#allocation9 + $0x1c8] sm:$0xff]  ;;  %v594_v11 = vld [vmem:[#allocation9 + $0x1d8] sm:$0xff] }
  0xbb   :  { %412 = vmatprep.mubr.f32.mxu1 %v8513_v0  ;;  %6018 = vmatprep.subr.bf16.mxu0 %v8741_v3  ;;  %v596_v7 = vld [vmem:[#allocation9 + $0x1e8] sm:$0xff]  ;;  %v157_v8 = vld [vmem:[#allocation4 + $0x30] sm:$0xff]  ;;  %v598_v12 = vld [vmem:[#allocation9 + $0x1f8] sm:$0xff]  ;;  %v8807_v14 = vpack.c.bf16 %v589_v2, %v585_v1 }
  0xbc   :  { %300 = vmatmul.mubr.f32.gmra.mrb[4].mxu0 %v153_v9  ;;  %6050 = vmatprep.subr.bf16.mxu1 %v8744_v6  ;;  %v591_v15 = vld [vmem:[#allocation9 + $0x1c0] sm:$0xff]  ;;  %v8811_v18 = vpack.c.bf16 %v596_v7, %v592_v5  ;;  %v593_v20 = vld [vmem:[#allocation9 + $0x1d0] sm:$0xff]  ;;  %v158_v24 = vld [vmem:[#allocation4 + $0x38] sm:$0xff] }
  0xbd   :  { %413 = vmatmul.mubr.f32.gmra.mrb[4].mxu1 %v153_v9  ;;  %6020 = vmatpush1.bf16.msra.mxu0 %v8747_v10  ;;  %v8803_v9 = vpack.c.bf16 %v587_v61, %v583_v59  ;;  %v595_v17 = vld [vmem:[#allocation9 + $0x1e0] sm:$0xff]  ;;  %v597_v21 = vld [vmem:[#allocation9 + $0x1f0] sm:$0xff]  ;;  %v8888_v59 = vsub.s32 2, %v452_v30 }
  0xbe   :  { %6052 = vmatpush1.bf16.msra.mxu1 %v8751_v13  ;;  %305 = vmatprep.mubr.f32.mxu0 %v8513_v0  ;;  %v8817_v25 = vpack.c.bf16 %v595_v17, %v591_v15  ;;  %v8821_v27 = vpack.c.bf16 %v597_v21, %v593_v20  ;;  %v449_v33 = vld [vmem:[%s10114_s3] sm:$0xf] }
  0xbf   :  { %418 = vmatprep.mubr.f32.mxu1 %v8513_v0  ;;  %6022 = vmatprep.subr.bf16.mxu0 %v8755_v16  ;;  %v8879_v37 = vrot.slane %v449_v33, %v8873_v34  ;;  %v8886_v57 = vrot.slane %v449_v33, %v8881_v42  ;;  %v8892_v1 = vrot.slane %v449_v33, %v8888_v59 }
  0xc0   :  { %306 = vmatmul.mubr.f32.gmra.mrb[6].mxu0 %v154_v22  ;;  %6054 = vmatprep.subr.bf16.mxu1 %v8758_v19 }
  0xc1   :  { %419 = vmatmul.mubr.f32.gmra.mrb[6].mxu1 %v154_v22  ;;  %6024 = vmatpush1.bf16.msra.mxu0 %v8761_v23  ;;  %v8814_v22 = vpack.c.bf16 %v598_v12, %v594_v11 }
  0xc2   :  { %6056 = vmatpush1.bf16.msra.mxu1 %v8765_v26  ;;  %311 = vmatprep.mubr.f32.mxu0 %v8513_v0 }
  0xc3   :  { %424 = vmatprep.mubr.f32.mxu1 %v8513_v0  ;;  %6026 = vmatprep.subr.bf16.mxu0 %v8769_v29 }
  0xc4   :  { %312 = vmatmul.mubr.f32.gmra.mrb[8].mxu0 %v155_v35  ;;  %6058 = vmatprep.subr.bf16.mxu1 %v8772_v32 }
  0xc5   :  { %425 = vmatmul.mubr.f32.gmra.mrb[8].mxu1 %v155_v35  ;;  %6028 = vmatpush1.bf16.msra.mxu0 %v8775_v36  ;;  %v8876_v35 = vrot.slane %v449_v33, %v8868_v31 }
  0xc6   :  { %6060 = vmatpush1.bf16.msra.mxu1 %v8779_v40  ;;  %317 = vmatprep.mubr.f32.mxu0 %v8513_v0 }
  0xc7   :  { %430 = vmatprep.mubr.f32.mxu1 %v8513_v0  ;;  %6030 = vmatprep.subr.bf16.mxu0 %v8783_v44 }
  0xc8   :  { %318 = vmatmul.mubr.f32.gmra.mrb[10].mxu0 %v156_v52  ;;  %6062 = vmatprep.subr.bf16.mxu1 %v8786_v48 }
  0xc9   :  { %431 = vmatmul.mubr.f32.gmra.mrb[10].mxu1 %v156_v52  ;;  %6032 = vmatpush1.bf16.msra.mxu0 %v8789_v54 }
  0xca   :  { %6064 = vmatpush1.bf16.msra.mxu1 %v8793_v58  ;;  %323 = vmatprep.mubr.f32.mxu0 %v8513_v0 }
  0xcb   :  { %436 = vmatprep.mubr.f32.mxu1 %v8513_v0  ;;  %6034 = vmatprep.subr.bf16.mxu0 %v8797_v62 }
  0xcc   :  { %324 = vmatmul.mubr.f32.gmra.mrb[12].mxu0 %v157_v8  ;;  %6066 = vmatprep.subr.bf16.mxu1 %v8800_v4 }
  0xcd   :  { %437 = vmatmul.mubr.f32.gmra.mrb[12].mxu1 %v157_v8  ;;  %6036 = vmatpush1.bf16.msra.mxu0 %v8803_v9 }
  0xce   :  { %6068 = vmatpush1.bf16.msra.mxu1 %v8807_v14  ;;  %329 = vmatprep.mubr.f32.mxu0 %v8513_v0 }
  0xcf   :  { %442 = vmatprep.mubr.f32.mxu1 %v8513_v0  ;;  %6038 = vmatprep.subr.bf16.mxu0 %v8811_v18 }
  0xd0   :  { %330 = vmatmul.mubr.f32.gmra.mrb[14].mxu0 %v158_v24  ;;  %6070 = vmatprep.subr.bf16.mxu1 %v8814_v22 }
  0xd1   :  { %443 = vmatmul.mubr.f32.gmra.mrb[14].mxu1 %v158_v24  ;;  %6040 = vmatpush1.bf16.msra.mxu0 %v8817_v25 }
  0xd2   :  { %6072 = vmatpush1.bf16.msra.mxu1 %v8821_v27  ;;  %667 = vmatprep.mubr.f32.mxu0 %v8513_v0 }
  0xd3   :  { %738 = vmatprep.mubr.f32.mxu1 %v8513_v0  ;;  %6074 = vmatprep.subr.bf16.mxu0 %v8718_v38 }
  0xd4   :  { %668 = vmatmul.mubr.f32.vlgmr.msra.gmra.mrb[0].mxu0 %v8513_v0  ;;  %6106 = vmatprep.subr.bf16.mxu1 %v8720_v41 }
  0xd5   :  { %739 = vmatmul.mubr.f32.vlgmr.msra.gmra.mrb[0].mxu1 %v8513_v0  ;;  %6076 = vmatpush1.bf16.msra.mxu0 %v8722_v47 }
  0xd6   :  { %6108 = vmatpush1.bf16.msra.mxu1 %v8725_v50  ;;  %6078 = vmatprep.subr.bf16.mxu0 %v8728_v53 }
  0xd7   :  { %6110 = vmatprep.subr.bf16.mxu1 %v8730_v56  ;;  %843 = vmatprep.mubr.f32.mxu0 %v8513_v0 }
  0xd8   :  { %914 = vmatprep.mubr.f32.mxu1 %v8513_v0 }
  0xd9   :  { %6080 = vmatpush1.bf16.msra.mxu0 %v8733_v60 }
  0xda   :  { %6112 = vmatpush1.bf16.msra.mxu1 %v8737_v63  ;;  %6082 = vmatprep.subr.bf16.mxu0 %v8741_v3 }
  0xdb   :  { %6114 = vmatprep.subr.bf16.mxu1 %v8744_v6 }
  0xdd   :  { %6084 = vmatpush1.bf16.msra.mxu0 %v8747_v10 }
  0xde   :  { %6116 = vmatpush1.bf16.msra.mxu1 %v8751_v13  ;;  %6086 = vmatprep.subr.bf16.mxu0 %v8755_v16 }
  0xdf   :  { %6118 = vmatprep.subr.bf16.mxu1 %v8758_v19 }
  0xe1   :  { %6088 = vmatpush1.bf16.msra.mxu0 %v8761_v23 }
  0xe2   :  { %6120 = vmatpush1.bf16.msra.mxu1 %v8765_v26  ;;  %6090 = vmatprep.subr.bf16.mxu0 %v8769_v29 }
  0xe3   :  { %6122 = vmatprep.subr.bf16.mxu1 %v8772_v32 }
  0xe5   :  { %6092 = vmatpush1.bf16.msra.mxu0 %v8775_v36 }
  0xe6   :  { %6124 = vmatpush1.bf16.msra.mxu1 %v8779_v40  ;;  %6094 = vmatprep.subr.bf16.mxu0 %v8783_v44 }
  0xe7   :  { %6126 = vmatprep.subr.bf16.mxu1 %v8786_v48 }
  0xe9   :  { %6096 = vmatpush1.bf16.msra.mxu0 %v8789_v54 }
  0xea   :  { %6128 = vmatpush1.bf16.msra.mxu1 %v8793_v58  ;;  %6098 = vmatprep.subr.bf16.mxu0 %v8797_v62 }
  0xeb   :  { %6130 = vmatprep.subr.bf16.mxu1 %v8800_v4 }
  0xed   :  { %6100 = vmatpush1.bf16.msra.mxu0 %v8803_v9 }
  0xee   :  { %6132 = vmatpush1.bf16.msra.mxu1 %v8807_v14  ;;  %6102 = vmatprep.subr.bf16.mxu0 %v8811_v18 }
  0xef   :  { %6134 = vmatprep.subr.bf16.mxu1 %v8814_v22 }
  0xf1   :  { %6104 = vmatpush1.bf16.msra.mxu0 %v8817_v25 }
  0xf2   :  { %6136 = vmatpush1.bf16.msra.mxu1 %v8821_v27  ;;  %6138 = vmatprep.subr.bf16.mxu0 %v8718_v38 }
  0xf3   :  { %6170 = vmatprep.subr.bf16.mxu1 %v8720_v41 }
 0x1a7   :  { %v669_v39 = vpop.f32.mrb[0].mxu0 }
 0x1a8   :  { %v7697_v43 = vadd.f32 %v669_v39, %v8876_v35  ;;  %v740_v45 = vpop.f32.mrb[0].mxu1  ;;  %v671_v46 = vpop.f32.mrb[1].mxu0 }
 0x1a9   :  { %v7698_v49 = vadd.f32 %v671_v46, %v8879_v37  ;;  %v742_v51 = vpop.f32.mrb[1].mxu1  ;;  %v7713_v5 = vadd.f32 %v740_v45, %v8892_v1 }
 0x1aa   :  { %v5820_v52 = vmul.f32 -1.442695, %v7697_v43  ;;  %v7714_v61 = vadd.f32 %v742_v51, %v8886_v57 }
 0x1ab   :  { %v5821_v55 = vmul.f32 -1.442695, %v7698_v49 }
 0x1ac   :  { %7905 = vpow2.f32 %v5820_v52  ;;  %v5822_v2 = vmul.f32 -1.442695, %v7714_v61 }
 0x1ad   :  { %7907 = vpow2.f32 %v5821_v55 }
 0x1ae   :  { %7909 = vpow2.f32 %v5822_v2 }
 0x1af   :  { %7911 = vtanh.f32 %v7713_v5 }
 0x1b6   :  { %v7906_v7 = vpop.eup %7905 }
 0x1b7   :  { %v7908_v8 = vpop.eup %7907  ;;  %v752_v11 = vadd.f32 1.0, %v7906_v7 }
 0x1b8   :  { %v758_v12 = vadd.f32 1.0, %v7908_v8  ;;  %v7910_v15 = vpop.eup %7909 }
 0x1b9   :  { %7913 = vrcp.f32 %v752_v11  ;;  %v7912_v17 = vpop.eup %7911  ;;  %v765_v28 = vadd.f32 1.0, %v7910_v15 }
 0x1ba   :  { %7915 = vrcp.f32 %v758_v12 }
 0x1bb   :  { %7917 = vrcp.f32 %v765_v28 }
 0x1c3   :  { %v7914_v20 = vpop.eup %7913 }
 0x1c4   :  { %v7916_v21 = vpop.eup %7915  ;;  %v769_v24 = vmul.f32 %v7914_v20, %v7912_v17 }
 0x1c5   :  { %v768_v30 = vmul.f32 0.0, %v7916_v21  ;;  %v7918_v39 = vpop.eup %7917 }
 0x1c7   :  { %v8895_v33 = vadd.f32 %v769_v24, %v768_v30 }
 0x1c9   :  { %7919 = vtanh.f32 %v8895_v33 }
 0x1d3   :  { %v7920_v43 = vpop.eup %7919 }
 0x1d4   :  { %v8898_v45 = vmul.f32 %v7920_v43, %v7918_v39 }
 0x1d6   :  { %844 = vmatmul.mubr.f32.vlgmr.msra.gmra.mrb[2].mxu0 %v8898_v45  ;;  %915 = vmatmul.mubr.f32.vlgmr.msra.gmra.mrb[2].mxu1 %v8898_v45 }
 0x1d7   :  { %6140 = vmatpush1.bf16.msra.mxu0 %v8722_v47  ;;  %6172 = vmatpush1.bf16.msra.mxu1 %v8725_v50 }
 0x1d8   :  { %6142 = vmatprep.subr.bf16.mxu0 %v8728_v53  ;;  %6174 = vmatprep.subr.bf16.mxu1 %v8730_v56 }
 0x1d9   :  { %1020 = vmatprep.mubr.f32.mxu0 %v8513_v0  ;;  %1091 = vmatprep.mubr.f32.mxu1 %v8513_v0 }
 0x1db   :  { %6144 = vmatpush1.bf16.msra.mxu0 %v8733_v60  ;;  %6176 = vmatpush1.bf16.msra.mxu1 %v8737_v63 }
 0x1dc   :  { %6146 = vmatprep.subr.bf16.mxu0 %v8741_v3  ;;  %6178 = vmatprep.subr.bf16.mxu1 %v8744_v6 }
 0x1df   :  { %6148 = vmatpush1.bf16.msra.mxu0 %v8747_v10  ;;  %6180 = vmatpush1.bf16.msra.mxu1 %v8751_v13 }
 0x1e0   :  { %6150 = vmatprep.subr.bf16.mxu0 %v8755_v16  ;;  %6182 = vmatprep.subr.bf16.mxu1 %v8758_v19 }
 0x1e3   :  { %6152 = vmatpush1.bf16.msra.mxu0 %v8761_v23  ;;  %6184 = vmatpush1.bf16.msra.mxu1 %v8765_v26 }
 0x1e4   :  { %6154 = vmatprep.subr.bf16.mxu0 %v8769_v29  ;;  %6186 = vmatprep.subr.bf16.mxu1 %v8772_v32 }
 0x1e7   :  { %6156 = vmatpush1.bf16.msra.mxu0 %v8775_v36  ;;  %6188 = vmatpush1.bf16.msra.mxu1 %v8779_v40 }
 0x1e8   :  { %6158 = vmatprep.subr.bf16.mxu0 %v8783_v44  ;;  %6190 = vmatprep.subr.bf16.mxu1 %v8786_v48 }
 0x1eb   :  { %6160 = vmatpush1.bf16.msra.mxu0 %v8789_v54  ;;  %6192 = vmatpush1.bf16.msra.mxu1 %v8793_v58 }
 0x1ec   :  { %6162 = vmatprep.subr.bf16.mxu0 %v8797_v62  ;;  %6194 = vmatprep.subr.bf16.mxu1 %v8800_v4 }
 0x1ef   :  { %6164 = vmatpush1.bf16.msra.mxu0 %v8803_v9  ;;  %6196 = vmatpush1.bf16.msra.mxu1 %v8807_v14 }
 0x1f0   :  { %6166 = vmatprep.subr.bf16.mxu0 %v8811_v18  ;;  %6198 = vmatprep.subr.bf16.mxu1 %v8814_v22 }
 0x1f3   :  { %6168 = vmatpush1.bf16.msra.mxu0 %v8817_v25  ;;  %6200 = vmatpush1.bf16.msra.mxu1 %v8821_v27 }
 0x1f4   :  { %6202 = vmatprep.subr.bf16.mxu0 %v8718_v38  ;;  %6234 = vmatprep.subr.bf16.mxu1 %v8720_v41 }
 0x2a9   :  { %v845_v46 = vpop.f32.mrb[2].mxu0  ;;  %v916_v49 = vpop.f32.mrb[2].mxu1 }
 0x2aa   :  { %v7699_v51 = vadd.f32 %v845_v46, %v8876_v35  ;;  %v847_v52 = vpop.f32.mrb[3].mxu0  ;;  %v918_v55 = vpop.f32.mrb[3].mxu1  ;;  %v7715_v11 = vadd.f32 %v916_v49, %v8892_v1 }
 0x2ab   :  { %v7700_v61 = vadd.f32 %v847_v52, %v8879_v37  ;;  %v7716_v7 = vadd.f32 %v918_v55, %v8886_v57 }
 0x2ac   :  { %v5823_v2 = vmul.f32 -1.442695, %v7699_v51 }
 0x2ad   :  { %v5824_v5 = vmul.f32 -1.442695, %v7700_v61  ;;  %v5825_v8 = vmul.f32 -1.442695, %v7716_v7 }
 0x2ae   :  { %7921 = vpow2.f32 %v5823_v2 }
 0x2af   :  { %7923 = vpow2.f32 %v5824_v5 }
 0x2b0   :  { %7925 = vpow2.f32 %v5825_v8 }
 0x2b1   :  { %7927 = vtanh.f32 %v7715_v11 }
 0x2b8   :  { %v7922_v12 = vpop.eup %7921 }
 0x2b9   :  { %v7924_v15 = vpop.eup %7923  ;;  %v928_v17 = vadd.f32 1.0, %v7922_v12 }
 0x2ba   :  { %v934_v20 = vadd.f32 1.0, %v7924_v15  ;;  %v7926_v21 = vpop.eup %7925 }
 0x2bb   :  { %7929 = vrcp.f32 %v928_v17  ;;  %v7928_v24 = vpop.eup %7927  ;;  %v941_v43 = vadd.f32 1.0, %v7926_v21 }
 0x2bc   :  { %7931 = vrcp.f32 %v934_v20 }
 0x2bd   :  { %7933 = vrcp.f32 %v941_v43 }
 0x2c5   :  { %v7930_v28 = vpop.eup %7929 }
 0x2c6   :  { %v7932_v30 = vpop.eup %7931  ;;  %v945_v39 = vmul.f32 %v7930_v28, %v7928_v24 }
 0x2c7   :  { %v944_v46 = vmul.f32 %v7932_v30, %v8895_v33  ;;  %v7934_v49 = vpop.eup %7933 }
 0x2c9   :  { %v8941_v51 = vadd.f32 %v945_v39, %v944_v46 }
 0x2cb   :  { %7935 = vtanh.f32 %v8941_v51 }
 0x2d5   :  { %v7936_v52 = vpop.eup %7935 }
 0x2d6   :  { %v8944_v55 = vmul.f32 %v7936_v52, %v7934_v49 }
 0x2d8   :  { %1021 = vmatmul.mubr.f32.vlgmr.msra.gmra.mrb[4].mxu0 %v8944_v55  ;;  %1092 = vmatmul.mubr.f32.vlgmr.msra.gmra.mrb[4].mxu1 %v8944_v55 }
 0x2d9   :  { %6204 = vmatpush1.bf16.msra.mxu0 %v8722_v47  ;;  %6236 = vmatpush1.bf16.msra.mxu1 %v8725_v50 }
 0x2da   :  { %6206 = vmatprep.subr.bf16.mxu0 %v8728_v53  ;;  %6238 = vmatprep.subr.bf16.mxu1 %v8730_v56 }
 0x2db   :  { %1197 = vmatprep.mubr.f32.mxu0 %v8513_v0  ;;  %1268 = vmatprep.mubr.f32.mxu1 %v8513_v0 }
 0x2dd   :  { %6208 = vmatpush1.bf16.msra.mxu0 %v8733_v60  ;;  %6240 = vmatpush1.bf16.msra.mxu1 %v8737_v63 }
 0x2de   :  { %6210 = vmatprep.subr.bf16.mxu0 %v8741_v3  ;;  %6242 = vmatprep.subr.bf16.mxu1 %v8744_v6 }
 0x2e1   :  { %6212 = vmatpush1.bf16.msra.mxu0 %v8747_v10  ;;  %6244 = vmatpush1.bf16.msra.mxu1 %v8751_v13 }
 0x2e2   :  { %6214 = vmatprep.subr.bf16.mxu0 %v8755_v16  ;;  %6246 = vmatprep.subr.bf16.mxu1 %v8758_v19 }
 0x2e5   :  { %6216 = vmatpush1.bf16.msra.mxu0 %v8761_v23  ;;  %6248 = vmatpush1.bf16.msra.mxu1 %v8765_v26 }
 0x2e6   :  { %6218 = vmatprep.subr.bf16.mxu0 %v8769_v29  ;;  %6250 = vmatprep.subr.bf16.mxu1 %v8772_v32 }
 0x2e9   :  { %6220 = vmatpush1.bf16.msra.mxu0 %v8775_v36  ;;  %6252 = vmatpush1.bf16.msra.mxu1 %v8779_v40 }
 0x2ea   :  { %6222 = vmatprep.subr.bf16.mxu0 %v8783_v44  ;;  %6254 = vmatprep.subr.bf16.mxu1 %v8786_v48 }
 0x2ed   :  { %6224 = vmatpush1.bf16.msra.mxu0 %v8789_v54  ;;  %6256 = vmatpush1.bf16.msra.mxu1 %v8793_v58 }
 0x2ee   :  { %6226 = vmatprep.subr.bf16.mxu0 %v8797_v62  ;;  %6258 = vmatprep.subr.bf16.mxu1 %v8800_v4 }
 0x2f1   :  { %6228 = vmatpush1.bf16.msra.mxu0 %v8803_v9  ;;  %6260 = vmatpush1.bf16.msra.mxu1 %v8807_v14 }
 0x2f2   :  { %6230 = vmatprep.subr.bf16.mxu0 %v8811_v18  ;;  %6262 = vmatprep.subr.bf16.mxu1 %v8814_v22 }
 0x2f5   :  { %6232 = vmatpush1.bf16.msra.mxu0 %v8817_v25  ;;  %6264 = vmatpush1.bf16.msra.mxu1 %v8821_v27 }
 0x2f6   :  { %6266 = vmatprep.subr.bf16.mxu0 %v8718_v38  ;;  %6298 = vmatprep.subr.bf16.mxu1 %v8720_v41 }
 0x3ab   :  { %v1022_v33 = vpop.f32.mrb[4].mxu0  ;;  %v1093_v61 = vpop.f32.mrb[4].mxu1 }
 0x3ac   :  { %v7701_v2 = vadd.f32 %v1022_v33, %v8876_v35  ;;  %v1024_v5 = vpop.f32.mrb[5].mxu0  ;;  %v1095_v7 = vpop.f32.mrb[5].mxu1  ;;  %v7717_v20 = vadd.f32 %v1093_v61, %v8892_v1 }
 0x3ad   :  { %v7702_v8 = vadd.f32 %v1024_v5, %v8879_v37  ;;  %v7718_v15 = vadd.f32 %v1095_v7, %v8886_v57 }
 0x3ae   :  { %v5826_v11 = vmul.f32 -1.442695, %v7701_v2 }
 0x3af   :  { %v5827_v12 = vmul.f32 -1.442695, %v7702_v8  ;;  %v5828_v17 = vmul.f32 -1.442695, %v7718_v15 }
 0x3b0   :  { %7937 = vpow2.f32 %v5826_v11 }
 0x3b1   :  { %7939 = vpow2.f32 %v5827_v12 }
 0x3b2   :  { %7941 = vpow2.f32 %v5828_v17 }
 0x3b3   :  { %7943 = vtanh.f32 %v7717_v20 }
 0x3ba   :  { %v7938_v21 = vpop.eup %7937 }
 0x3bb   :  { %v7940_v24 = vpop.eup %7939  ;;  %v1105_v28 = vadd.f32 1.0, %v7938_v21 }
 0x3bc   :  { %v1111_v30 = vadd.f32 1.0, %v7940_v24  ;;  %v7942_v39 = vpop.eup %7941 }
 0x3bd   :  { %7945 = vrcp.f32 %v1105_v28  ;;  %v7944_v43 = vpop.eup %7943  ;;  %v1118_v33 = vadd.f32 1.0, %v7942_v39 }
 0x3be   :  { %7947 = vrcp.f32 %v1111_v30 }
 0x3bf   :  { %7949 = vrcp.f32 %v1118_v33 }
 0x3c7   :  { %v7946_v46 = vpop.eup %7945 }
 0x3c8   :  { %v7948_v49 = vpop.eup %7947  ;;  %v1122_v52 = vmul.f32 %v7946_v46, %v7944_v43 }
 0x3c9   :  { %v1121_v2 = vmul.f32 %v7948_v49, %v8941_v51  ;;  %v7950_v61 = vpop.eup %7949 }
 0x3cb   :  { %v8987_v5 = vadd.f32 %v1122_v52, %v1121_v2 }
 0x3cd   :  { %7951 = vtanh.f32 %v8987_v5 }
 0x3d7   :  { %v7952_v7 = vpop.eup %7951 }
 0x3d8   :  { %v8990_v8 = vmul.f32 %v7952_v7, %v7950_v61 }
 0x3da   :  { %1198 = vmatmul.mubr.f32.vlgmr.msra.gmra.mrb[6].mxu0 %v8990_v8  ;;  %1269 = vmatmul.mubr.f32.vlgmr.msra.gmra.mrb[6].mxu1 %v8990_v8 }
 0x3db   :  { %6268 = vmatpush1.bf16.msra.mxu0 %v8722_v47  ;;  %6300 = vmatpush1.bf16.msra.mxu1 %v8725_v50 }
 0x3dc   :  { %6270 = vmatprep.subr.bf16.mxu0 %v8728_v53  ;;  %6302 = vmatprep.subr.bf16.mxu1 %v8730_v56 }
 0x3dd   :  { %1374 = vmatprep.mubr.f32.mxu0 %v8513_v0  ;;  %1445 = vmatprep.mubr.f32.mxu1 %v8513_v0 }
 0x3df   :  { %6272 = vmatpush1.bf16.msra.mxu0 %v8733_v60  ;;  %6304 = vmatpush1.bf16.msra.mxu1 %v8737_v63 }
 0x3e0   :  { %6274 = vmatprep.subr.bf16.mxu0 %v8741_v3  ;;  %6306 = vmatprep.subr.bf16.mxu1 %v8744_v6 }
 0x3e3   :  { %6276 = vmatpush1.bf16.msra.mxu0 %v8747_v10  ;;  %6308 = vmatpush1.bf16.msra.mxu1 %v8751_v13 }
 0x3e4   :  { %6278 = vmatprep.subr.bf16.mxu0 %v8755_v16  ;;  %6310 = vmatprep.subr.bf16.mxu1 %v8758_v19 }
 0x3e7   :  { %6280 = vmatpush1.bf16.msra.mxu0 %v8761_v23  ;;  %6312 = vmatpush1.bf16.msra.mxu1 %v8765_v26 }
 0x3e8   :  { %6282 = vmatprep.subr.bf16.mxu0 %v8769_v29  ;;  %6314 = vmatprep.subr.bf16.mxu1 %v8772_v32 }
 0x3eb   :  { %6284 = vmatpush1.bf16.msra.mxu0 %v8775_v36  ;;  %6316 = vmatpush1.bf16.msra.mxu1 %v8779_v40 }
 0x3ec   :  { %6286 = vmatprep.subr.bf16.mxu0 %v8783_v44  ;;  %6318 = vmatprep.subr.bf16.mxu1 %v8786_v48 }
 0x3ef   :  { %6288 = vmatpush1.bf16.msra.mxu0 %v8789_v54  ;;  %6320 = vmatpush1.bf16.msra.mxu1 %v8793_v58 }
 0x3f0   :  { %6290 = vmatprep.subr.bf16.mxu0 %v8797_v62  ;;  %6322 = vmatprep.subr.bf16.mxu1 %v8800_v4 }
 0x3f3   :  { %6292 = vmatpush1.bf16.msra.mxu0 %v8803_v9  ;;  %6324 = vmatpush1.bf16.msra.mxu1 %v8807_v14 }
 0x3f4   :  { %6294 = vmatprep.subr.bf16.mxu0 %v8811_v18  ;;  %6326 = vmatprep.subr.bf16.mxu1 %v8814_v22 }
 0x3f7   :  { %6296 = vmatpush1.bf16.msra.mxu0 %v8817_v25  ;;  %6328 = vmatpush1.bf16.msra.mxu1 %v8821_v27 }
 0x3f8   :  { %6330 = vmatprep.subr.bf16.mxu0 %v8718_v38  ;;  %6362 = vmatprep.subr.bf16.mxu1 %v8720_v41 }
 0x4ad   :  { %v1199_v51 = vpop.f32.mrb[6].mxu0  ;;  %v1270_v11 = vpop.f32.mrb[6].mxu1 }
 0x4ae   :  { %v7703_v12 = vadd.f32 %v1199_v51, %v8876_v35  ;;  %v1201_v15 = vpop.f32.mrb[7].mxu0  ;;  %v1272_v17 = vpop.f32.mrb[7].mxu1  ;;  %v7719_v39 = vadd.f32 %v1270_v11, %v8892_v1 }
 0x4af   :  { %v7704_v20 = vadd.f32 %v1201_v15, %v8879_v37  ;;  %v7720_v28 = vadd.f32 %v1272_v17, %v8886_v57 }
 0x4b0   :  { %v5829_v21 = vmul.f32 -1.442695, %v7703_v12 }
 0x4b1   :  { %v5830_v24 = vmul.f32 -1.442695, %v7704_v20  ;;  %v5831_v30 = vmul.f32 -1.442695, %v7720_v28 }
 0x4b2   :  { %7953 = vpow2.f32 %v5829_v21 }
 0x4b3   :  { %7955 = vpow2.f32 %v5830_v24 }
 0x4b4   :  { %7957 = vpow2.f32 %v5831_v30 }
 0x4b5   :  { %7959 = vtanh.f32 %v7719_v39 }
 0x4bc   :  { %v7954_v43 = vpop.eup %7953 }
 0x4bd   :  { %v7956_v46 = vpop.eup %7955  ;;  %v1282_v49 = vadd.f32 1.0, %v7954_v43 }
 0x4be   :  { %v1288_v52 = vadd.f32 1.0, %v7956_v46  ;;  %v7958_v33 = vpop.eup %7957 }
 0x4bf   :  { %7961 = vrcp.f32 %v1282_v49  ;;  %v7960_v2 = vpop.eup %7959  ;;  %v1295_v12 = vadd.f32 1.0, %v7958_v33 }
 0x4c0   :  { %7963 = vrcp.f32 %v1288_v52 }
 0x4c1   :  { %7965 = vrcp.f32 %v1295_v12 }
 0x4c9   :  { %v7962_v61 = vpop.eup %7961 }
 0x4ca   :  { %v7964_v7 = vpop.eup %7963  ;;  %v1299_v51 = vmul.f32 %v7962_v61, %v7960_v2 }
 0x4cb   :  { %v1298_v15 = vmul.f32 %v7964_v7, %v8987_v5  ;;  %v7966_v11 = vpop.eup %7965 }
 0x4cd   :  { %v9033_v17 = vadd.f32 %v1299_v51, %v1298_v15 }
 0x4cf   :  { %7967 = vtanh.f32 %v9033_v17 }
 0x4d9   :  { %v7968_v20 = vpop.eup %7967 }
 0x4da   :  { %v9036_v21 = vmul.f32 %v7968_v20, %v7966_v11 }
 0x4dc   :  { %1375 = vmatmul.mubr.f32.vlgmr.msra.gmra.mrb[8].mxu0 %v9036_v21  ;;  %1446 = vmatmul.mubr.f32.vlgmr.msra.gmra.mrb[8].mxu1 %v9036_v21 }
 0x4dd   :  { %6332 = vmatpush1.bf16.msra.mxu0 %v8722_v47  ;;  %6364 = vmatpush1.bf16.msra.mxu1 %v8725_v50 }
 0x4de   :  { %6334 = vmatprep.subr.bf16.mxu0 %v8728_v53  ;;  %6366 = vmatprep.subr.bf16.mxu1 %v8730_v56 }
 0x4df   :  { %1551 = vmatprep.mubr.f32.mxu0 %v8513_v0  ;;  %1622 = vmatprep.mubr.f32.mxu1 %v8513_v0 }
 0x4e1   :  { %6336 = vmatpush1.bf16.msra.mxu0 %v8733_v60  ;;  %6368 = vmatpush1.bf16.msra.mxu1 %v8737_v63 }
 0x4e2   :  { %6338 = vmatprep.subr.bf16.mxu0 %v8741_v3  ;;  %6370 = vmatprep.subr.bf16.mxu1 %v8744_v6 }
 0x4e5   :  { %6340 = vmatpush1.bf16.msra.mxu0 %v8747_v10  ;;  %6372 = vmatpush1.bf16.msra.mxu1 %v8751_v13 }
 0x4e6   :  { %6342 = vmatprep.subr.bf16.mxu0 %v8755_v16  ;;  %6374 = vmatprep.subr.bf16.mxu1 %v8758_v19 }
 0x4e9   :  { %6344 = vmatpush1.bf16.msra.mxu0 %v8761_v23  ;;  %6376 = vmatpush1.bf16.msra.mxu1 %v8765_v26 }
 0x4ea   :  { %6346 = vmatprep.subr.bf16.mxu0 %v8769_v29  ;;  %6378 = vmatprep.subr.bf16.mxu1 %v8772_v32 }
 0x4ed   :  { %6348 = vmatpush1.bf16.msra.mxu0 %v8775_v36  ;;  %6380 = vmatpush1.bf16.msra.mxu1 %v8779_v40 }
 0x4ee   :  { %6350 = vmatprep.subr.bf16.mxu0 %v8783_v44  ;;  %6382 = vmatprep.subr.bf16.mxu1 %v8786_v48 }
 0x4f1   :  { %6352 = vmatpush1.bf16.msra.mxu0 %v8789_v54  ;;  %6384 = vmatpush1.bf16.msra.mxu1 %v8793_v58 }
 0x4f2   :  { %6354 = vmatprep.subr.bf16.mxu0 %v8797_v62  ;;  %6386 = vmatprep.subr.bf16.mxu1 %v8800_v4 }
 0x4f5   :  { %6356 = vmatpush1.bf16.msra.mxu0 %v8803_v9  ;;  %6388 = vmatpush1.bf16.msra.mxu1 %v8807_v14 }
 0x4f6   :  { %6358 = vmatprep.subr.bf16.mxu0 %v8811_v18  ;;  %6390 = vmatprep.subr.bf16.mxu1 %v8814_v22 }
 0x4f9   :  { %6360 = vmatpush1.bf16.msra.mxu0 %v8817_v25  ;;  %6392 = vmatpush1.bf16.msra.mxu1 %v8821_v27 }
 0x4fa   :  { %6394 = vmatprep.subr.bf16.mxu0 %v8718_v38  ;;  %6426 = vmatprep.subr.bf16.mxu1 %v8720_v41 }
 0x5af   :  { %v1376_v5 = vpop.f32.mrb[8].mxu0  ;;  %v1447_v24 = vpop.f32.mrb[8].mxu1 }
 0x5b0   :  { %v7705_v28 = vadd.f32 %v1376_v5, %v8876_v35  ;;  %v1378_v30 = vpop.f32.mrb[9].mxu0  ;;  %v1449_v39 = vpop.f32.mrb[9].mxu1  ;;  %v7721_v2 = vadd.f32 %v1447_v24, %v8892_v1 }
 0x5b1   :  { %v7706_v43 = vadd.f32 %v1378_v30, %v8879_v37  ;;  %v7722_v52 = vadd.f32 %v1449_v39, %v8886_v57 }
 0x5b2   :  { %v5832_v46 = vmul.f32 -1.442695, %v7705_v28 }
 0x5b3   :  { %v5833_v49 = vmul.f32 -1.442695, %v7706_v43  ;;  %v5834_v33 = vmul.f32 -1.442695, %v7722_v52 }
 0x5b4   :  { %7969 = vpow2.f32 %v5832_v46 }
 0x5b5   :  { %7971 = vpow2.f32 %v5833_v49 }
 0x5b6   :  { %7973 = vpow2.f32 %v5834_v33 }
 0x5b7   :  { %7975 = vtanh.f32 %v7721_v2 }
 0x5be   :  { %v7970_v61 = vpop.eup %7969 }
 0x5bf   :  { %v7972_v7 = vpop.eup %7971  ;;  %v1459_v51 = vadd.f32 1.0, %v7970_v61 }
 0x5c0   :  { %v1465_v12 = vadd.f32 1.0, %v7972_v7  ;;  %v7974_v15 = vpop.eup %7973 }
 0x5c1   :  { %7977 = vrcp.f32 %v1459_v51  ;;  %v7976_v11 = vpop.eup %7975  ;;  %v1472_v30 = vadd.f32 1.0, %v7974_v15 }
 0x5c2   :  { %7979 = vrcp.f32 %v1465_v12 }
 0x5c3   :  { %7981 = vrcp.f32 %v1472_v30 }
 0x5cb   :  { %v7978_v20 = vpop.eup %7977 }
 0x5cc   :  { %v7980_v5 = vpop.eup %7979  ;;  %v1476_v28 = vmul.f32 %v7978_v20, %v7976_v11 }
 0x5cd   :  { %v1475_v43 = vmul.f32 %v7980_v5, %v9033_v17  ;;  %v7982_v24 = vpop.eup %7981 }
 0x5cf   :  { %v9079_v39 = vadd.f32 %v1476_v28, %v1475_v43 }
 0x5d1   :  { %7983 = vtanh.f32 %v9079_v39 }
 0x5db   :  { %v7984_v46 = vpop.eup %7983 }
 0x5dc   :  { %v9082_v49 = vmul.f32 %v7984_v46, %v7982_v24 }
 0x5de   :  { %1552 = vmatmul.mubr.f32.vlgmr.msra.gmra.mrb[10].mxu0 %v9082_v49  ;;  %1623 = vmatmul.mubr.f32.vlgmr.msra.gmra.mrb[10].mxu1 %v9082_v49 }
 0x5df   :  { %6396 = vmatpush1.bf16.msra.mxu0 %v8722_v47  ;;  %6428 = vmatpush1.bf16.msra.mxu1 %v8725_v50 }
 0x5e0   :  { %6398 = vmatprep.subr.bf16.mxu0 %v8728_v53  ;;  %6430 = vmatprep.subr.bf16.mxu1 %v8730_v56 }
 0x5e1   :  { %1728 = vmatprep.mubr.f32.mxu0 %v8513_v0  ;;  %1799 = vmatprep.mubr.f32.mxu1 %v8513_v0 }
 0x5e3   :  { %6400 = vmatpush1.bf16.msra.mxu0 %v8733_v60  ;;  %6432 = vmatpush1.bf16.msra.mxu1 %v8737_v63 }
 0x5e4   :  { %6402 = vmatprep.subr.bf16.mxu0 %v8741_v3  ;;  %6434 = vmatprep.subr.bf16.mxu1 %v8744_v6 }
 0x5e7   :  { %6404 = vmatpush1.bf16.msra.mxu0 %v8747_v10  ;;  %6436 = vmatpush1.bf16.msra.mxu1 %v8751_v13 }
 0x5e8   :  { %6406 = vmatprep.subr.bf16.mxu0 %v8755_v16  ;;  %6438 = vmatprep.subr.bf16.mxu1 %v8758_v19 }
 0x5eb   :  { %6408 = vmatpush1.bf16.msra.mxu0 %v8761_v23  ;;  %6440 = vmatpush1.bf16.msra.mxu1 %v8765_v26 }
 0x5ec   :  { %6410 = vmatprep.subr.bf16.mxu0 %v8769_v29  ;;  %6442 = vmatprep.subr.bf16.mxu1 %v8772_v32 }
 0x5ef   :  { %6412 = vmatpush1.bf16.msra.mxu0 %v8775_v36  ;;  %6444 = vmatpush1.bf16.msra.mxu1 %v8779_v40 }
 0x5f0   :  { %6414 = vmatprep.subr.bf16.mxu0 %v8783_v44  ;;  %6446 = vmatprep.subr.bf16.mxu1 %v8786_v48 }
 0x5f3   :  { %6416 = vmatpush1.bf16.msra.mxu0 %v8789_v54  ;;  %6448 = vmatpush1.bf16.msra.mxu1 %v8793_v58 }
 0x5f4   :  { %6418 = vmatprep.subr.bf16.mxu0 %v8797_v62  ;;  %6450 = vmatprep.subr.bf16.mxu1 %v8800_v4 }
 0x5f7   :  { %6420 = vmatpush1.bf16.msra.mxu0 %v8803_v9  ;;  %6452 = vmatpush1.bf16.msra.mxu1 %v8807_v14 }
 0x5f8   :  { %6422 = vmatprep.subr.bf16.mxu0 %v8811_v18  ;;  %6454 = vmatprep.subr.bf16.mxu1 %v8814_v22 }
 0x5fb   :  { %6424 = vmatpush1.bf16.msra.mxu0 %v8817_v25  ;;  %6456 = vmatpush1.bf16.msra.mxu1 %v8821_v27 }
 0x5fc   :  { %6458 = vmatprep.subr.bf16.mxu0 %v8718_v38  ;;  %6490 = vmatprep.subr.bf16.mxu1 %v8720_v41 }
 0x6b1   :  { %v1553_v17 = vpop.f32.mrb[10].mxu0  ;;  %v1624_v52 = vpop.f32.mrb[10].mxu1 }
 0x6b2   :  { %v7707_v33 = vadd.f32 %v1553_v17, %v8876_v35  ;;  %v1555_v2 = vpop.f32.mrb[11].mxu0  ;;  %v1626_v61 = vpop.f32.mrb[11].mxu1  ;;  %v7723_v20 = vadd.f32 %v1624_v52, %v8892_v1 }
 0x6b3   :  { %v7708_v7 = vadd.f32 %v1555_v2, %v8879_v37  ;;  %v7724_v15 = vadd.f32 %v1626_v61, %v8886_v57 }
 0x6b4   :  { %v5835_v51 = vmul.f32 -1.442695, %v7707_v33 }
 0x6b5   :  { %v5836_v12 = vmul.f32 -1.442695, %v7708_v7  ;;  %v5837_v11 = vmul.f32 -1.442695, %v7724_v15  ;;  %v2027_v15 = vld [vmem:[#allocation10 + $0x30] sm:$0xff] }
 0x6b6   :  { %7985 = vpow2.f32 %v5835_v51 }
 0x6b7   :  { %7987 = vpow2.f32 %v5836_v12  ;;  %v2023_v12 = vld [vmem:[#allocation10 + $0x10] sm:$0xff] }
 0x6b8   :  { %7989 = vpow2.f32 %v5837_v11  ;;  %v2030_v11 = vld [vmem:[#allocation10 + $0x48] sm:$0xff] }
 0x6b9   :  { %7991 = vtanh.f32 %v7723_v20  ;;  %v2034_v20 = vld [vmem:[#allocation10 + $0x68] sm:$0xff] }
 0x6c0   :  { %v7986_v38 = vpop.eup %7985 }
 0x6c1   :  { %v7988_v5 = vpop.eup %7987  ;;  %v1636_v41 = vadd.f32 1.0, %v7986_v38  ;;  %v2032_v38 = vld [vmem:[#allocation10 + $0x58] sm:$0xff] }
 0x6c2   :  { %v1642_v28 = vadd.f32 1.0, %v7988_v5  ;;  %v7990_v30 = vpop.eup %7989  ;;  %v2036_v5 = vld [vmem:[#allocation10 + $0x78] sm:$0xff] }
 0x6c3   :  { %7993 = vrcp.f32 %v1636_v41  ;;  %v7992_v43 = vpop.eup %7991  ;;  %v1649_v33 = vadd.f32 1.0, %v7990_v30 }
 0x6c4   :  { %7995 = vrcp.f32 %v1642_v28 }
 0x6c5   :  { %7997 = vrcp.f32 %v1649_v33  ;;  %v6525_v33 = vpack.c.bf16 %v2034_v20, %v2030_v11  ;;  %v2055_v20 = vld [vmem:[#allocation10 + $0x110] sm:$0xff] }
 0x6cd   :  { %v7994_v24 = vpop.eup %7993 }
 0x6ce   :  { %v7996_v46 = vpop.eup %7995  ;;  %v1653_v17 = vmul.f32 %v7994_v24, %v7992_v43  ;;  %v6555_v43 = vpack.c.bf16 %v2027_v15, %v2023_v12  ;;  %v2029_v24 = vld [vmem:[#allocation10 + $0x40] sm:$0xff] }
 0x6cf   :  { %v1652_v2 = vmul.f32 %v7996_v46, %v9079_v39  ;;  %v7998_v52 = vpop.eup %7997  ;;  %v2025_v39 = vld [vmem:[#allocation10 + $0x20] sm:$0xff] }
 0x6d0   :  { %v2033_v46 = vld [vmem:[#allocation10 + $0x60] sm:$0xff] }
 0x6d1   :  { %v9125_v61 = vadd.f32 %v1653_v17, %v1652_v2  ;;  %v6557_v2 = vpack.c.bf16 %v2036_v5, %v2032_v38  ;;  %v2057_v12 = vld [vmem:[#allocation10 + $0x120] sm:$0xff]  ;;  %v2059_v38 = vld [vmem:[#allocation10 + $0x130] sm:$0xff]  ;;  %v2062_v5 = vld [vmem:[#allocation10 + $0x148] sm:$0xff] }
 0x6d3   :  { %7999 = vtanh.f32 %v9125_v61 }
 0x6dd   :  { %v8000_v7 = vpop.eup %7999 }
 0x6de   :  { %v9128_v51 = vmul.f32 %v8000_v7, %v7998_v52  ;;  %v2035_v52 = vld [vmem:[#allocation10 + $0x70] sm:$0xff]  ;;  %v2038_v7 = vld [vmem:[#allocation10 + $0x88] sm:$0xff] }
 0x6e0   :  { %1729 = vmatmul.mubr.f32.vlgmr.msra.gmra.mrb[12].mxu0 %v9128_v51  ;;  %1800 = vmatmul.mubr.f32.vlgmr.msra.gmra.mrb[12].mxu1 %v9128_v51 }
 0x6e1   :  { %6460 = vmatpush1.bf16.msra.mxu0 %v8722_v47  ;;  %6492 = vmatpush1.bf16.msra.mxu1 %v8725_v50  ;;  %v2022_v47 = vld [vmem:[#allocation10 + $0x8] sm:$0xff] }
 0x6e2   :  { %6462 = vmatprep.subr.bf16.mxu0 %v8728_v53  ;;  %6494 = vmatprep.subr.bf16.mxu1 %v8730_v56  ;;  %v2026_v50 = vld [vmem:[#allocation10 + $0x28] sm:$0xff]  ;;  %v2024_v53 = vld [vmem:[#allocation10 + $0x18] sm:$0xff] }
 0x6e3   :  { %1905 = vmatprep.mubr.f32.mxu0 %v8513_v0  ;;  %1976 = vmatprep.mubr.f32.mxu1 %v8513_v0  ;;  %v6521_v56 = vpack.c.bf16 %v2026_v50, %v2022_v47  ;;  %v2042_v47 = vld [vmem:[#allocation10 + $0xa8] sm:$0xff]  ;;  %v2040_v50 = vld [vmem:[#allocation10 + $0x98] sm:$0xff] }
 0x6e5   :  { %6464 = vmatpush1.bf16.msra.mxu0 %v8733_v60  ;;  %6496 = vmatpush1.bf16.msra.mxu1 %v8737_v63  ;;  %v2028_v60 = vld [vmem:[#allocation10 + $0x38] sm:$0xff] }
 0x6e6   :  { %6466 = vmatprep.subr.bf16.mxu0 %v8741_v3  ;;  %6498 = vmatprep.subr.bf16.mxu1 %v8744_v6  ;;  %v6553_v63 = vpack.c.bf16 %v2028_v60, %v2024_v53  ;;  %v2044_v53 = vld [vmem:[#allocation10 + $0xb8] sm:$0xff] }
 0x6e9   :  { %6468 = vmatpush1.bf16.msra.mxu0 %v8747_v10  ;;  %6500 = vmatpush1.bf16.msra.mxu1 %v8751_v13 }
 0x6ea   :  { %6470 = vmatprep.subr.bf16.mxu0 %v8755_v16  ;;  %6502 = vmatprep.subr.bf16.mxu1 %v8758_v19 }
 0x6ed   :  { %6472 = vmatpush1.bf16.msra.mxu0 %v8761_v23  ;;  %6504 = vmatpush1.bf16.msra.mxu1 %v8765_v26 }
 0x6ee   :  { %6474 = vmatprep.subr.bf16.mxu0 %v8769_v29  ;;  %6506 = vmatprep.subr.bf16.mxu1 %v8772_v32 }
 0x6f1   :  { %6476 = vmatpush1.bf16.msra.mxu0 %v8775_v36  ;;  %6508 = vmatpush1.bf16.msra.mxu1 %v8779_v40 }
 0x6f2   :  { %6478 = vmatprep.subr.bf16.mxu0 %v8783_v44  ;;  %6510 = vmatprep.subr.bf16.mxu1 %v8786_v48 }
 0x6f5   :  { %6480 = vmatpush1.bf16.msra.mxu0 %v8789_v54  ;;  %6512 = vmatpush1.bf16.msra.mxu1 %v8793_v58 }
 0x6f6   :  { %6482 = vmatprep.subr.bf16.mxu0 %v8797_v62  ;;  %6514 = vmatprep.subr.bf16.mxu1 %v8800_v4 }
 0x6f9   :  { %6484 = vmatpush1.bf16.msra.mxu0 %v8803_v9  ;;  %6516 = vmatpush1.bf16.msra.mxu1 %v8807_v14 }
 0x6fa   :  { %6486 = vmatprep.subr.bf16.mxu0 %v8811_v18  ;;  %6518 = vmatprep.subr.bf16.mxu1 %v8814_v22 }
 0x6fd   :  { %6488 = vmatpush1.bf16.msra.mxu0 %v8817_v25  ;;  %6520 = vmatpush1.bf16.msra.mxu1 %v8821_v27  ;;  %v2021_v27 = vld [vmem:[#allocation10] sm:$0xff] }
 0x6fe   :  { %6522 = vmatprep.subr.bf16.mxu0 %v6521_v56  ;;  %6554 = vmatprep.subr.bf16.mxu1 %v6553_v63  ;;  %v6523_v30 = vpack.c.bf16 %v2025_v39, %v2021_v27  ;;  %v6527_v56 = vpack.c.bf16 %v2033_v46, %v2029_v24  ;;  %v2037_v63 = vld [vmem:[#allocation10 + $0x80] sm:$0xff]  ;;  %v6571_v24 = vpack.c.bf16 %v2059_v38, %v2055_v20  ;;  %v2408_v20 = vld [vmem:[#allocation12 + $0x58] sm:$0xff] }
 0x6ff   :  { %v2053_v39 = vld [vmem:[#allocation10 + $0x100] sm:$0xff] }
 0x700   :  { %v2061_v46 = vld [vmem:[#allocation10 + $0x140] sm:$0xff] }
 0x7b3   :  { %v1730_v3 = vpop.f32.mrb[12].mxu0  ;;  %v1801_v6 = vpop.f32.mrb[12].mxu1 }
 0x7b4   :  { %v7709_v10 = vadd.f32 %v1730_v3, %v8876_v35  ;;  %v1732_v13 = vpop.f32.mrb[13].mxu0  ;;  %v1803_v16 = vpop.f32.mrb[13].mxu1  ;;  %v7725_v36 = vadd.f32 %v1801_v6, %v8892_v1  ;;  %v2041_v3 = vld [vmem:[#allocation10 + $0xa0] sm:$0xff]  ;;  %v6529_v6 = vpack.c.bf16 %v2042_v47, %v2038_v7  ;;  %v2067_v7 = vld [vmem:[#allocation10 + $0x170] sm:$0xff]  ;;  %v2070_v47 = vld [vmem:[#allocation10 + $0x188] sm:$0xff] }
 0x7b5   :  { %v7710_v19 = vadd.f32 %v1732_v13, %v8879_v37  ;;  %v7726_v29 = vadd.f32 %v1803_v16, %v8886_v57  ;;  %v2039_v13 = vld [vmem:[#allocation10 + $0x90] sm:$0xff] }
 0x7b6   :  { %v5838_v23 = vmul.f32 -1.442695, %v7709_v10  ;;  %v6561_v10 = vpack.c.bf16 %v2044_v53, %v2040_v50  ;;  %v2043_v16 = vld [vmem:[#allocation10 + $0xb0] sm:$0xff]  ;;  %v2074_v50 = vld [vmem:[#allocation10 + $0x1a8] sm:$0xff]  ;;  %v2072_v53 = vld [vmem:[#allocation10 + $0x198] sm:$0xff] }
 0x7b7   :  { %v5839_v26 = vmul.f32 -1.442695, %v7710_v19  ;;  %v5840_v32 = vmul.f32 -1.442695, %v7726_v29  ;;  %v2046_v19 = vld [vmem:[#allocation10 + $0xc8] sm:$0xff]  ;;  %v2052_v29 = vld [vmem:[#allocation10 + $0xf8] sm:$0xff] }
 0x7b8   :  { %8001 = vpow2.f32 %v5838_v23  ;;  %v2050_v23 = vld [vmem:[#allocation10 + $0xe8] sm:$0xff] }
 0x7b9   :  { %8003 = vpow2.f32 %v5839_v26  ;;  %v2048_v26 = vld [vmem:[#allocation10 + $0xd8] sm:$0xff] }
 0x7ba   :  { %8005 = vpow2.f32 %v5840_v32  ;;  %v6531_v32 = vpack.c.bf16 %v2041_v3, %v2037_v63  ;;  %v2069_v3 = vld [vmem:[#allocation10 + $0x180] sm:$0xff] }
 0x7bb   :  { %8007 = vtanh.f32 %v7725_v36  ;;  %v6563_v36 = vpack.c.bf16 %v2043_v16, %v2039_v13  ;;  %v2071_v16 = vld [vmem:[#allocation10 + $0x190] sm:$0xff] }
 0x7c2   :  { %v8002_v40 = vpop.eup %8001 }
 0x7c3   :  { %v8004_v44 = vpop.eup %8003  ;;  %v1813_v48 = vadd.f32 1.0, %v8002_v40  ;;  %v2045_v40 = vld [vmem:[#allocation10 + $0xc0] sm:$0xff] }
 0x7c4   :  { %v1819_v54 = vadd.f32 1.0, %v8004_v44  ;;  %v8006_v58 = vpop.eup %8005  ;;  %v2049_v44 = vld [vmem:[#allocation10 + $0xe0] sm:$0xff] }
 0x7c5   :  { %8009 = vrcp.f32 %v1813_v48  ;;  %v8008_v62 = vpop.eup %8007  ;;  %v1826_v18 = vadd.f32 1.0, %v8006_v58  ;;  %v6533_v48 = vpack.c.bf16 %v2050_v23, %v2046_v19  ;;  %v2047_v58 = vld [vmem:[#allocation10 + $0xd0] sm:$0xff]  ;;  %v2078_v23 = vld [vmem:[#allocation10 + $0x1c8] sm:$0xff] }
 0x7c6   :  { %8011 = vrcp.f32 %v1819_v54  ;;  %v6565_v54 = vpack.c.bf16 %v2052_v29, %v2048_v26  ;;  %v2075_v19 = vld [vmem:[#allocation10 + $0x1b0] sm:$0xff]  ;;  %v2082_v26 = vld [vmem:[#allocation10 + $0x1e8] sm:$0xff]  ;;  %v2080_v29 = vld [vmem:[#allocation10 + $0x1d8] sm:$0xff] }
 0x7c7   :  { %8013 = vrcp.f32 %v1826_v18  ;;  %v2060_v18 = vld [vmem:[#allocation10 + $0x138] sm:$0xff] }
 0x7cf   :  { %v8010_v4 = vpop.eup %8009 }
 0x7d0   :  { %v8012_v9 = vpop.eup %8011  ;;  %v1830_v14 = vmul.f32 %v8010_v4, %v8008_v62  ;;  %v2051_v62 = vld [vmem:[#allocation10 + $0xf0] sm:$0xff]  ;;  %v2054_v4 = vld [vmem:[#allocation10 + $0x108] sm:$0xff] }
 0x7d1   :  { %v1829_v22 = vmul.f32 %v8012_v9, %v9125_v61  ;;  %v8014_v41 = vpop.eup %8013  ;;  %v2031_v61 = vld [vmem:[#allocation10 + $0x50] sm:$0xff]  ;;  %v2058_v9 = vld [vmem:[#allocation10 + $0x128] sm:$0xff]  ;;  %v6567_v27 = vpack.c.bf16 %v2051_v62, %v2047_v58  ;;  %v2081_v58 = vld [vmem:[#allocation10 + $0x1e0] sm:$0xff] }
 0x7d2   :  { %v6559_v60 = vpack.c.bf16 %v2035_v52, %v2031_v61  ;;  %v6537_v15 = vpack.c.bf16 %v2058_v9, %v2054_v4  ;;  %v2063_v52 = vld [vmem:[#allocation10 + $0x150] sm:$0xff] }
 0x7d3   :  { %v9169_v25 = vadd.f32 %v1830_v14, %v1829_v22  ;;  %v2056_v14 = vld [vmem:[#allocation10 + $0x118] sm:$0xff]  ;;  %v6535_v22 = vpack.c.bf16 %v2049_v44, %v2045_v40  ;;  %v6575_v63 = vpack.c.bf16 %v2067_v7, %v2063_v52  ;;  %v6579_v40 = vpack.c.bf16 %v2075_v19, %v2071_v16  ;;  %v2077_v44 = vld [vmem:[#allocation10 + $0x1c0] sm:$0xff]  ;;  %v2079_v62 = vld [vmem:[#allocation10 + $0x1d0] sm:$0xff] }
 0x7d4   :  { %v6569_v11 = vpack.c.bf16 %v2060_v18, %v2056_v14  ;;  %v2083_v4 = vld [vmem:[#allocation10 + $0x1f0] sm:$0xff]  ;;  %v6551_v9 = vpack.c.bf16 %v2081_v58, %v2077_v44  ;;  %v2397_v18 = vld [vmem:[#allocation12] sm:$0xff]  ;;  %v2416_v52 = vld [vmem:[#allocation12 + $0x98] sm:$0xff] }
 0x7d5   :  { %8015 = vtanh.f32 %v9169_v25  ;;  %v6583_v14 = vpack.c.bf16 %v2083_v4, %v2079_v62  ;;  %v2424_v16 = vld [vmem:[#allocation12 + $0xd8] sm:$0xff]  ;;  %v2427_v44 = vld [vmem:[#allocation12 + $0xf0] sm:$0xff]  ;;  %v2434_v58 = vld [vmem:[#allocation12 + $0x128] sm:$0xff] }
 0x7d6   :  { %v2432_v62 = vld [vmem:[#allocation12 + $0x118] sm:$0xff] }
 0x7d7   :  { %v2436_v4 = vld [vmem:[#allocation12 + $0x138] sm:$0xff] }
 0x7df   :  { %v8016_v28 = vpop.eup %8015 }
 0x7e0   :  { %v9172_v17 = vmul.f32 %v8016_v28, %v8014_v41  ;;  %v2066_v41 = vld [vmem:[#allocation10 + $0x168] sm:$0xff]  ;;  %v2064_v28 = vld [vmem:[#allocation10 + $0x158] sm:$0xff] }
 0x7e2   :  { %1906 = vmatmul.mubr.f32.vlgmr.msra.gmra.mrb[14].mxu0 %v9172_v17  ;;  %1977 = vmatmul.mubr.f32.vlgmr.msra.gmra.mrb[14].mxu1 %v9172_v17 }
 0x7e3   :  { %6524 = vmatpush1.bf16.msra.mxu0 %v6523_v30  ;;  %6556 = vmatpush1.bf16.msra.mxu1 %v6555_v43  ;;  %v2068_v30 = vld [vmem:[#allocation10 + $0x178] sm:$0xff]  ;;  %v6539_v43 = vpack.c.bf16 %v2057_v12, %v2053_v39  ;;  %v2399_v39 = vld [vmem:[#allocation12 + $0x10] sm:$0xff] }
 0x7e4   :  { %6526 = vmatprep.subr.bf16.mxu0 %v6525_v33  ;;  %6558 = vmatprep.subr.bf16.mxu1 %v6557_v2  ;;  %v2065_v33 = vld [vmem:[#allocation10 + $0x160] sm:$0xff]  ;;  %v6541_v2 = vpack.c.bf16 %v2066_v41, %v2062_v5  ;;  %v6573_v61 = vpack.c.bf16 %v2068_v30, %v2064_v28  ;;  %v2403_v12 = vld [vmem:[#allocation12 + $0x30] sm:$0xff]  ;;  %v2412_v5 = vld [vmem:[#allocation12 + $0x78] sm:$0xff] }
 0x7e5   :  { %2149 = vmatprep.mubr.f32.mxu0 %v8513_v0  ;;  %2262 = vmatprep.mubr.f32.mxu1 %v8513_v0  ;;  %v2405_v41 = vld [vmem:[#allocation12 + $0x40] sm:$0xff]  ;;  %v9220_v30 = vpack.c.bf16 %v2412_v5, %v2408_v20  ;;  %v2444_v20 = vld [vmem:[#allocation12 + $0x178] sm:$0xff] }
 0x7e6   :  { %v2409_v28 = vld [vmem:[#allocation12 + $0x60] sm:$0xff] }
 0x7e7   :  { %6528 = vmatpush1.bf16.msra.mxu0 %v6527_v56  ;;  %6560 = vmatpush1.bf16.msra.mxu1 %v6559_v60  ;;  %v2076_v56 = vld [vmem:[#allocation10 + $0x1b8] sm:$0xff]  ;;  %v6543_v60 = vpack.c.bf16 %v2065_v33, %v2061_v46  ;;  %v2411_v46 = vld [vmem:[#allocation12 + $0x70] sm:$0xff]  ;;  %v2437_v5 = vld [vmem:[#allocation12 + $0x140] sm:$0xff] }
 0x7e8   :  { %6530 = vmatprep.subr.bf16.mxu0 %v6529_v6  ;;  %6562 = vmatprep.subr.bf16.mxu1 %v6561_v10  ;;  %v2073_v6 = vld [vmem:[#allocation10 + $0x1a0] sm:$0xff]  ;;  %v6545_v10 = vpack.c.bf16 %v2074_v50, %v2070_v47  ;;  %v6577_v13 = vpack.c.bf16 %v2076_v56, %v2072_v53  ;;  %v2420_v47 = vld [vmem:[#allocation12 + $0xb8] sm:$0xff] }
 0x7e9   :  { %v2413_v50 = vld [vmem:[#allocation12 + $0x80] sm:$0xff]  ;;  %v9232_v56 = vpack.c.bf16 %v2420_v47, %v2416_v52  ;;  %v2450_v52 = vld [vmem:[#allocation12 + $0x1a8] sm:$0xff]  ;;  %v2448_v47 = vld [vmem:[#allocation12 + $0x198] sm:$0xff] }
 0x7ea   :  { %v2417_v53 = vld [vmem:[#allocation12 + $0xa0] sm:$0xff] }
 0x7eb   :  { %6532 = vmatpush1.bf16.msra.mxu0 %v6531_v32  ;;  %6564 = vmatpush1.bf16.msra.mxu1 %v6563_v36  ;;  %v2084_v32 = vld [vmem:[#allocation10 + $0x1f8] sm:$0xff]  ;;  %v6547_v36 = vpack.c.bf16 %v2073_v6, %v2069_v3  ;;  %v2419_v3 = vld [vmem:[#allocation12 + $0xb0] sm:$0xff] }
 0x7ec   :  { %6534 = vmatprep.subr.bf16.mxu0 %v6533_v48  ;;  %6566 = vmatprep.subr.bf16.mxu1 %v6565_v54  ;;  %v6549_v48 = vpack.c.bf16 %v2082_v26, %v2078_v23  ;;  %v6581_v54 = vpack.c.bf16 %v2084_v32, %v2080_v29  ;;  %v2428_v23 = vld [vmem:[#allocation12 + $0xf8] sm:$0xff]  ;;  %v2421_v26 = vld [vmem:[#allocation12 + $0xc0] sm:$0xff] }
 0x7ed   :  { %v2425_v29 = vld [vmem:[#allocation12 + $0xe0] sm:$0xff]  ;;  %v9244_v32 = vpack.c.bf16 %v2428_v23, %v2424_v16  ;;  %v2447_v16 = vld [vmem:[#allocation12 + $0x190] sm:$0xff] }
 0x7ee   :  { %v2451_v23 = vld [vmem:[#allocation12 + $0x1b0] sm:$0xff] }
 0x7ef   :  { %6536 = vmatpush1.bf16.msra.mxu0 %v6535_v22  ;;  %6568 = vmatpush1.bf16.msra.mxu1 %v6567_v27 }
 0x7f0   :  { %6538 = vmatprep.subr.bf16.mxu0 %v6537_v15  ;;  %6570 = vmatprep.subr.bf16.mxu1 %v6569_v11  ;;  %v2406_v15 = vld [vmem:[#allocation12 + $0x48] sm:$0xff] }
 0x7f1   :  { %v2410_v11 = vld [vmem:[#allocation12 + $0x68] sm:$0xff] }
 0x7f2   :  { %v9218_v38 = vpack.c.bf16 %v2410_v11, %v2406_v15  ;;  %v2440_v11 = vld [vmem:[#allocation12 + $0x158] sm:$0xff] }
 0x7f3   :  { %6540 = vmatpush1.bf16.msra.mxu0 %v6539_v43  ;;  %6572 = vmatpush1.bf16.msra.mxu1 %v6571_v24  ;;  %v9222_v43 = vpack.c.bf16 %v2409_v28, %v2405_v41  ;;  %v2407_v24 = vld [vmem:[#allocation12 + $0x50] sm:$0xff]  ;;  %v9266_v41 = vpack.c.bf16 %v2444_v20, %v2440_v11  ;;  %v2441_v28 = vld [vmem:[#allocation12 + $0x160] sm:$0xff] }
 0x7f4   :  { %6542 = vmatprep.subr.bf16.mxu0 %v6541_v2  ;;  %6574 = vmatprep.subr.bf16.mxu1 %v6573_v61  ;;  %v9225_v33 = vpack.c.bf16 %v2411_v46, %v2407_v24  ;;  %v2414_v2 = vld [vmem:[#allocation12 + $0x88] sm:$0xff]  ;;  %v2439_v24 = vld [vmem:[#allocation12 + $0x150] sm:$0xff] }
 0x7f5   :  { %v2418_v61 = vld [vmem:[#allocation12 + $0xa8] sm:$0xff]  ;;  %v2443_v46 = vld [vmem:[#allocation12 + $0x170] sm:$0xff] }
 0x7f6   :  { %v9230_v7 = vpack.c.bf16 %v2418_v61, %v2414_v2  ;;  %v9269_v2 = vpack.c.bf16 %v2441_v28, %v2437_v5  ;;  %v2446_v61 = vld [vmem:[#allocation12 + $0x188] sm:$0xff] }
 0x7f7   :  { %6544 = vmatpush1.bf16.msra.mxu0 %v6543_v60  ;;  %6576 = vmatpush1.bf16.msra.mxu1 %v6575_v63  ;;  %v9234_v60 = vpack.c.bf16 %v2417_v53, %v2413_v50  ;;  %v2415_v63 = vld [vmem:[#allocation12 + $0x90] sm:$0xff]  ;;  %v9273_v50 = vpack.c.bf16 %v2443_v46, %v2439_v24  ;;  %v9275_v53 = vpack.c.bf16 %v2450_v52, %v2446_v61 }
 0x7f8   :  { %6546 = vmatprep.subr.bf16.mxu0 %v6545_v10  ;;  %6578 = vmatprep.subr.bf16.mxu1 %v6577_v13  ;;  %v9237_v6 = vpack.c.bf16 %v2419_v3, %v2415_v63  ;;  %v2422_v10 = vld [vmem:[#allocation12 + $0xc8] sm:$0xff]  ;;  %v2452_v63 = vld [vmem:[#allocation12 + $0x1b8] sm:$0xff]  ;;  %v2445_v3 = vld [vmem:[#allocation12 + $0x180] sm:$0xff] }
 0x7f9   :  { %v2426_v13 = vld [vmem:[#allocation12 + $0xe8] sm:$0xff] }
 0x7fa   :  { %v9242_v19 = vpack.c.bf16 %v2426_v13, %v2422_v10  ;;  %v2449_v10 = vld [vmem:[#allocation12 + $0x1a0] sm:$0xff]  ;;  %v9278_v13 = vpack.c.bf16 %v2452_v63, %v2448_v47 }
 0x7fb   :  { %6548 = vmatpush1.bf16.msra.mxu0 %v6547_v36  ;;  %6580 = vmatpush1.bf16.msra.mxu1 %v6579_v40  ;;  %v9246_v36 = vpack.c.bf16 %v2425_v29, %v2421_v26  ;;  %v2423_v40 = vld [vmem:[#allocation12 + $0xd0] sm:$0xff]  ;;  %v9281_v26 = vpack.c.bf16 %v2449_v10, %v2445_v3  ;;  %v9285_v29 = vpack.c.bf16 %v2451_v23, %v2447_v16 }
 0x7fc   :  { %6550 = vmatprep.subr.bf16.mxu0 %v6549_v48  ;;  %6582 = vmatprep.subr.bf16.mxu1 %v6581_v54  ;;  %v2430_v48 = vld [vmem:[#allocation12 + $0x108] sm:$0xff]  ;;  %v9249_v54 = vpack.c.bf16 %v2427_v44, %v2423_v40 }
 0x7fd   :  { %v2454_v40 = vld [vmem:[#allocation12 + $0x1c8] sm:$0xff] }
 0x7fe   :  { %v2458_v44 = vld [vmem:[#allocation12 + $0x1e8] sm:$0xff] }
 0x7ff   :  { %6552 = vmatpush1.bf16.msra.mxu0 %v6551_v9  ;;  %6584 = vmatpush1.bf16.msra.mxu1 %v6583_v14  ;;  %v9253_v9 = vpack.c.bf16 %v2434_v58, %v2430_v48  ;;  %v9255_v14 = vpack.c.bf16 %v2436_v4, %v2432_v62  ;;  %v2456_v48 = vld [vmem:[#allocation12 + $0x1d8] sm:$0xff]  ;;  %v9290_v58 = vpack.c.bf16 %v2458_v44, %v2454_v40  ;;  %v2453_v4 = vld [vmem:[#allocation12 + $0x1c0] sm:$0xff] }
 0x800   :  { %v2460_v62 = vld [vmem:[#allocation12 + $0x1f8] sm:$0xff] }
 0x802   :  { %2150 = vmatmul.mubr.f32.vlgmr.msra.gmra.mrb[16].mxu0 %v8898_v45  ;;  %2263 = vmatmul.mubr.f32.vlgmr.msra.gmra.mrb[16].mxu1 %v8898_v45  ;;  %v2398_v45 = vld [vmem:[#allocation12 + $0x8] sm:$0xff] }
 0x803   :  { %2155 = vmatprep.mubr.f32.mxu0 %v8513_v0  ;;  %2268 = vmatprep.mubr.f32.mxu1 %v8513_v0 }
 0x806   :  { %2156 = vmatmul.mubr.f32.gmra.mrb[18].mxu0 %v8944_v55  ;;  %2269 = vmatmul.mubr.f32.gmra.mrb[18].mxu1 %v8944_v55  ;;  %v2402_v55 = vld [vmem:[#allocation12 + $0x28] sm:$0xff] }
 0x807   :  { %2161 = vmatprep.mubr.f32.mxu0 %v8513_v0  ;;  %2274 = vmatprep.mubr.f32.mxu1 %v8513_v0 }
 0x80a   :  { %2162 = vmatmul.mubr.f32.gmra.mrb[20].mxu0 %v8990_v8  ;;  %2275 = vmatmul.mubr.f32.gmra.mrb[20].mxu1 %v8990_v8  ;;  %v2400_v8 = vld [vmem:[#allocation12 + $0x18] sm:$0xff] }
 0x80b   :  { %2167 = vmatprep.mubr.f32.mxu0 %v8513_v0  ;;  %2280 = vmatprep.mubr.f32.mxu1 %v8513_v0 }
 0x80e   :  { %2168 = vmatmul.mubr.f32.gmra.mrb[22].mxu0 %v9036_v21  ;;  %2281 = vmatmul.mubr.f32.gmra.mrb[22].mxu1 %v9036_v21  ;;  %v9206_v21 = vpack.c.bf16 %v2402_v55, %v2398_v45  ;;  %v2429_v45 = vld [vmem:[#allocation12 + $0x100] sm:$0xff] }
 0x80f   :  { %2173 = vmatprep.mubr.f32.mxu0 %v8513_v0  ;;  %2286 = vmatprep.mubr.f32.mxu1 %v8513_v0  ;;  %v2433_v55 = vld [vmem:[#allocation12 + $0x120] sm:$0xff] }
 0x810   :  { %6586 = vmatprep.subr.bf16.mxu0 %v9206_v21 }
 0x812   :  { %2174 = vmatmul.mubr.f32.gmra.mrb[24].mxu0 %v9082_v49  ;;  %2287 = vmatmul.mubr.f32.gmra.mrb[24].mxu1 %v9082_v49  ;;  %v2404_v49 = vld [vmem:[#allocation12 + $0x38] sm:$0xff] }
 0x813   :  { %2179 = vmatprep.mubr.f32.mxu0 %v8513_v0  ;;  %2292 = vmatprep.mubr.f32.mxu1 %v8513_v0  ;;  %v9208_v22 = vpack.c.bf16 %v2404_v49, %v2400_v8  ;;  %v2431_v8 = vld [vmem:[#allocation12 + $0x110] sm:$0xff]  ;;  %v9258_v49 = vpack.c.bf16 %v2433_v55, %v2429_v45  ;;  %v2457_v45 = vld [vmem:[#allocation12 + $0x1e0] sm:$0xff]  ;;  %v9292_v55 = vpack.c.bf16 %v2460_v62, %v2456_v48 }
 0x815   :  { %6618 = vmatprep.subr.bf16.mxu1 %v9208_v22 }
 0x816   :  { %2180 = vmatmul.mubr.f32.gmra.mrb[26].mxu0 %v9128_v51  ;;  %2293 = vmatmul.mubr.f32.gmra.mrb[26].mxu1 %v9128_v51  ;;  %v2401_v51 = vld [vmem:[#allocation12 + $0x20] sm:$0xff] }
 0x817   :  { %2185 = vmatprep.mubr.f32.mxu0 %v8513_v0  ;;  %2298 = vmatprep.mubr.f32.mxu1 %v8513_v0  ;;  %v9210_v27 = vpack.c.bf16 %v2401_v51, %v2397_v18  ;;  %v2435_v18 = vld [vmem:[#allocation12 + $0x130] sm:$0xff]  ;;  %v2438_v51 = vld [vmem:[#allocation12 + $0x148] sm:$0xff] }
 0x819   :  { %6588 = vmatpush1.bf16.msra.mxu0 %v9210_v27 }
 0x81a   :  { %2186 = vmatmul.mubr.f32.gmra.mrb[28].mxu0 %v9172_v17  ;;  %2299 = vmatmul.mubr.f32.gmra.mrb[28].mxu1 %v9172_v17  ;;  %v9213_v17 = vpack.c.bf16 %v2403_v12, %v2399_v39  ;;  %v2442_v39 = vld [vmem:[#allocation12 + $0x168] sm:$0xff]  ;;  %v9262_v12 = vpack.c.bf16 %v2435_v18, %v2431_v8  ;;  %v9294_v8 = vpack.c.bf16 %v2457_v45, %v2453_v4  ;;  %v2455_v18 = vld [vmem:[#allocation12 + $0x1d0] sm:$0xff] }
 0x81b   :  { %2191 = vmatprep.mubr.f32.mxu0 %v8513_v0  ;;  %2304 = vmatprep.mubr.f32.mxu1 %v8513_v0  ;;  %v9264_v15 = vpack.c.bf16 %v2442_v39, %v2438_v51  ;;  %v2459_v51 = vld [vmem:[#allocation12 + $0x1f0] sm:$0xff] }
 0x81c   :  { %6620 = vmatpush1.bf16.msra.mxu1 %v9213_v17  ;;  %6590 = vmatprep.subr.bf16.mxu0 %v9218_v38  ;;  %v9297_v39 = vpack.c.bf16 %v2459_v51, %v2455_v18 }
 0x81d   :  { %6622 = vmatprep.subr.bf16.mxu1 %v9220_v30  ;;  %6592 = vmatpush1.bf16.msra.mxu0 %v9222_v43 }
 0x81e   :  { %6594 = vmatprep.subr.bf16.mxu0 %v9230_v7 }
 0x820   :  { %6624 = vmatpush1.bf16.msra.mxu1 %v9225_v33 }
 0x821   :  { %6626 = vmatprep.subr.bf16.mxu1 %v9232_v56  ;;  %6596 = vmatpush1.bf16.msra.mxu0 %v9234_v60 }
 0x822   :  { %6598 = vmatprep.subr.bf16.mxu0 %v9242_v19 }
 0x824   :  { %6628 = vmatpush1.bf16.msra.mxu1 %v9237_v6 }
 0x825   :  { %6630 = vmatprep.subr.bf16.mxu1 %v9244_v32  ;;  %6600 = vmatpush1.bf16.msra.mxu0 %v9246_v36 }
 0x826   :  { %6602 = vmatprep.subr.bf16.mxu0 %v9253_v9 }
 0x828   :  { %6632 = vmatpush1.bf16.msra.mxu1 %v9249_v54 }
 0x829   :  { %6634 = vmatprep.subr.bf16.mxu1 %v9255_v14  ;;  %6604 = vmatpush1.bf16.msra.mxu0 %v9258_v49 }
 0x82a   :  { %6606 = vmatprep.subr.bf16.mxu0 %v9264_v15 }
 0x82c   :  { %6636 = vmatpush1.bf16.msra.mxu1 %v9262_v12 }
 0x82d   :  { %6638 = vmatprep.subr.bf16.mxu1 %v9266_v41  ;;  %6608 = vmatpush1.bf16.msra.mxu0 %v9269_v2 }
 0x82e   :  { %6610 = vmatprep.subr.bf16.mxu0 %v9275_v53 }
 0x830   :  { %6640 = vmatpush1.bf16.msra.mxu1 %v9273_v50 }
 0x831   :  { %6642 = vmatprep.subr.bf16.mxu1 %v9278_v13  ;;  %6612 = vmatpush1.bf16.msra.mxu0 %v9281_v26 }
 0x832   :  { %6614 = vmatprep.subr.bf16.mxu0 %v9290_v58 }
 0x834   :  { %6644 = vmatpush1.bf16.msra.mxu1 %v9285_v29 }
 0x835   :  { %6646 = vmatprep.subr.bf16.mxu1 %v9292_v55  ;;  %6616 = vmatpush1.bf16.msra.mxu0 %v9294_v8 }
 0x836   :  { %6650 = vmatprep.subr.bf16.mxu0 %v9206_v21 }
 0x838   :  { %6648 = vmatpush1.bf16.msra.mxu1 %v9297_v39 }
 0x839   :  { %6682 = vmatprep.subr.bf16.mxu1 %v9208_v22 }
 0x8b5   :  { %v1907_v11 = vpop.f32.mrb[14].mxu0  ;;  %v1978_v20 = vpop.f32.mrb[14].mxu1 }
 0x8b6   :  { %v7711_v5 = vadd.f32 %v1907_v11, %v8876_v35  ;;  %v1909_v28 = vpop.f32.mrb[15].mxu0  ;;  %v1980_v24 = vpop.f32.mrb[15].mxu1  ;;  %v7727_v3 = vadd.f32 %v1978_v20, %v8892_v1 }
 0x8b7   :  { %v7712_v46 = vadd.f32 %v1909_v28, %v8879_v37  ;;  %v7728_v47 = vadd.f32 %v1980_v24, %v8886_v57 }
 0x8b8   :  { %v5841_v61 = vmul.f32 -1.442695, %v7711_v5 }
 0x8b9   :  { %v5842_v52 = vmul.f32 -1.442695, %v7712_v46  ;;  %v5843_v63 = vmul.f32 -1.442695, %v7728_v47 }
 0x8ba   :  { %8017 = vpow2.f32 %v5841_v61 }
 0x8bb   :  { %8019 = vpow2.f32 %v5842_v52 }
 0x8bc   :  { %8021 = vpow2.f32 %v5843_v63 }
 0x8bd   :  { %8023 = vtanh.f32 %v7727_v3 }
 0x8c4   :  { %v8018_v10 = vpop.eup %8017 }
 0x8c5   :  { %v8020_v16 = vpop.eup %8019  ;;  %v1990_v23 = vadd.f32 1.0, %v8018_v10 }
 0x8c6   :  { %v1996_v40 = vadd.f32 1.0, %v8020_v16  ;;  %v8022_v35 = vpop.eup %8021 }
 0x8c7   :  { %8025 = vrcp.f32 %v1990_v23  ;;  %v8024_v44 = vpop.eup %8023  ;;  %v2003_v4 = vadd.f32 1.0, %v8022_v35 }
 0x8c8   :  { %8027 = vrcp.f32 %v1996_v40 }
 0x8c9   :  { %8029 = vrcp.f32 %v2003_v4 }
 0x8d1   :  { %v8026_v37 = vpop.eup %8025 }
 0x8d2   :  { %v8028_v48 = vpop.eup %8027  ;;  %v2007_v62 = vmul.f32 %v8026_v37, %v8024_v44 }
 0x8d3   :  { %v2006_v45 = vmul.f32 %v8028_v48, %v9169_v25  ;;  %v8030_v1 = vpop.eup %8029  ;;  %v2311_v25 = vld [vmem:[%s10117_s6] sm:$0xf] }
 0x8d4   :  { %v9351_v11 = vrot.slane %v2311_v25, %v8868_v31  ;;  %v9354_v20 = vrot.slane %v2311_v25, %v8873_v34  ;;  %v9359_v3 = vrot.slane %v2311_v25, %v8881_v42  ;;  %v9363_v16 = vrot.slane %v2311_v25, %v8888_v59 }
 0x8d5   :  { %v2008_v57 = vadd.f32 %v2007_v62, %v2006_v45 }
 0x8d7   :  { %8031 = vtanh.f32 %v2008_v57 }
 0x8e1   :  { %v8032_v18 = vpop.eup %8031 }
 0x8e2   :  { %v2010_v51 = vmul.f32 %v8032_v18, %v8030_v1 }
 0x8e4   :  { %2192 = vmatmul.mubr.f32.gmra.mrb[30].mxu0 %v2010_v51  ;;  %2305 = vmatmul.mubr.f32.gmra.mrb[30].mxu1 %v2010_v51 }
 0x8e5   :  { %2529 = vmatprep.mubr.f32.mxu0 %v8513_v0  ;;  %2600 = vmatprep.mubr.f32.mxu1 %v8513_v0 }
 0x8e8   :  { %2530 = vmatmul.mubr.f32.vlgmr.msra.gmra.mrb[16].mxu0 %v8513_v0  ;;  %2601 = vmatmul.mubr.f32.vlgmr.msra.gmra.mrb[16].mxu1 %v8513_v0 }
 0x8e9   :  { %6652 = vmatpush1.bf16.msra.mxu0 %v9210_v27  ;;  %6684 = vmatpush1.bf16.msra.mxu1 %v9213_v17 }
 0x8ea   :  { %6654 = vmatprep.subr.bf16.mxu0 %v9218_v38  ;;  %6686 = vmatprep.subr.bf16.mxu1 %v9220_v30 }
 0x8eb   :  { %2704 = vmatprep.mubr.f32.mxu0 %v8513_v0  ;;  %2775 = vmatprep.mubr.f32.mxu1 %v8513_v0 }
 0x8ed   :  { %6656 = vmatpush1.bf16.msra.mxu0 %v9222_v43  ;;  %6688 = vmatpush1.bf16.msra.mxu1 %v9225_v33 }
 0x8ee   :  { %6658 = vmatprep.subr.bf16.mxu0 %v9230_v7  ;;  %6690 = vmatprep.subr.bf16.mxu1 %v9232_v56 }
 0x8f1   :  { %6660 = vmatpush1.bf16.msra.mxu0 %v9234_v60  ;;  %6692 = vmatpush1.bf16.msra.mxu1 %v9237_v6 }
 0x8f2   :  { %6662 = vmatprep.subr.bf16.mxu0 %v9242_v19  ;;  %6694 = vmatprep.subr.bf16.mxu1 %v9244_v32 }
 0x8f5   :  { %6664 = vmatpush1.bf16.msra.mxu0 %v9246_v36  ;;  %6696 = vmatpush1.bf16.msra.mxu1 %v9249_v54 }
 0x8f6   :  { %6666 = vmatprep.subr.bf16.mxu0 %v9253_v9  ;;  %6698 = vmatprep.subr.bf16.mxu1 %v9255_v14 }
 0x8f9   :  { %6668 = vmatpush1.bf16.msra.mxu0 %v9258_v49  ;;  %6700 = vmatpush1.bf16.msra.mxu1 %v9262_v12 }
 0x8fa   :  { %6670 = vmatprep.subr.bf16.mxu0 %v9264_v15  ;;  %6702 = vmatprep.subr.bf16.mxu1 %v9266_v41 }
 0x8fd   :  { %6672 = vmatpush1.bf16.msra.mxu0 %v9269_v2  ;;  %6704 = vmatpush1.bf16.msra.mxu1 %v9273_v50 }
 0x8fe   :  { %6674 = vmatprep.subr.bf16.mxu0 %v9275_v53  ;;  %6706 = vmatprep.subr.bf16.mxu1 %v9278_v13 }
 0x901   :  { %6676 = vmatpush1.bf16.msra.mxu0 %v9281_v26  ;;  %6708 = vmatpush1.bf16.msra.mxu1 %v9285_v29 }
 0x902   :  { %6678 = vmatprep.subr.bf16.mxu0 %v9290_v58  ;;  %6710 = vmatprep.subr.bf16.mxu1 %v9292_v55 }
 0x905   :  { %6680 = vmatpush1.bf16.msra.mxu0 %v9294_v8  ;;  %6712 = vmatpush1.bf16.msra.mxu1 %v9297_v39 }
 0x906   :  { %6714 = vmatprep.subr.bf16.mxu0 %v9206_v21  ;;  %6746 = vmatprep.subr.bf16.mxu1 %v9208_v22 }
 0x9bb   :  { %v2531_v5 = vpop.f32.mrb[16].mxu0  ;;  %v2602_v28 = vpop.f32.mrb[16].mxu1 }
 0x9bc   :  { %v7729_v24 = vadd.f32 %v2531_v5, %v9351_v11  ;;  %v2533_v46 = vpop.f32.mrb[17].mxu0  ;;  %v2604_v61 = vpop.f32.mrb[17].mxu1  ;;  %v7745_v40 = vadd.f32 %v2602_v28, %v9363_v16 }
 0x9bd   :  { %v7730_v52 = vadd.f32 %v2533_v46, %v9354_v20  ;;  %v7746_v10 = vadd.f32 %v2604_v61, %v9359_v3 }
 0x9be   :  { %v5844_v47 = vmul.f32 -1.442695, %v7729_v24 }
 0x9bf   :  { %v5845_v63 = vmul.f32 -1.442695, %v7730_v52  ;;  %v5846_v23 = vmul.f32 -1.442695, %v7746_v10 }
 0x9c0   :  { %8033 = vpow2.f32 %v5844_v47 }
 0x9c1   :  { %8035 = vpow2.f32 %v5845_v63 }
 0x9c2   :  { %8037 = vpow2.f32 %v5846_v23 }
 0x9c3   :  { %8039 = vtanh.f32 %v7745_v40 }
 0x9ca   :  { %v8034_v35 = vpop.eup %8033 }
 0x9cb   :  { %v8036_v44 = vpop.eup %8035  ;;  %v2614_v37 = vadd.f32 1.0, %v8034_v35 }
 0x9cc   :  { %v2620_v48 = vadd.f32 1.0, %v8036_v44  ;;  %v8038_v62 = vpop.eup %8037 }
 0x9cd   :  { %8041 = vrcp.f32 %v2614_v37  ;;  %v8040_v4 = vpop.eup %8039  ;;  %v2627_v18 = vadd.f32 1.0, %v8038_v62 }
 0x9ce   :  { %8043 = vrcp.f32 %v2620_v48 }
 0x9cf   :  { %8045 = vrcp.f32 %v2627_v18 }
 0x9d7   :  { %v8042_v45 = vpop.eup %8041 }
 0x9d8   :  { %v8044_v57 = vpop.eup %8043  ;;  %v2631_v1 = vmul.f32 %v8042_v45, %v8040_v4 }
 0x9d9   :  { %v2630_v51 = vmul.f32 0.0, %v8044_v57  ;;  %v8046_v5 = vpop.eup %8045 }
 0x9db   :  { %v9366_v25 = vadd.f32 %v2631_v1, %v2630_v51 }
 0x9dd   :  { %8047 = vtanh.f32 %v9366_v25 }
 0x9e7   :  { %v8048_v28 = vpop.eup %8047 }
 0x9e8   :  { %v9369_v24 = vmul.f32 %v8048_v28, %v8046_v5 }
 0x9ea   :  { %2705 = vmatmul.mubr.f32.vlgmr.msra.gmra.mrb[18].mxu0 %v9369_v24  ;;  %2776 = vmatmul.mubr.f32.vlgmr.msra.gmra.mrb[18].mxu1 %v9369_v24 }
 0x9eb   :  { %6716 = vmatpush1.bf16.msra.mxu0 %v9210_v27  ;;  %6748 = vmatpush1.bf16.msra.mxu1 %v9213_v17 }
 0x9ec   :  { %6718 = vmatprep.subr.bf16.mxu0 %v9218_v38  ;;  %6750 = vmatprep.subr.bf16.mxu1 %v9220_v30 }
 0x9ed   :  { %2879 = vmatprep.mubr.f32.mxu0 %v8513_v0  ;;  %2950 = vmatprep.mubr.f32.mxu1 %v8513_v0 }
 0x9ef   :  { %6720 = vmatpush1.bf16.msra.mxu0 %v9222_v43  ;;  %6752 = vmatpush1.bf16.msra.mxu1 %v9225_v33 }
 0x9f0   :  { %6722 = vmatprep.subr.bf16.mxu0 %v9230_v7  ;;  %6754 = vmatprep.subr.bf16.mxu1 %v9232_v56 }
 0x9f3   :  { %6724 = vmatpush1.bf16.msra.mxu0 %v9234_v60  ;;  %6756 = vmatpush1.bf16.msra.mxu1 %v9237_v6 }
 0x9f4   :  { %6726 = vmatprep.subr.bf16.mxu0 %v9242_v19  ;;  %6758 = vmatprep.subr.bf16.mxu1 %v9244_v32 }
 0x9f7   :  { %6728 = vmatpush1.bf16.msra.mxu0 %v9246_v36  ;;  %6760 = vmatpush1.bf16.msra.mxu1 %v9249_v54 }
 0x9f8   :  { %6730 = vmatprep.subr.bf16.mxu0 %v9253_v9  ;;  %6762 = vmatprep.subr.bf16.mxu1 %v9255_v14 }
 0x9fb   :  { %6732 = vmatpush1.bf16.msra.mxu0 %v9258_v49  ;;  %6764 = vmatpush1.bf16.msra.mxu1 %v9262_v12 }
 0x9fc   :  { %6734 = vmatprep.subr.bf16.mxu0 %v9264_v15  ;;  %6766 = vmatprep.subr.bf16.mxu1 %v9266_v41 }
 0x9ff   :  { %6736 = vmatpush1.bf16.msra.mxu0 %v9269_v2  ;;  %6768 = vmatpush1.bf16.msra.mxu1 %v9273_v50 }
 0xa00   :  { %6738 = vmatprep.subr.bf16.mxu0 %v9275_v53  ;;  %6770 = vmatprep.subr.bf16.mxu1 %v9278_v13 }
 0xa03   :  { %6740 = vmatpush1.bf16.msra.mxu0 %v9281_v26  ;;  %6772 = vmatpush1.bf16.msra.mxu1 %v9285_v29 }
 0xa04   :  { %6742 = vmatprep.subr.bf16.mxu0 %v9290_v58  ;;  %6774 = vmatprep.subr.bf16.mxu1 %v9292_v55 }
 0xa07   :  { %6744 = vmatpush1.bf16.msra.mxu0 %v9294_v8  ;;  %6776 = vmatpush1.bf16.msra.mxu1 %v9297_v39 }
 0xa08   :  { %6778 = vmatprep.subr.bf16.mxu0 %v9206_v21  ;;  %6810 = vmatprep.subr.bf16.mxu1 %v9208_v22 }
 0xabd   :  { %v2706_v46 = vpop.f32.mrb[18].mxu0  ;;  %v2777_v61 = vpop.f32.mrb[18].mxu1 }
 0xabe   :  { %v7731_v52 = vadd.f32 %v2706_v46, %v9351_v11  ;;  %v2708_v47 = vpop.f32.mrb[19].mxu0  ;;  %v2779_v63 = vpop.f32.mrb[19].mxu1  ;;  %v7747_v37 = vadd.f32 %v2777_v61, %v9363_v16 }
 0xabf   :  { %v7732_v10 = vadd.f32 %v2708_v47, %v9354_v20  ;;  %v7748_v35 = vadd.f32 %v2779_v63, %v9359_v3 }
 0xac0   :  { %v5847_v23 = vmul.f32 -1.442695, %v7731_v52 }
 0xac1   :  { %v5848_v40 = vmul.f32 -1.442695, %v7732_v10  ;;  %v5849_v44 = vmul.f32 -1.442695, %v7748_v35 }
 0xac2   :  { %8049 = vpow2.f32 %v5847_v23 }
 0xac3   :  { %8051 = vpow2.f32 %v5848_v40 }
 0xac4   :  { %8053 = vpow2.f32 %v5849_v44 }
 0xac5   :  { %8055 = vtanh.f32 %v7747_v37 }
 0xacc   :  { %v8050_v48 = vpop.eup %8049 }
 0xacd   :  { %v8052_v62 = vpop.eup %8051  ;;  %v2789_v4 = vadd.f32 1.0, %v8050_v48 }
 0xace   :  { %v2795_v45 = vadd.f32 1.0, %v8052_v62  ;;  %v8054_v57 = vpop.eup %8053 }
 0xacf   :  { %8057 = vrcp.f32 %v2789_v4  ;;  %v8056_v1 = vpop.eup %8055  ;;  %v2802_v28 = vadd.f32 1.0, %v8054_v57 }
 0xad0   :  { %8059 = vrcp.f32 %v2795_v45 }
 0xad1   :  { %8061 = vrcp.f32 %v2802_v28 }
 0xad9   :  { %v8058_v18 = vpop.eup %8057 }
 0xada   :  { %v8060_v51 = vpop.eup %8059  ;;  %v2806_v5 = vmul.f32 %v8058_v18, %v8056_v1 }
 0xadb   :  { %v2805_v46 = vmul.f32 %v8060_v51, %v9366_v25  ;;  %v8062_v61 = vpop.eup %8061 }
 0xadd   :  { %v9412_v52 = vadd.f32 %v2806_v5, %v2805_v46 }
 0xadf   :  { %8063 = vtanh.f32 %v9412_v52 }
 0xae9   :  { %v8064_v47 = vpop.eup %8063 }
 0xaea   :  { %v9415_v63 = vmul.f32 %v8064_v47, %v8062_v61 }
 0xaec   :  { %2880 = vmatmul.mubr.f32.vlgmr.msra.gmra.mrb[20].mxu0 %v9415_v63  ;;  %2951 = vmatmul.mubr.f32.vlgmr.msra.gmra.mrb[20].mxu1 %v9415_v63 }
 0xaed   :  { %6780 = vmatpush1.bf16.msra.mxu0 %v9210_v27  ;;  %6812 = vmatpush1.bf16.msra.mxu1 %v9213_v17 }
 0xaee   :  { %6782 = vmatprep.subr.bf16.mxu0 %v9218_v38  ;;  %6814 = vmatprep.subr.bf16.mxu1 %v9220_v30 }
 0xaef   :  { %3054 = vmatprep.mubr.f32.mxu0 %v8513_v0  ;;  %3125 = vmatprep.mubr.f32.mxu1 %v8513_v0 }
 0xaf1   :  { %6784 = vmatpush1.bf16.msra.mxu0 %v9222_v43  ;;  %6816 = vmatpush1.bf16.msra.mxu1 %v9225_v33 }
 0xaf2   :  { %6786 = vmatprep.subr.bf16.mxu0 %v9230_v7  ;;  %6818 = vmatprep.subr.bf16.mxu1 %v9232_v56 }
 0xaf5   :  { %6788 = vmatpush1.bf16.msra.mxu0 %v9234_v60  ;;  %6820 = vmatpush1.bf16.msra.mxu1 %v9237_v6 }
 0xaf6   :  { %6790 = vmatprep.subr.bf16.mxu0 %v9242_v19  ;;  %6822 = vmatprep.subr.bf16.mxu1 %v9244_v32 }
 0xaf9   :  { %6792 = vmatpush1.bf16.msra.mxu0 %v9246_v36  ;;  %6824 = vmatpush1.bf16.msra.mxu1 %v9249_v54 }
 0xafa   :  { %6794 = vmatprep.subr.bf16.mxu0 %v9253_v9  ;;  %6826 = vmatprep.subr.bf16.mxu1 %v9255_v14 }
 0xafd   :  { %6796 = vmatpush1.bf16.msra.mxu0 %v9258_v49  ;;  %6828 = vmatpush1.bf16.msra.mxu1 %v9262_v12 }
 0xafe   :  { %6798 = vmatprep.subr.bf16.mxu0 %v9264_v15  ;;  %6830 = vmatprep.subr.bf16.mxu1 %v9266_v41 }
 0xb01   :  { %6800 = vmatpush1.bf16.msra.mxu0 %v9269_v2  ;;  %6832 = vmatpush1.bf16.msra.mxu1 %v9273_v50 }
 0xb02   :  { %6802 = vmatprep.subr.bf16.mxu0 %v9275_v53  ;;  %6834 = vmatprep.subr.bf16.mxu1 %v9278_v13 }
 0xb05   :  { %6804 = vmatpush1.bf16.msra.mxu0 %v9281_v26  ;;  %6836 = vmatpush1.bf16.msra.mxu1 %v9285_v29 }
 0xb06   :  { %6806 = vmatprep.subr.bf16.mxu0 %v9290_v58  ;;  %6838 = vmatprep.subr.bf16.mxu1 %v9292_v55 }
 0xb09   :  { %6808 = vmatpush1.bf16.msra.mxu0 %v9294_v8  ;;  %6840 = vmatpush1.bf16.msra.mxu1 %v9297_v39 }
 0xb0a   :  { %6842 = vmatprep.subr.bf16.mxu0 %v9206_v21  ;;  %6874 = vmatprep.subr.bf16.mxu1 %v9208_v22 }
 0xbbf   :  { %v2881_v25 = vpop.f32.mrb[20].mxu0  ;;  %v2952_v10 = vpop.f32.mrb[20].mxu1 }
 0xbc0   :  { %v7733_v23 = vadd.f32 %v2881_v25, %v9351_v11  ;;  %v2883_v40 = vpop.f32.mrb[21].mxu0  ;;  %v2954_v35 = vpop.f32.mrb[21].mxu1  ;;  %v7749_v45 = vadd.f32 %v2952_v10, %v9363_v16 }
 0xbc1   :  { %v7734_v44 = vadd.f32 %v2883_v40, %v9354_v20  ;;  %v7750_v62 = vadd.f32 %v2954_v35, %v9359_v3 }
 0xbc2   :  { %v5850_v37 = vmul.f32 -1.442695, %v7733_v23 }
 0xbc3   :  { %v5851_v48 = vmul.f32 -1.442695, %v7734_v44  ;;  %v5852_v4 = vmul.f32 -1.442695, %v7750_v62 }
 0xbc4   :  { %8065 = vpow2.f32 %v5850_v37 }
 0xbc5   :  { %8067 = vpow2.f32 %v5851_v48 }
 0xbc6   :  { %8069 = vpow2.f32 %v5852_v4 }
 0xbc7   :  { %8071 = vtanh.f32 %v7749_v45 }
 0xbce   :  { %v8066_v57 = vpop.eup %8065 }
 0xbcf   :  { %v8068_v1 = vpop.eup %8067  ;;  %v2964_v18 = vadd.f32 1.0, %v8066_v57 }
 0xbd0   :  { %v2970_v51 = vadd.f32 1.0, %v8068_v1  ;;  %v8070_v5 = vpop.eup %8069 }
 0xbd1   :  { %8073 = vrcp.f32 %v2964_v18  ;;  %v8072_v28 = vpop.eup %8071  ;;  %v2977_v25 = vadd.f32 1.0, %v8070_v5 }
 0xbd2   :  { %8075 = vrcp.f32 %v2970_v51 }
 0xbd3   :  { %8077 = vrcp.f32 %v2977_v25 }
 0xbdb   :  { %v8074_v46 = vpop.eup %8073 }
 0xbdc   :  { %v8076_v61 = vpop.eup %8075  ;;  %v2981_v47 = vmul.f32 %v8074_v46, %v8072_v28 }
 0xbdd   :  { %v2980_v23 = vmul.f32 %v8076_v61, %v9412_v52  ;;  %v8078_v10 = vpop.eup %8077 }
 0xbdf   :  { %v9458_v40 = vadd.f32 %v2981_v47, %v2980_v23 }
 0xbe1   :  { %8079 = vtanh.f32 %v9458_v40 }
 0xbeb   :  { %v8080_v35 = vpop.eup %8079 }
 0xbec   :  { %v9461_v44 = vmul.f32 %v8080_v35, %v8078_v10 }
 0xbee   :  { %3055 = vmatmul.mubr.f32.vlgmr.msra.gmra.mrb[22].mxu0 %v9461_v44  ;;  %3126 = vmatmul.mubr.f32.vlgmr.msra.gmra.mrb[22].mxu1 %v9461_v44 }
 0xbef   :  { %6844 = vmatpush1.bf16.msra.mxu0 %v9210_v27  ;;  %6876 = vmatpush1.bf16.msra.mxu1 %v9213_v17 }
 0xbf0   :  { %6846 = vmatprep.subr.bf16.mxu0 %v9218_v38  ;;  %6878 = vmatprep.subr.bf16.mxu1 %v9220_v30 }
 0xbf1   :  { %3229 = vmatprep.mubr.f32.mxu0 %v8513_v0  ;;  %3300 = vmatprep.mubr.f32.mxu1 %v8513_v0 }
 0xbf3   :  { %6848 = vmatpush1.bf16.msra.mxu0 %v9222_v43  ;;  %6880 = vmatpush1.bf16.msra.mxu1 %v9225_v33 }
 0xbf4   :  { %6850 = vmatprep.subr.bf16.mxu0 %v9230_v7  ;;  %6882 = vmatprep.subr.bf16.mxu1 %v9232_v56 }
 0xbf7   :  { %6852 = vmatpush1.bf16.msra.mxu0 %v9234_v60  ;;  %6884 = vmatpush1.bf16.msra.mxu1 %v9237_v6 }
 0xbf8   :  { %6854 = vmatprep.subr.bf16.mxu0 %v9242_v19  ;;  %6886 = vmatprep.subr.bf16.mxu1 %v9244_v32 }
 0xbfb   :  { %6856 = vmatpush1.bf16.msra.mxu0 %v9246_v36  ;;  %6888 = vmatpush1.bf16.msra.mxu1 %v9249_v54 }
 0xbfc   :  { %6858 = vmatprep.subr.bf16.mxu0 %v9253_v9  ;;  %6890 = vmatprep.subr.bf16.mxu1 %v9255_v14 }
 0xbff   :  { %6860 = vmatpush1.bf16.msra.mxu0 %v9258_v49  ;;  %6892 = vmatpush1.bf16.msra.mxu1 %v9262_v12 }
 0xc00   :  { %6862 = vmatprep.subr.bf16.mxu0 %v9264_v15  ;;  %6894 = vmatprep.subr.bf16.mxu1 %v9266_v41 }
 0xc03   :  { %6864 = vmatpush1.bf16.msra.mxu0 %v9269_v2  ;;  %6896 = vmatpush1.bf16.msra.mxu1 %v9273_v50 }
 0xc04   :  { %6866 = vmatprep.subr.bf16.mxu0 %v9275_v53  ;;  %6898 = vmatprep.subr.bf16.mxu1 %v9278_v13 }
 0xc07   :  { %6868 = vmatpush1.bf16.msra.mxu0 %v9281_v26  ;;  %6900 = vmatpush1.bf16.msra.mxu1 %v9285_v29 }
 0xc08   :  { %6870 = vmatprep.subr.bf16.mxu0 %v9290_v58  ;;  %6902 = vmatprep.subr.bf16.mxu1 %v9292_v55 }
 0xc0b   :  { %6872 = vmatpush1.bf16.msra.mxu0 %v9294_v8  ;;  %6904 = vmatpush1.bf16.msra.mxu1 %v9297_v39 }
 0xc0c   :  { %6906 = vmatprep.subr.bf16.mxu0 %v9206_v21  ;;  %6938 = vmatprep.subr.bf16.mxu1 %v9208_v22 }
 0xcc1   :  { %v3056_v52 = vpop.f32.mrb[22].mxu0  ;;  %v3127_v37 = vpop.f32.mrb[22].mxu1 }
 0xcc2   :  { %v7735_v48 = vadd.f32 %v3056_v52, %v9351_v11  ;;  %v3058_v62 = vpop.f32.mrb[23].mxu0  ;;  %v3129_v4 = vpop.f32.mrb[23].mxu1  ;;  %v7751_v5 = vadd.f32 %v3127_v37, %v9363_v16 }
 0xcc3   :  { %v7736_v45 = vadd.f32 %v3058_v62, %v9354_v20  ;;  %v7752_v18 = vadd.f32 %v3129_v4, %v9359_v3 }
 0xcc4   :  { %v5853_v57 = vmul.f32 -1.442695, %v7735_v48 }
 0xcc5   :  { %v5854_v1 = vmul.f32 -1.442695, %v7736_v45  ;;  %v5855_v51 = vmul.f32 -1.442695, %v7752_v18 }
 0xcc6   :  { %8081 = vpow2.f32 %v5853_v57 }
 0xcc7   :  { %8083 = vpow2.f32 %v5854_v1 }
 0xcc8   :  { %8085 = vpow2.f32 %v5855_v51 }
 0xcc9   :  { %8087 = vtanh.f32 %v7751_v5 }
 0xcd0   :  { %v8082_v28 = vpop.eup %8081 }
 0xcd1   :  { %v8084_v46 = vpop.eup %8083  ;;  %v3139_v61 = vadd.f32 1.0, %v8082_v28 }
 0xcd2   :  { %v3145_v47 = vadd.f32 1.0, %v8084_v46  ;;  %v8086_v25 = vpop.eup %8085 }
 0xcd3   :  { %8089 = vrcp.f32 %v3139_v61  ;;  %v8088_v23 = vpop.eup %8087  ;;  %v3152_v48 = vadd.f32 1.0, %v8086_v25 }
 0xcd4   :  { %8091 = vrcp.f32 %v3145_v47 }
 0xcd5   :  { %8093 = vrcp.f32 %v3152_v48 }
 0xcdd   :  { %v8090_v10 = vpop.eup %8089 }
 0xcde   :  { %v8092_v35 = vpop.eup %8091  ;;  %v3156_v52 = vmul.f32 %v8090_v10, %v8088_v23 }
 0xcdf   :  { %v3155_v62 = vmul.f32 %v8092_v35, %v9458_v40  ;;  %v8094_v37 = vpop.eup %8093 }
 0xce1   :  { %v9504_v4 = vadd.f32 %v3156_v52, %v3155_v62 }
 0xce3   :  { %8095 = vtanh.f32 %v9504_v4 }
 0xced   :  { %v8096_v45 = vpop.eup %8095 }
 0xcee   :  { %v9507_v57 = vmul.f32 %v8096_v45, %v8094_v37 }
 0xcf0   :  { %3230 = vmatmul.mubr.f32.vlgmr.msra.gmra.mrb[24].mxu0 %v9507_v57  ;;  %3301 = vmatmul.mubr.f32.vlgmr.msra.gmra.mrb[24].mxu1 %v9507_v57 }
 0xcf1   :  { %6908 = vmatpush1.bf16.msra.mxu0 %v9210_v27  ;;  %6940 = vmatpush1.bf16.msra.mxu1 %v9213_v17 }
 0xcf2   :  { %6910 = vmatprep.subr.bf16.mxu0 %v9218_v38  ;;  %6942 = vmatprep.subr.bf16.mxu1 %v9220_v30 }
 0xcf3   :  { %3404 = vmatprep.mubr.f32.mxu0 %v8513_v0  ;;  %3475 = vmatprep.mubr.f32.mxu1 %v8513_v0 }
 0xcf5   :  { %6912 = vmatpush1.bf16.msra.mxu0 %v9222_v43  ;;  %6944 = vmatpush1.bf16.msra.mxu1 %v9225_v33 }
 0xcf6   :  { %6914 = vmatprep.subr.bf16.mxu0 %v9230_v7  ;;  %6946 = vmatprep.subr.bf16.mxu1 %v9232_v56 }
 0xcf9   :  { %6916 = vmatpush1.bf16.msra.mxu0 %v9234_v60  ;;  %6948 = vmatpush1.bf16.msra.mxu1 %v9237_v6 }
 0xcfa   :  { %6918 = vmatprep.subr.bf16.mxu0 %v9242_v19  ;;  %6950 = vmatprep.subr.bf16.mxu1 %v9244_v32 }
 0xcfd   :  { %6920 = vmatpush1.bf16.msra.mxu0 %v9246_v36  ;;  %6952 = vmatpush1.bf16.msra.mxu1 %v9249_v54 }
 0xcfe   :  { %6922 = vmatprep.subr.bf16.mxu0 %v9253_v9  ;;  %6954 = vmatprep.subr.bf16.mxu1 %v9255_v14 }
 0xd01   :  { %6924 = vmatpush1.bf16.msra.mxu0 %v9258_v49  ;;  %6956 = vmatpush1.bf16.msra.mxu1 %v9262_v12 }
 0xd02   :  { %6926 = vmatprep.subr.bf16.mxu0 %v9264_v15  ;;  %6958 = vmatprep.subr.bf16.mxu1 %v9266_v41 }
 0xd05   :  { %6928 = vmatpush1.bf16.msra.mxu0 %v9269_v2  ;;  %6960 = vmatpush1.bf16.msra.mxu1 %v9273_v50 }
 0xd06   :  { %6930 = vmatprep.subr.bf16.mxu0 %v9275_v53  ;;  %6962 = vmatprep.subr.bf16.mxu1 %v9278_v13 }
 0xd09   :  { %6932 = vmatpush1.bf16.msra.mxu0 %v9281_v26  ;;  %6964 = vmatpush1.bf16.msra.mxu1 %v9285_v29 }
 0xd0a   :  { %6934 = vmatprep.subr.bf16.mxu0 %v9290_v58  ;;  %6966 = vmatprep.subr.bf16.mxu1 %v9292_v55 }
 0xd0d   :  { %6936 = vmatpush1.bf16.msra.mxu0 %v9294_v8  ;;  %6968 = vmatpush1.bf16.msra.mxu1 %v9297_v39 }
 0xd0e   :  { %6970 = vmatprep.subr.bf16.mxu0 %v9206_v21  ;;  %7002 = vmatprep.subr.bf16.mxu1 %v9208_v22 }
 0xdc3   :  { %v3231_v40 = vpop.f32.mrb[24].mxu0  ;;  %v3302_v1 = vpop.f32.mrb[24].mxu1 }
 0xdc4   :  { %v7737_v18 = vadd.f32 %v3231_v40, %v9351_v11  ;;  %v3233_v51 = vpop.f32.mrb[25].mxu0  ;;  %v3304_v5 = vpop.f32.mrb[25].mxu1  ;;  %v7753_v23 = vadd.f32 %v3302_v1, %v9363_v16 }
 0xdc5   :  { %v7738_v28 = vadd.f32 %v3233_v51, %v9354_v20  ;;  %v7754_v47 = vadd.f32 %v3304_v5, %v9359_v3 }
 0xdc6   :  { %v5856_v46 = vmul.f32 -1.442695, %v7737_v18 }
 0xdc7   :  { %v5857_v61 = vmul.f32 -1.442695, %v7738_v28  ;;  %v5858_v25 = vmul.f32 -1.442695, %v7754_v47 }
 0xdc8   :  { %8097 = vpow2.f32 %v5856_v46 }
 0xdc9   :  { %8099 = vpow2.f32 %v5857_v61 }
 0xdca   :  { %8101 = vpow2.f32 %v5858_v25 }
 0xdcb   :  { %8103 = vtanh.f32 %v7753_v23 }
 0xdd2   :  { %v8098_v10 = vpop.eup %8097 }
 0xdd3   :  { %v8100_v35 = vpop.eup %8099  ;;  %v3314_v52 = vadd.f32 1.0, %v8098_v10 }
 0xdd4   :  { %v3320_v48 = vadd.f32 1.0, %v8100_v35  ;;  %v8102_v62 = vpop.eup %8101 }
 0xdd5   :  { %8105 = vrcp.f32 %v3314_v52  ;;  %v8104_v37 = vpop.eup %8103  ;;  %v3327_v51 = vadd.f32 1.0, %v8102_v62 }
 0xdd6   :  { %8107 = vrcp.f32 %v3320_v48 }
 0xdd7   :  { %8109 = vrcp.f32 %v3327_v51 }
 0xddf   :  { %v8106_v45 = vpop.eup %8105 }
 0xde0   :  { %v8108_v40 = vpop.eup %8107  ;;  %v3331_v18 = vmul.f32 %v8106_v45, %v8104_v37 }
 0xde1   :  { %v3330_v28 = vmul.f32 %v8108_v40, %v9504_v4  ;;  %v8110_v1 = vpop.eup %8109 }
 0xde3   :  { %v9550_v5 = vadd.f32 %v3331_v18, %v3330_v28 }
 0xde5   :  { %8111 = vtanh.f32 %v9550_v5 }
 0xdef   :  { %v8112_v46 = vpop.eup %8111 }
 0xdf0   :  { %v9553_v61 = vmul.f32 %v8112_v46, %v8110_v1 }
 0xdf2   :  { %3405 = vmatmul.mubr.f32.vlgmr.msra.gmra.mrb[26].mxu0 %v9553_v61  ;;  %3476 = vmatmul.mubr.f32.vlgmr.msra.gmra.mrb[26].mxu1 %v9553_v61 }
 0xdf3   :  { %6972 = vmatpush1.bf16.msra.mxu0 %v9210_v27  ;;  %7004 = vmatpush1.bf16.msra.mxu1 %v9213_v17 }
 0xdf4   :  { %6974 = vmatprep.subr.bf16.mxu0 %v9218_v38  ;;  %7006 = vmatprep.subr.bf16.mxu1 %v9220_v30 }
 0xdf5   :  { %3579 = vmatprep.mubr.f32.mxu0 %v8513_v0  ;;  %3650 = vmatprep.mubr.f32.mxu1 %v8513_v0 }
 0xdf7   :  { %6976 = vmatpush1.bf16.msra.mxu0 %v9222_v43  ;;  %7008 = vmatpush1.bf16.msra.mxu1 %v9225_v33 }
 0xdf8   :  { %6978 = vmatprep.subr.bf16.mxu0 %v9230_v7  ;;  %7010 = vmatprep.subr.bf16.mxu1 %v9232_v56 }
 0xdfb   :  { %6980 = vmatpush1.bf16.msra.mxu0 %v9234_v60  ;;  %7012 = vmatpush1.bf16.msra.mxu1 %v9237_v6 }
 0xdfc   :  { %6982 = vmatprep.subr.bf16.mxu0 %v9242_v19  ;;  %7014 = vmatprep.subr.bf16.mxu1 %v9244_v32 }
 0xdff   :  { %6984 = vmatpush1.bf16.msra.mxu0 %v9246_v36  ;;  %7016 = vmatpush1.bf16.msra.mxu1 %v9249_v54 }
 0xe00   :  { %6986 = vmatprep.subr.bf16.mxu0 %v9253_v9  ;;  %7018 = vmatprep.subr.bf16.mxu1 %v9255_v14 }
 0xe03   :  { %6988 = vmatpush1.bf16.msra.mxu0 %v9258_v49  ;;  %7020 = vmatpush1.bf16.msra.mxu1 %v9262_v12 }
 0xe04   :  { %6990 = vmatprep.subr.bf16.mxu0 %v9264_v15  ;;  %7022 = vmatprep.subr.bf16.mxu1 %v9266_v41 }
 0xe07   :  { %6992 = vmatpush1.bf16.msra.mxu0 %v9269_v2  ;;  %7024 = vmatpush1.bf16.msra.mxu1 %v9273_v50 }
 0xe08   :  { %6994 = vmatprep.subr.bf16.mxu0 %v9275_v53  ;;  %7026 = vmatprep.subr.bf16.mxu1 %v9278_v13 }
 0xe0b   :  { %6996 = vmatpush1.bf16.msra.mxu0 %v9281_v26  ;;  %7028 = vmatpush1.bf16.msra.mxu1 %v9285_v29 }
 0xe0c   :  { %6998 = vmatprep.subr.bf16.mxu0 %v9290_v58  ;;  %7030 = vmatprep.subr.bf16.mxu1 %v9292_v55 }
 0xe0f   :  { %7000 = vmatpush1.bf16.msra.mxu0 %v9294_v8  ;;  %7032 = vmatpush1.bf16.msra.mxu1 %v9297_v39 }
 0xe10   :  { %7034 = vmatprep.subr.bf16.mxu0 %v9206_v21  ;;  %7066 = vmatprep.subr.bf16.mxu1 %v9208_v22 }
 0xec5   :  { %v3406_v4 = vpop.f32.mrb[26].mxu0  ;;  %v3477_v47 = vpop.f32.mrb[26].mxu1 }
 0xec6   :  { %v7739_v25 = vadd.f32 %v3406_v4, %v9351_v11  ;;  %v3408_v23 = vpop.f32.mrb[27].mxu0  ;;  %v3479_v10 = vpop.f32.mrb[27].mxu1  ;;  %v7755_v45 = vadd.f32 %v3477_v47, %v9363_v16 }
 0xec7   :  { %v7740_v35 = vadd.f32 %v3408_v23, %v9354_v20  ;;  %v7756_v62 = vadd.f32 %v3479_v10, %v9359_v3 }
 0xec8   :  { %v5859_v52 = vmul.f32 -1.442695, %v7739_v25 }
 0xec9   :  { %v5860_v48 = vmul.f32 -1.442695, %v7740_v35  ;;  %v5861_v37 = vmul.f32 -1.442695, %v7756_v62  ;;  %v3875_v62 = vld [vmem:[#allocation13 + $0x30] sm:$0xff] }
 0xeca   :  { %8113 = vpow2.f32 %v5859_v52 }
 0xecb   :  { %8115 = vpow2.f32 %v5860_v48  ;;  %v3871_v48 = vld [vmem:[#allocation13 + $0x10] sm:$0xff] }
 0xecc   :  { %8117 = vpow2.f32 %v5861_v37  ;;  %v3878_v37 = vld [vmem:[#allocation13 + $0x48] sm:$0xff] }
 0xecd   :  { %8119 = vtanh.f32 %v7755_v45  ;;  %v3882_v45 = vld [vmem:[#allocation13 + $0x68] sm:$0xff] }
 0xed4   :  { %v8114_v21 = vpop.eup %8113 }
 0xed5   :  { %v8116_v40 = vpop.eup %8115  ;;  %v3489_v22 = vadd.f32 1.0, %v8114_v21  ;;  %v3880_v21 = vld [vmem:[#allocation13 + $0x58] sm:$0xff] }
 0xed6   :  { %v3495_v18 = vadd.f32 1.0, %v8116_v40  ;;  %v8118_v51 = vpop.eup %8117  ;;  %v3884_v40 = vld [vmem:[#allocation13 + $0x78] sm:$0xff] }
 0xed7   :  { %8121 = vrcp.f32 %v3489_v22  ;;  %v8120_v28 = vpop.eup %8119  ;;  %v3502_v25 = vadd.f32 1.0, %v8118_v51 }
 0xed8   :  { %8123 = vrcp.f32 %v3495_v18 }
 0xed9   :  { %8125 = vrcp.f32 %v3502_v25  ;;  %v7101_v25 = vpack.c.bf16 %v3882_v45, %v3878_v37  ;;  %v3903_v45 = vld [vmem:[#allocation13 + $0x110] sm:$0xff] }
 0xee1   :  { %v8122_v1 = vpop.eup %8121 }
 0xee2   :  { %v8124_v46 = vpop.eup %8123  ;;  %v3506_v4 = vmul.f32 %v8122_v1, %v8120_v28  ;;  %v7131_v28 = vpack.c.bf16 %v3875_v62, %v3871_v48  ;;  %v3877_v1 = vld [vmem:[#allocation13 + $0x40] sm:$0xff] }
 0xee3   :  { %v3505_v23 = vmul.f32 %v8124_v46, %v9550_v5  ;;  %v8126_v47 = vpop.eup %8125  ;;  %v3873_v5 = vld [vmem:[#allocation13 + $0x20] sm:$0xff] }
 0xee4   :  { %v3881_v46 = vld [vmem:[#allocation13 + $0x60] sm:$0xff] }
 0xee5   :  { %v9596_v10 = vadd.f32 %v3506_v4, %v3505_v23  ;;  %v7133_v23 = vpack.c.bf16 %v3884_v40, %v3880_v21  ;;  %v3905_v48 = vld [vmem:[#allocation13 + $0x120] sm:$0xff]  ;;  %v3907_v21 = vld [vmem:[#allocation13 + $0x130] sm:$0xff]  ;;  %v3910_v40 = vld [vmem:[#allocation13 + $0x148] sm:$0xff] }
 0xee7   :  { %8127 = vtanh.f32 %v9596_v10 }
 0xef1   :  { %v8128_v35 = vpop.eup %8127 }
 0xef2   :  { %v9599_v52 = vmul.f32 %v8128_v35, %v8126_v47  ;;  %v3883_v47 = vld [vmem:[#allocation13 + $0x70] sm:$0xff]  ;;  %v3886_v35 = vld [vmem:[#allocation13 + $0x88] sm:$0xff] }
 0xef4   :  { %3580 = vmatmul.mubr.f32.vlgmr.msra.gmra.mrb[28].mxu0 %v9599_v52  ;;  %3651 = vmatmul.mubr.f32.vlgmr.msra.gmra.mrb[28].mxu1 %v9599_v52 }
 0xef5   :  { %7036 = vmatpush1.bf16.msra.mxu0 %v9210_v27  ;;  %7068 = vmatpush1.bf16.msra.mxu1 %v9213_v17  ;;  %v3870_v27 = vld [vmem:[#allocation13 + $0x8] sm:$0xff] }
 0xef6   :  { %7038 = vmatprep.subr.bf16.mxu0 %v9218_v38  ;;  %7070 = vmatprep.subr.bf16.mxu1 %v9220_v30  ;;  %v3874_v17 = vld [vmem:[#allocation13 + $0x28] sm:$0xff]  ;;  %v3872_v38 = vld [vmem:[#allocation13 + $0x18] sm:$0xff] }
 0xef7   :  { %3754 = vmatprep.mubr.f32.mxu0 %v8513_v0  ;;  %3825 = vmatprep.mubr.f32.mxu1 %v8513_v0  ;;  %v7097_v30 = vpack.c.bf16 %v3874_v17, %v3870_v27  ;;  %v3890_v27 = vld [vmem:[#allocation13 + $0xa8] sm:$0xff]  ;;  %v3888_v17 = vld [vmem:[#allocation13 + $0x98] sm:$0xff] }
 0xef9   :  { %7040 = vmatpush1.bf16.msra.mxu0 %v9222_v43  ;;  %7072 = vmatpush1.bf16.msra.mxu1 %v9225_v33  ;;  %v3876_v43 = vld [vmem:[#allocation13 + $0x38] sm:$0xff] }
 0xefa   :  { %7042 = vmatprep.subr.bf16.mxu0 %v9230_v7  ;;  %7074 = vmatprep.subr.bf16.mxu1 %v9232_v56  ;;  %v7129_v33 = vpack.c.bf16 %v3876_v43, %v3872_v38  ;;  %v3892_v38 = vld [vmem:[#allocation13 + $0xb8] sm:$0xff] }
 0xefd   :  { %7044 = vmatpush1.bf16.msra.mxu0 %v9234_v60  ;;  %7076 = vmatpush1.bf16.msra.mxu1 %v9237_v6 }
 0xefe   :  { %7046 = vmatprep.subr.bf16.mxu0 %v9242_v19  ;;  %7078 = vmatprep.subr.bf16.mxu1 %v9244_v32 }
 0xf01   :  { %7048 = vmatpush1.bf16.msra.mxu0 %v9246_v36  ;;  %7080 = vmatpush1.bf16.msra.mxu1 %v9249_v54 }
 0xf02   :  { %7050 = vmatprep.subr.bf16.mxu0 %v9253_v9  ;;  %7082 = vmatprep.subr.bf16.mxu1 %v9255_v14 }
 0xf05   :  { %7052 = vmatpush1.bf16.msra.mxu0 %v9258_v49  ;;  %7084 = vmatpush1.bf16.msra.mxu1 %v9262_v12 }
 0xf06   :  { %7054 = vmatprep.subr.bf16.mxu0 %v9264_v15  ;;  %7086 = vmatprep.subr.bf16.mxu1 %v9266_v41 }
 0xf09   :  { %7056 = vmatpush1.bf16.msra.mxu0 %v9269_v2  ;;  %7088 = vmatpush1.bf16.msra.mxu1 %v9273_v50 }
 0xf0a   :  { %7058 = vmatprep.subr.bf16.mxu0 %v9275_v53  ;;  %7090 = vmatprep.subr.bf16.mxu1 %v9278_v13 }
 0xf0d   :  { %7060 = vmatpush1.bf16.msra.mxu0 %v9281_v26  ;;  %7092 = vmatpush1.bf16.msra.mxu1 %v9285_v29 }
 0xf0e   :  { %7062 = vmatprep.subr.bf16.mxu0 %v9290_v58  ;;  %7094 = vmatprep.subr.bf16.mxu1 %v9292_v55 }
 0xf11   :  { %7064 = vmatpush1.bf16.msra.mxu0 %v9294_v8  ;;  %7096 = vmatpush1.bf16.msra.mxu1 %v9297_v39  ;;  %v3869_v39 = vld [vmem:[#allocation13] sm:$0xff] }
 0xf12   :  { %7098 = vmatprep.subr.bf16.mxu0 %v7097_v30  ;;  %7130 = vmatprep.subr.bf16.mxu1 %v7129_v33  ;;  %v7099_v51 = vpack.c.bf16 %v3873_v5, %v3869_v39  ;;  %v7103_v30 = vpack.c.bf16 %v3881_v46, %v3877_v1  ;;  %v3885_v33 = vld [vmem:[#allocation13 + $0x80] sm:$0xff]  ;;  %v7147_v1 = vpack.c.bf16 %v3907_v21, %v3903_v45  ;;  %v4256_v45 = vld [vmem:[#allocation15 + $0x58] sm:$0xff] }
 0xf13   :  { %v3901_v5 = vld [vmem:[#allocation13 + $0x100] sm:$0xff] }
 0xf14   :  { %v3909_v46 = vld [vmem:[#allocation13 + $0x140] sm:$0xff] }
 0xfc7   :  { %v3581_v7 = vpop.f32.mrb[28].mxu0  ;;  %v3652_v56 = vpop.f32.mrb[28].mxu1 }
 0xfc8   :  { %v7741_v60 = vadd.f32 %v3581_v7, %v9351_v11  ;;  %v3583_v6 = vpop.f32.mrb[29].mxu0  ;;  %v3654_v19 = vpop.f32.mrb[29].mxu1  ;;  %v7757_v49 = vadd.f32 %v3652_v56, %v9363_v16  ;;  %v3889_v7 = vld [vmem:[#allocation13 + $0xa0] sm:$0xff]  ;;  %v7105_v56 = vpack.c.bf16 %v3890_v27, %v3886_v35  ;;  %v3915_v35 = vld [vmem:[#allocation13 + $0x170] sm:$0xff]  ;;  %v3918_v27 = vld [vmem:[#allocation13 + $0x188] sm:$0xff] }
 0xfc9   :  { %v7742_v32 = vadd.f32 %v3583_v6, %v9354_v20  ;;  %v7758_v9 = vadd.f32 %v3654_v19, %v9359_v3  ;;  %v3887_v6 = vld [vmem:[#allocation13 + $0x90] sm:$0xff] }
 0xfca   :  { %v5862_v36 = vmul.f32 -1.442695, %v7741_v60  ;;  %v7137_v60 = vpack.c.bf16 %v3892_v38, %v3888_v17  ;;  %v3891_v19 = vld [vmem:[#allocation13 + $0xb0] sm:$0xff]  ;;  %v3922_v17 = vld [vmem:[#allocation13 + $0x1a8] sm:$0xff]  ;;  %v3920_v38 = vld [vmem:[#allocation13 + $0x198] sm:$0xff] }
 0xfcb   :  { %v5863_v54 = vmul.f32 -1.442695, %v7742_v32  ;;  %v5864_v14 = vmul.f32 -1.442695, %v7758_v9  ;;  %v3894_v32 = vld [vmem:[#allocation13 + $0xc8] sm:$0xff]  ;;  %v3900_v9 = vld [vmem:[#allocation13 + $0xf8] sm:$0xff] }
 0xfcc   :  { %8129 = vpow2.f32 %v5862_v36  ;;  %v3898_v36 = vld [vmem:[#allocation13 + $0xe8] sm:$0xff] }
 0xfcd   :  { %8131 = vpow2.f32 %v5863_v54  ;;  %v3896_v54 = vld [vmem:[#allocation13 + $0xd8] sm:$0xff] }
 0xfce   :  { %8133 = vpow2.f32 %v5864_v14  ;;  %v7107_v14 = vpack.c.bf16 %v3889_v7, %v3885_v33  ;;  %v3917_v7 = vld [vmem:[#allocation13 + $0x180] sm:$0xff] }
 0xfcf   :  { %8135 = vtanh.f32 %v7757_v49  ;;  %v7139_v49 = vpack.c.bf16 %v3891_v19, %v3887_v6  ;;  %v3919_v19 = vld [vmem:[#allocation13 + $0x190] sm:$0xff] }
 0xfd6   :  { %v8130_v12 = vpop.eup %8129 }
 0xfd7   :  { %v8132_v15 = vpop.eup %8131  ;;  %v3664_v41 = vadd.f32 1.0, %v8130_v12  ;;  %v3893_v12 = vld [vmem:[#allocation13 + $0xc0] sm:$0xff] }
 0xfd8   :  { %v3670_v2 = vadd.f32 1.0, %v8132_v15  ;;  %v8134_v50 = vpop.eup %8133  ;;  %v3897_v15 = vld [vmem:[#allocation13 + $0xe0] sm:$0xff] }
 0xfd9   :  { %8137 = vrcp.f32 %v3664_v41  ;;  %v8136_v53 = vpop.eup %8135  ;;  %v3677_v58 = vadd.f32 1.0, %v8134_v50  ;;  %v7109_v41 = vpack.c.bf16 %v3898_v36, %v3894_v32  ;;  %v3895_v50 = vld [vmem:[#allocation13 + $0xd0] sm:$0xff]  ;;  %v3926_v36 = vld [vmem:[#allocation13 + $0x1c8] sm:$0xff] }
 0xfda   :  { %8139 = vrcp.f32 %v3670_v2  ;;  %v7141_v2 = vpack.c.bf16 %v3900_v9, %v3896_v54  ;;  %v3923_v32 = vld [vmem:[#allocation13 + $0x1b0] sm:$0xff]  ;;  %v3930_v54 = vld [vmem:[#allocation13 + $0x1e8] sm:$0xff]  ;;  %v3928_v9 = vld [vmem:[#allocation13 + $0x1d8] sm:$0xff] }
 0xfdb   :  { %8141 = vrcp.f32 %v3677_v58  ;;  %v3908_v58 = vld [vmem:[#allocation13 + $0x138] sm:$0xff] }
 0xfe3   :  { %v8138_v13 = vpop.eup %8137 }
 0xfe4   :  { %v8140_v26 = vpop.eup %8139  ;;  %v3681_v29 = vmul.f32 %v8138_v13, %v8136_v53  ;;  %v3899_v53 = vld [vmem:[#allocation13 + $0xf0] sm:$0xff]  ;;  %v3902_v13 = vld [vmem:[#allocation13 + $0x108] sm:$0xff] }
 0xfe5   :  { %v3680_v55 = vmul.f32 %v8140_v26, %v9596_v10  ;;  %v8142_v22 = vpop.eup %8141  ;;  %v3879_v10 = vld [vmem:[#allocation13 + $0x50] sm:$0xff]  ;;  %v3906_v26 = vld [vmem:[#allocation13 + $0x128] sm:$0xff]  ;;  %v7143_v39 = vpack.c.bf16 %v3899_v53, %v3895_v50  ;;  %v3929_v50 = vld [vmem:[#allocation13 + $0x1e0] sm:$0xff] }
 0xfe6   :  { %v7135_v43 = vpack.c.bf16 %v3883_v47, %v3879_v10  ;;  %v7113_v62 = vpack.c.bf16 %v3906_v26, %v3902_v13  ;;  %v3911_v47 = vld [vmem:[#allocation13 + $0x150] sm:$0xff] }
 0xfe7   :  { %v9640_v8 = vadd.f32 %v3681_v29, %v3680_v55  ;;  %v3904_v29 = vld [vmem:[#allocation13 + $0x118] sm:$0xff]  ;;  %v7111_v55 = vpack.c.bf16 %v3897_v15, %v3893_v12  ;;  %v7151_v33 = vpack.c.bf16 %v3915_v35, %v3911_v47  ;;  %v7155_v12 = vpack.c.bf16 %v3923_v32, %v3919_v19  ;;  %v3925_v15 = vld [vmem:[#allocation13 + $0x1c0] sm:$0xff]  ;;  %v3927_v53 = vld [vmem:[#allocation13 + $0x1d0] sm:$0xff] }
 0xfe8   :  { %v7145_v37 = vpack.c.bf16 %v3908_v58, %v3904_v29  ;;  %v3931_v13 = vld [vmem:[#allocation13 + $0x1f0] sm:$0xff]  ;;  %v7127_v26 = vpack.c.bf16 %v3929_v50, %v3925_v15  ;;  %v4245_v58 = vld [vmem:[#allocation15] sm:$0xff]  ;;  %v4264_v47 = vld [vmem:[#allocation15 + $0x98] sm:$0xff] }
 0xfe9   :  { %8143 = vtanh.f32 %v9640_v8  ;;  %v7159_v29 = vpack.c.bf16 %v3931_v13, %v3927_v53  ;;  %v4272_v19 = vld [vmem:[#allocation15 + $0xd8] sm:$0xff]  ;;  %v4275_v15 = vld [vmem:[#allocation15 + $0xf0] sm:$0xff]  ;;  %v4282_v50 = vld [vmem:[#allocation15 + $0x128] sm:$0xff] }
 0xfea   :  { %v4280_v53 = vld [vmem:[#allocation15 + $0x118] sm:$0xff] }
 0xfeb   :  { %v4284_v13 = vld [vmem:[#allocation15 + $0x138] sm:$0xff] }
 0xff3   :  { %v8144_v18 = vpop.eup %8143 }
 0xff4   :  { %v9643_v4 = vmul.f32 %v8144_v18, %v8142_v22  ;;  %v3914_v22 = vld [vmem:[#allocation13 + $0x168] sm:$0xff]  ;;  %v3912_v18 = vld [vmem:[#allocation13 + $0x158] sm:$0xff] }
 0xff6   :  { %3755 = vmatmul.mubr.f32.vlgmr.msra.gmra.mrb[30].mxu0 %v9643_v4  ;;  %3826 = vmatmul.mubr.f32.vlgmr.msra.gmra.mrb[30].mxu1 %v9643_v4 }
 0xff7   :  { %7100 = vmatpush1.bf16.msra.mxu0 %v7099_v51  ;;  %7132 = vmatpush1.bf16.msra.mxu1 %v7131_v28  ;;  %v3916_v51 = vld [vmem:[#allocation13 + $0x178] sm:$0xff]  ;;  %v7115_v28 = vpack.c.bf16 %v3905_v48, %v3901_v5  ;;  %v4247_v5 = vld [vmem:[#allocation15 + $0x10] sm:$0xff] }
 0xff8   :  { %7102 = vmatprep.subr.bf16.mxu0 %v7101_v25  ;;  %7134 = vmatprep.subr.bf16.mxu1 %v7133_v23  ;;  %v3913_v25 = vld [vmem:[#allocation13 + $0x160] sm:$0xff]  ;;  %v7117_v23 = vpack.c.bf16 %v3914_v22, %v3910_v40  ;;  %v7149_v10 = vpack.c.bf16 %v3916_v51, %v3912_v18  ;;  %v4251_v48 = vld [vmem:[#allocation15 + $0x30] sm:$0xff]  ;;  %v4260_v40 = vld [vmem:[#allocation15 + $0x78] sm:$0xff] }
 0xff9   :  { %3997 = vmatprep.mubr.f32.mxu0 %v8513_v0  ;;  %4110 = vmatprep.mubr.f32.mxu1 %v8513_v0  ;;  %v4253_v22 = vld [vmem:[#allocation15 + $0x40] sm:$0xff]  ;;  %v9691_v51 = vpack.c.bf16 %v4260_v40, %v4256_v45  ;;  %v4292_v45 = vld [vmem:[#allocation15 + $0x178] sm:$0xff] }
 0xffa   :  { %v4257_v18 = vld [vmem:[#allocation15 + $0x60] sm:$0xff] }
 0xffb   :  { %7104 = vmatpush1.bf16.msra.mxu0 %v7103_v30  ;;  %7136 = vmatpush1.bf16.msra.mxu1 %v7135_v43  ;;  %v3924_v30 = vld [vmem:[#allocation13 + $0x1b8] sm:$0xff]  ;;  %v7119_v43 = vpack.c.bf16 %v3913_v25, %v3909_v46  ;;  %v4259_v46 = vld [vmem:[#allocation15 + $0x70] sm:$0xff]  ;;  %v4285_v40 = vld [vmem:[#allocation15 + $0x140] sm:$0xff] }
 0xffc   :  { %7106 = vmatprep.subr.bf16.mxu0 %v7105_v56  ;;  %7138 = vmatprep.subr.bf16.mxu1 %v7137_v60  ;;  %v3921_v56 = vld [vmem:[#allocation13 + $0x1a0] sm:$0xff]  ;;  %v7121_v60 = vpack.c.bf16 %v3922_v17, %v3918_v27  ;;  %v7153_v6 = vpack.c.bf16 %v3924_v30, %v3920_v38  ;;  %v4268_v27 = vld [vmem:[#allocation15 + $0xb8] sm:$0xff] }
 0xffd   :  { %v4261_v17 = vld [vmem:[#allocation15 + $0x80] sm:$0xff]  ;;  %v9703_v30 = vpack.c.bf16 %v4268_v27, %v4264_v47  ;;  %v4298_v47 = vld [vmem:[#allocation15 + $0x1a8] sm:$0xff]  ;;  %v4296_v27 = vld [vmem:[#allocation15 + $0x198] sm:$0xff] }
 0xffe   :  { %v4265_v38 = vld [vmem:[#allocation15 + $0xa0] sm:$0xff] }
 0xfff   :  { %7108 = vmatpush1.bf16.msra.mxu0 %v7107_v14  ;;  %7140 = vmatpush1.bf16.msra.mxu1 %v7139_v49  ;;  %v3932_v14 = vld [vmem:[#allocation13 + $0x1f8] sm:$0xff]  ;;  %v7123_v49 = vpack.c.bf16 %v3921_v56, %v3917_v7  ;;  %v4267_v7 = vld [vmem:[#allocation15 + $0xb0] sm:$0xff] }
0x1000   :  { %7110 = vmatprep.subr.bf16.mxu0 %v7109_v41  ;;  %7142 = vmatprep.subr.bf16.mxu1 %v7141_v2  ;;  %v7125_v41 = vpack.c.bf16 %v3930_v54, %v3926_v36  ;;  %v7157_v2 = vpack.c.bf16 %v3932_v14, %v3928_v9  ;;  %v4276_v36 = vld [vmem:[#allocation15 + $0xf8] sm:$0xff]  ;;  %v4269_v54 = vld [vmem:[#allocation15 + $0xc0] sm:$0xff] }
0x1001   :  { %v4273_v9 = vld [vmem:[#allocation15 + $0xe0] sm:$0xff]  ;;  %v9715_v14 = vpack.c.bf16 %v4276_v36, %v4272_v19  ;;  %v4295_v19 = vld [vmem:[#allocation15 + $0x190] sm:$0xff] }
0x1002   :  { %v4299_v36 = vld [vmem:[#allocation15 + $0x1b0] sm:$0xff] }
0x1003   :  { %7112 = vmatpush1.bf16.msra.mxu0 %v7111_v55  ;;  %7144 = vmatpush1.bf16.msra.mxu1 %v7143_v39 }
0x1004   :  { %7114 = vmatprep.subr.bf16.mxu0 %v7113_v62  ;;  %7146 = vmatprep.subr.bf16.mxu1 %v7145_v37  ;;  %v4254_v62 = vld [vmem:[#allocation15 + $0x48] sm:$0xff] }
0x1005   :  { %v4258_v37 = vld [vmem:[#allocation15 + $0x68] sm:$0xff] }
0x1006   :  { %v9689_v21 = vpack.c.bf16 %v4258_v37, %v4254_v62  ;;  %v4288_v37 = vld [vmem:[#allocation15 + $0x158] sm:$0xff] }
0x1007   :  { %7116 = vmatpush1.bf16.msra.mxu0 %v7115_v28  ;;  %7148 = vmatpush1.bf16.msra.mxu1 %v7147_v1  ;;  %v9693_v28 = vpack.c.bf16 %v4257_v18, %v4253_v22  ;;  %v4255_v1 = vld [vmem:[#allocation15 + $0x50] sm:$0xff]  ;;  %v9737_v22 = vpack.c.bf16 %v4292_v45, %v4288_v37  ;;  %v4289_v18 = vld [vmem:[#allocation15 + $0x160] sm:$0xff] }
0x1008   :  { %7118 = vmatprep.subr.bf16.mxu0 %v7117_v23  ;;  %7150 = vmatprep.subr.bf16.mxu1 %v7149_v10  ;;  %v9696_v25 = vpack.c.bf16 %v4259_v46, %v4255_v1  ;;  %v4262_v23 = vld [vmem:[#allocation15 + $0x88] sm:$0xff]  ;;  %v4287_v1 = vld [vmem:[#allocation15 + $0x150] sm:$0xff] }
0x1009   :  { %v4266_v10 = vld [vmem:[#allocation15 + $0xa8] sm:$0xff]  ;;  %v4291_v46 = vld [vmem:[#allocation15 + $0x170] sm:$0xff] }
0x100a   :  { %v9701_v35 = vpack.c.bf16 %v4266_v10, %v4262_v23  ;;  %v9740_v23 = vpack.c.bf16 %v4289_v18, %v4285_v40  ;;  %v4294_v10 = vld [vmem:[#allocation15 + $0x188] sm:$0xff] }
0x100b   :  { %7120 = vmatpush1.bf16.msra.mxu0 %v7119_v43  ;;  %7152 = vmatpush1.bf16.msra.mxu1 %v7151_v33  ;;  %v9705_v43 = vpack.c.bf16 %v4265_v38, %v4261_v17  ;;  %v4263_v33 = vld [vmem:[#allocation15 + $0x90] sm:$0xff]  ;;  %v9744_v17 = vpack.c.bf16 %v4291_v46, %v4287_v1  ;;  %v9746_v38 = vpack.c.bf16 %v4298_v47, %v4294_v10 }
0x100c   :  { %7122 = vmatprep.subr.bf16.mxu0 %v7121_v60  ;;  %7154 = vmatprep.subr.bf16.mxu1 %v7153_v6  ;;  %v9708_v56 = vpack.c.bf16 %v4267_v7, %v4263_v33  ;;  %v4270_v60 = vld [vmem:[#allocation15 + $0xc8] sm:$0xff]  ;;  %v4300_v33 = vld [vmem:[#allocation15 + $0x1b8] sm:$0xff]  ;;  %v4293_v7 = vld [vmem:[#allocation15 + $0x180] sm:$0xff] }
0x100d   :  { %v4274_v6 = vld [vmem:[#allocation15 + $0xe8] sm:$0xff] }
0x100e   :  { %v9713_v32 = vpack.c.bf16 %v4274_v6, %v4270_v60  ;;  %v4297_v60 = vld [vmem:[#allocation15 + $0x1a0] sm:$0xff]  ;;  %v9749_v6 = vpack.c.bf16 %v4300_v33, %v4296_v27 }
0x100f   :  { %7124 = vmatpush1.bf16.msra.mxu0 %v7123_v49  ;;  %7156 = vmatpush1.bf16.msra.mxu1 %v7155_v12  ;;  %v9717_v49 = vpack.c.bf16 %v4273_v9, %v4269_v54  ;;  %v4271_v12 = vld [vmem:[#allocation15 + $0xd0] sm:$0xff]  ;;  %v9752_v54 = vpack.c.bf16 %v4297_v60, %v4293_v7  ;;  %v9756_v9 = vpack.c.bf16 %v4299_v36, %v4295_v19 }
0x1010   :  { %7126 = vmatprep.subr.bf16.mxu0 %v7125_v41  ;;  %7158 = vmatprep.subr.bf16.mxu1 %v7157_v2  ;;  %v4278_v41 = vld [vmem:[#allocation15 + $0x108] sm:$0xff]  ;;  %v9720_v2 = vpack.c.bf16 %v4275_v15, %v4271_v12 }
0x1011   :  { %v4302_v12 = vld [vmem:[#allocation15 + $0x1c8] sm:$0xff] }
0x1012   :  { %v4306_v15 = vld [vmem:[#allocation15 + $0x1e8] sm:$0xff] }
0x1013   :  { %7128 = vmatpush1.bf16.msra.mxu0 %v7127_v26  ;;  %7160 = vmatpush1.bf16.msra.mxu1 %v7159_v29  ;;  %v9724_v26 = vpack.c.bf16 %v4282_v50, %v4278_v41  ;;  %v9726_v29 = vpack.c.bf16 %v4284_v13, %v4280_v53  ;;  %v4304_v41 = vld [vmem:[#allocation15 + $0x1d8] sm:$0xff]  ;;  %v9761_v50 = vpack.c.bf16 %v4306_v15, %v4302_v12  ;;  %v4301_v13 = vld [vmem:[#allocation15 + $0x1c0] sm:$0xff] }
0x1014   :  { %v4308_v53 = vld [vmem:[#allocation15 + $0x1f8] sm:$0xff] }
0x1016   :  { %3998 = vmatmul.mubr.f32.vlgmr.msra.gmra.mrb[32].mxu0 %v9369_v24  ;;  %4111 = vmatmul.mubr.f32.vlgmr.msra.gmra.mrb[32].mxu1 %v9369_v24  ;;  %v4246_v24 = vld [vmem:[#allocation15 + $0x8] sm:$0xff] }
0x1017   :  { %4003 = vmatprep.mubr.f32.mxu0 %v8513_v0  ;;  %4116 = vmatprep.mubr.f32.mxu1 %v8513_v0 }
0x101a   :  { %4004 = vmatmul.mubr.f32.gmra.mrb[34].mxu0 %v9415_v63  ;;  %4117 = vmatmul.mubr.f32.gmra.mrb[34].mxu1 %v9415_v63  ;;  %v4250_v63 = vld [vmem:[#allocation15 + $0x28] sm:$0xff] }
0x101b   :  { %4009 = vmatprep.mubr.f32.mxu0 %v8513_v0  ;;  %4122 = vmatprep.mubr.f32.mxu1 %v8513_v0 }
0x101e   :  { %4010 = vmatmul.mubr.f32.gmra.mrb[36].mxu0 %v9461_v44  ;;  %4123 = vmatmul.mubr.f32.gmra.mrb[36].mxu1 %v9461_v44  ;;  %v4248_v44 = vld [vmem:[#allocation15 + $0x18] sm:$0xff] }
0x101f   :  { %4015 = vmatprep.mubr.f32.mxu0 %v8513_v0  ;;  %4128 = vmatprep.mubr.f32.mxu1 %v8513_v0 }
0x1022   :  { %4016 = vmatmul.mubr.f32.gmra.mrb[38].mxu0 %v9507_v57  ;;  %4129 = vmatmul.mubr.f32.gmra.mrb[38].mxu1 %v9507_v57  ;;  %v9677_v57 = vpack.c.bf16 %v4250_v63, %v4246_v24  ;;  %v4277_v24 = vld [vmem:[#allocation15 + $0x100] sm:$0xff] }
0x1023   :  { %4021 = vmatprep.mubr.f32.mxu0 %v8513_v0  ;;  %4134 = vmatprep.mubr.f32.mxu1 %v8513_v0  ;;  %v4281_v63 = vld [vmem:[#allocation15 + $0x120] sm:$0xff] }
0x1024   :  { %7162 = vmatprep.subr.bf16.mxu0 %v9677_v57 }
0x1026   :  { %4022 = vmatmul.mubr.f32.gmra.mrb[40].mxu0 %v9553_v61  ;;  %4135 = vmatmul.mubr.f32.gmra.mrb[40].mxu1 %v9553_v61  ;;  %v4252_v61 = vld [vmem:[#allocation15 + $0x38] sm:$0xff] }
0x1027   :  { %4027 = vmatprep.mubr.f32.mxu0 %v8513_v0  ;;  %4140 = vmatprep.mubr.f32.mxu1 %v8513_v0  ;;  %v9679_v55 = vpack.c.bf16 %v4252_v61, %v4248_v44  ;;  %v4279_v44 = vld [vmem:[#allocation15 + $0x110] sm:$0xff]  ;;  %v9729_v61 = vpack.c.bf16 %v4281_v63, %v4277_v24  ;;  %v4305_v24 = vld [vmem:[#allocation15 + $0x1e0] sm:$0xff]  ;;  %v9763_v63 = vpack.c.bf16 %v4308_v53, %v4304_v41 }
0x1029   :  { %7194 = vmatprep.subr.bf16.mxu1 %v9679_v55 }
0x102a   :  { %4028 = vmatmul.mubr.f32.gmra.mrb[42].mxu0 %v9599_v52  ;;  %4141 = vmatmul.mubr.f32.gmra.mrb[42].mxu1 %v9599_v52  ;;  %v4249_v52 = vld [vmem:[#allocation15 + $0x20] sm:$0xff] }
0x102b   :  { %4033 = vmatprep.mubr.f32.mxu0 %v8513_v0  ;;  %4146 = vmatprep.mubr.f32.mxu1 %v8513_v0  ;;  %v9681_v39 = vpack.c.bf16 %v4249_v52, %v4245_v58  ;;  %v4283_v58 = vld [vmem:[#allocation15 + $0x130] sm:$0xff]  ;;  %v4286_v52 = vld [vmem:[#allocation15 + $0x148] sm:$0xff] }
0x102d   :  { %7164 = vmatpush1.bf16.msra.mxu0 %v9681_v39 }
0x102e   :  { %4034 = vmatmul.mubr.f32.gmra.mrb[44].mxu0 %v9643_v4  ;;  %4147 = vmatmul.mubr.f32.gmra.mrb[44].mxu1 %v9643_v4  ;;  %v9684_v4 = vpack.c.bf16 %v4251_v48, %v4247_v5  ;;  %v4290_v5 = vld [vmem:[#allocation15 + $0x168] sm:$0xff]  ;;  %v9733_v48 = vpack.c.bf16 %v4283_v58, %v4279_v44  ;;  %v9765_v44 = vpack.c.bf16 %v4305_v24, %v4301_v13  ;;  %v4303_v58 = vld [vmem:[#allocation15 + $0x1d0] sm:$0xff] }
0x102f   :  { %4039 = vmatprep.mubr.f32.mxu0 %v8513_v0  ;;  %4152 = vmatprep.mubr.f32.mxu1 %v8513_v0  ;;  %v9735_v62 = vpack.c.bf16 %v4290_v5, %v4286_v52  ;;  %v4307_v52 = vld [vmem:[#allocation15 + $0x1f0] sm:$0xff] }
0x1030   :  { %7196 = vmatpush1.bf16.msra.mxu1 %v9684_v4  ;;  %7166 = vmatprep.subr.bf16.mxu0 %v9689_v21  ;;  %v9768_v5 = vpack.c.bf16 %v4307_v52, %v4303_v58 }
0x1031   :  { %7198 = vmatprep.subr.bf16.mxu1 %v9691_v51  ;;  %7168 = vmatpush1.bf16.msra.mxu0 %v9693_v28 }
0x1032   :  { %7170 = vmatprep.subr.bf16.mxu0 %v9701_v35 }
0x1034   :  { %7200 = vmatpush1.bf16.msra.mxu1 %v9696_v25 }
0x1035   :  { %7202 = vmatprep.subr.bf16.mxu1 %v9703_v30  ;;  %7172 = vmatpush1.bf16.msra.mxu0 %v9705_v43 }
0x1036   :  { %7174 = vmatprep.subr.bf16.mxu0 %v9713_v32 }
0x1038   :  { %7204 = vmatpush1.bf16.msra.mxu1 %v9708_v56 }
0x1039   :  { %7206 = vmatprep.subr.bf16.mxu1 %v9715_v14  ;;  %7176 = vmatpush1.bf16.msra.mxu0 %v9717_v49 }
0x103a   :  { %7178 = vmatprep.subr.bf16.mxu0 %v9724_v26 }
0x103c   :  { %7208 = vmatpush1.bf16.msra.mxu1 %v9720_v2 }
0x103d   :  { %7210 = vmatprep.subr.bf16.mxu1 %v9726_v29  ;;  %7180 = vmatpush1.bf16.msra.mxu0 %v9729_v61 }
0x103e   :  { %7182 = vmatprep.subr.bf16.mxu0 %v9735_v62 }
0x1040   :  { %7212 = vmatpush1.bf16.msra.mxu1 %v9733_v48 }
0x1041   :  { %7214 = vmatprep.subr.bf16.mxu1 %v9737_v22  ;;  %7184 = vmatpush1.bf16.msra.mxu0 %v9740_v23 }
0x1042   :  { %7186 = vmatprep.subr.bf16.mxu0 %v9746_v38 }
0x1044   :  { %7216 = vmatpush1.bf16.msra.mxu1 %v9744_v17 }
0x1045   :  { %7218 = vmatprep.subr.bf16.mxu1 %v9749_v6  ;;  %7188 = vmatpush1.bf16.msra.mxu0 %v9752_v54 }
0x1046   :  { %7190 = vmatprep.subr.bf16.mxu0 %v9761_v50 }
0x1048   :  { %7220 = vmatpush1.bf16.msra.mxu1 %v9756_v9 }
0x1049   :  { %7222 = vmatprep.subr.bf16.mxu1 %v9763_v63  ;;  %7192 = vmatpush1.bf16.msra.mxu0 %v9765_v44 }
0x104a   :  { %7226 = vmatprep.subr.bf16.mxu0 %v9677_v57 }
0x104c   :  { %7224 = vmatpush1.bf16.msra.mxu1 %v9768_v5 }
0x104d   :  { %7258 = vmatprep.subr.bf16.mxu1 %v9679_v55 }
0x10c9   :  { %v3756_v37 = vpop.f32.mrb[30].mxu0  ;;  %v3827_v45 = vpop.f32.mrb[30].mxu1 }
0x10ca   :  { %v7743_v40 = vadd.f32 %v3756_v37, %v9351_v11  ;;  %v3758_v18 = vpop.f32.mrb[31].mxu0  ;;  %v3829_v1 = vpop.f32.mrb[31].mxu1  ;;  %v7759_v7 = vadd.f32 %v3827_v45, %v9363_v16 }
0x10cb   :  { %v7744_v46 = vadd.f32 %v3758_v18, %v9354_v20  ;;  %v7760_v27 = vadd.f32 %v3829_v1, %v9359_v3 }
0x10cc   :  { %v5865_v10 = vmul.f32 -1.442695, %v7743_v40 }
0x10cd   :  { %v5866_v47 = vmul.f32 -1.442695, %v7744_v46  ;;  %v5867_v33 = vmul.f32 -1.442695, %v7760_v27 }
0x10ce   :  { %8145 = vpow2.f32 %v5865_v10 }
0x10cf   :  { %8147 = vpow2.f32 %v5866_v47 }
0x10d0   :  { %8149 = vpow2.f32 %v5867_v33 }
0x10d1   :  { %8151 = vtanh.f32 %v7759_v7 }
0x10d8   :  { %v8146_v60 = vpop.eup %8145 }
0x10d9   :  { %v8148_v19 = vpop.eup %8147  ;;  %v3839_v36 = vadd.f32 1.0, %v8146_v60 }
0x10da   :  { %v3845_v12 = vadd.f32 1.0, %v8148_v19  ;;  %v8150_v11 = vpop.eup %8149 }
0x10db   :  { %8153 = vrcp.f32 %v3839_v36  ;;  %v8152_v15 = vpop.eup %8151  ;;  %v3852_v13 = vadd.f32 1.0, %v8150_v11 }
0x10dc   :  { %8155 = vrcp.f32 %v3845_v12 }
0x10dd   :  { %8157 = vrcp.f32 %v3852_v13 }
0x10e5   :  { %v8154_v20 = vpop.eup %8153 }
0x10e6   :  { %v8156_v41 = vpop.eup %8155  ;;  %v3856_v53 = vmul.f32 %v8154_v20, %v8152_v15 }
0x10e7   :  { %v3855_v24 = vmul.f32 %v8156_v41, %v9640_v8  ;;  %v8158_v16 = vpop.eup %8157  ;;  %v4159_v8 = vld [vmem:[%s10120_s9] sm:$0xf] }
0x10e8   :  { %v9822_v37 = vrot.slane %v4159_v8, %v8868_v31  ;;  %v9825_v45 = vrot.slane %v4159_v8, %v8873_v34  ;;  %v9830_v7 = vrot.slane %v4159_v8, %v8881_v42  ;;  %v9834_v34 = vrot.slane %v4159_v8, %v8888_v59 }
0x10e9   :  { %v3857_v3 = vadd.f32 %v3856_v53, %v3855_v24 }
0x10eb   :  { %8159 = vtanh.f32 %v3857_v3 }
0x10f5   :  { %v8160_v58 = vpop.eup %8159 }
0x10f6   :  { %v3859_v52 = vmul.f32 %v8160_v58, %v8158_v16 }
0x10f8   :  { %4040 = vmatmul.mubr.f32.gmra.mrb[46].mxu0 %v3859_v52  ;;  %4153 = vmatmul.mubr.f32.gmra.mrb[46].mxu1 %v3859_v52 }
0x10f9   :  { %4377 = vmatprep.mubr.f32.mxu0 %v8513_v0  ;;  %4448 = vmatprep.mubr.f32.mxu1 %v8513_v0 }
0x10fc   :  { %4378 = vmatmul.mubr.f32.vlgmr.msra.gmra.mrb[32].mxu0 %v8513_v0  ;;  %4449 = vmatmul.mubr.f32.vlgmr.msra.gmra.mrb[32].mxu1 %v8513_v0 }
0x10fd   :  { %7228 = vmatpush1.bf16.msra.mxu0 %v9681_v39  ;;  %7260 = vmatpush1.bf16.msra.mxu1 %v9684_v4 }
0x10fe   :  { %7230 = vmatprep.subr.bf16.mxu0 %v9689_v21  ;;  %7262 = vmatprep.subr.bf16.mxu1 %v9691_v51 }
0x10ff   :  { %4551 = vmatprep.mubr.f32.mxu0 %v8513_v0  ;;  %4622 = vmatprep.mubr.f32.mxu1 %v8513_v0 }
0x1101   :  { %7232 = vmatpush1.bf16.msra.mxu0 %v9693_v28  ;;  %7264 = vmatpush1.bf16.msra.mxu1 %v9696_v25 }
0x1102   :  { %7234 = vmatprep.subr.bf16.mxu0 %v9701_v35  ;;  %7266 = vmatprep.subr.bf16.mxu1 %v9703_v30 }
0x1105   :  { %7236 = vmatpush1.bf16.msra.mxu0 %v9705_v43  ;;  %7268 = vmatpush1.bf16.msra.mxu1 %v9708_v56 }
0x1106   :  { %7238 = vmatprep.subr.bf16.mxu0 %v9713_v32  ;;  %7270 = vmatprep.subr.bf16.mxu1 %v9715_v14 }
0x1109   :  { %7240 = vmatpush1.bf16.msra.mxu0 %v9717_v49  ;;  %7272 = vmatpush1.bf16.msra.mxu1 %v9720_v2 }
0x110a   :  { %7242 = vmatprep.subr.bf16.mxu0 %v9724_v26  ;;  %7274 = vmatprep.subr.bf16.mxu1 %v9726_v29 }
0x110d   :  { %7244 = vmatpush1.bf16.msra.mxu0 %v9729_v61  ;;  %7276 = vmatpush1.bf16.msra.mxu1 %v9733_v48 }
0x110e   :  { %7246 = vmatprep.subr.bf16.mxu0 %v9735_v62  ;;  %7278 = vmatprep.subr.bf16.mxu1 %v9737_v22 }
0x1111   :  { %7248 = vmatpush1.bf16.msra.mxu0 %v9740_v23  ;;  %7280 = vmatpush1.bf16.msra.mxu1 %v9744_v17 }
0x1112   :  { %7250 = vmatprep.subr.bf16.mxu0 %v9746_v38  ;;  %7282 = vmatprep.subr.bf16.mxu1 %v9749_v6 }
0x1115   :  { %7252 = vmatpush1.bf16.msra.mxu0 %v9752_v54  ;;  %7284 = vmatpush1.bf16.msra.mxu1 %v9756_v9 }
0x1116   :  { %7254 = vmatprep.subr.bf16.mxu0 %v9761_v50  ;;  %7286 = vmatprep.subr.bf16.mxu1 %v9763_v63 }
0x1119   :  { %7256 = vmatpush1.bf16.msra.mxu0 %v9765_v44  ;;  %7288 = vmatpush1.bf16.msra.mxu1 %v9768_v5 }
0x111a   :  { %7290 = vmatprep.subr.bf16.mxu0 %v9677_v57  ;;  %7322 = vmatprep.subr.bf16.mxu1 %v9679_v55 }
0x11cf   :  { %v4379_v40 = vpop.f32.mrb[32].mxu0  ;;  %v4450_v18 = vpop.f32.mrb[32].mxu1 }
0x11d0   :  { %v7761_v1 = vadd.f32 %v4379_v40, %v9822_v37  ;;  %v4381_v46 = vpop.f32.mrb[33].mxu0  ;;  %v4452_v10 = vpop.f32.mrb[33].mxu1  ;;  %v7777_v19 = vadd.f32 %v4450_v18, %v9834_v34 }
0x11d1   :  { %v7762_v47 = vadd.f32 %v4381_v46, %v9825_v45  ;;  %v7778_v31 = vadd.f32 %v4452_v10, %v9830_v7 }
0x11d2   :  { %v5868_v27 = vmul.f32 -1.442695, %v7761_v1 }
0x11d3   :  { %v5869_v33 = vmul.f32 -1.442695, %v7762_v47  ;;  %v5870_v60 = vmul.f32 -1.442695, %v7778_v31 }
0x11d4   :  { %8161 = vpow2.f32 %v5868_v27 }
0x11d5   :  { %8163 = vpow2.f32 %v5869_v33 }
0x11d6   :  { %8165 = vpow2.f32 %v5870_v60 }
0x11d7   :  { %8167 = vtanh.f32 %v7777_v19 }
0x11de   :  { %v8162_v36 = vpop.eup %8161 }
0x11df   :  { %v8164_v12 = vpop.eup %8163  ;;  %v4462_v11 = vadd.f32 1.0, %v8162_v36 }
0x11e0   :  { %v4468_v15 = vadd.f32 1.0, %v8164_v12  ;;  %v8166_v42 = vpop.eup %8165 }
0x11e1   :  { %8169 = vrcp.f32 %v4462_v11  ;;  %v8168_v20 = vpop.eup %8167  ;;  %v4475_v24 = vadd.f32 1.0, %v8166_v42 }
0x11e2   :  { %8171 = vrcp.f32 %v4468_v15 }
0x11e3   :  { %8173 = vrcp.f32 %v4475_v24 }
0x11eb   :  { %v8170_v41 = vpop.eup %8169 }
0x11ec   :  { %v8172_v53 = vpop.eup %8171  ;;  %v4479_v13 = vmul.f32 %v8170_v41, %v8168_v20 }
0x11ed   :  { %v4478_v3 = vmul.f32 0.0, %v8172_v53  ;;  %v8174_v16 = vpop.eup %8173 }
0x11ef   :  { %v9837_v59 = vadd.f32 %v4479_v13, %v4478_v3 }
0x11f1   :  { %8175 = vtanh.f32 %v9837_v59 }
0x11fb   :  { %v8176_v58 = vpop.eup %8175 }
0x11fc   :  { %v4482_v52 = vmul.f32 %v8176_v58, %v8174_v16 }
0x11fe   :  { %4552 = vmatmul.mubr.f32.vlgmr.msra.gmra.mrb[34].mxu0 %v4482_v52  ;;  %4623 = vmatmul.mubr.f32.vlgmr.msra.gmra.mrb[34].mxu1 %v4482_v52 }
0x11ff   :  { %7292 = vmatpush1.bf16.msra.mxu0 %v9681_v39  ;;  %7324 = vmatpush1.bf16.msra.mxu1 %v9684_v4 }
0x1200   :  { %7294 = vmatprep.subr.bf16.mxu0 %v9689_v21  ;;  %7326 = vmatprep.subr.bf16.mxu1 %v9691_v51 }
0x1201   :  { %4725 = vmatprep.mubr.f32.mxu0 %v8513_v0  ;;  %4796 = vmatprep.mubr.f32.mxu1 %v8513_v0 }
0x1203   :  { %7296 = vmatpush1.bf16.msra.mxu0 %v9693_v28  ;;  %7328 = vmatpush1.bf16.msra.mxu1 %v9696_v25 }
0x1204   :  { %7298 = vmatprep.subr.bf16.mxu0 %v9701_v35  ;;  %7330 = vmatprep.subr.bf16.mxu1 %v9703_v30 }
0x1207   :  { %7300 = vmatpush1.bf16.msra.mxu0 %v9705_v43  ;;  %7332 = vmatpush1.bf16.msra.mxu1 %v9708_v56 }
0x1208   :  { %7302 = vmatprep.subr.bf16.mxu0 %v9713_v32  ;;  %7334 = vmatprep.subr.bf16.mxu1 %v9715_v14 }
0x120b   :  { %7304 = vmatpush1.bf16.msra.mxu0 %v9717_v49  ;;  %7336 = vmatpush1.bf16.msra.mxu1 %v9720_v2 }
0x120c   :  { %7306 = vmatprep.subr.bf16.mxu0 %v9724_v26  ;;  %7338 = vmatprep.subr.bf16.mxu1 %v9726_v29 }
0x120f   :  { %7308 = vmatpush1.bf16.msra.mxu0 %v9729_v61  ;;  %7340 = vmatpush1.bf16.msra.mxu1 %v9733_v48 }
0x1210   :  { %7310 = vmatprep.subr.bf16.mxu0 %v9735_v62  ;;  %7342 = vmatprep.subr.bf16.mxu1 %v9737_v22 }
0x1213   :  { %7312 = vmatpush1.bf16.msra.mxu0 %v9740_v23  ;;  %7344 = vmatpush1.bf16.msra.mxu1 %v9744_v17 }
0x1214   :  { %7314 = vmatprep.subr.bf16.mxu0 %v9746_v38  ;;  %7346 = vmatprep.subr.bf16.mxu1 %v9749_v6 }
0x1217   :  { %7316 = vmatpush1.bf16.msra.mxu0 %v9752_v54  ;;  %7348 = vmatpush1.bf16.msra.mxu1 %v9756_v9 }
0x1218   :  { %7318 = vmatprep.subr.bf16.mxu0 %v9761_v50  ;;  %7350 = vmatprep.subr.bf16.mxu1 %v9763_v63 }
0x121b   :  { %7320 = vmatpush1.bf16.msra.mxu0 %v9765_v44  ;;  %7352 = vmatpush1.bf16.msra.mxu1 %v9768_v5 }
0x121c   :  { %7354 = vmatprep.subr.bf16.mxu0 %v9677_v57  ;;  %7386 = vmatprep.subr.bf16.mxu1 %v9679_v55 }
0x12d1   :  { %v4553_v8 = vpop.f32.mrb[34].mxu0  ;;  %v4624_v40 = vpop.f32.mrb[34].mxu1 }
0x12d2   :  { %v7763_v18 = vadd.f32 %v4553_v8, %v9822_v37  ;;  %v4555_v1 = vpop.f32.mrb[35].mxu0  ;;  %v4626_v46 = vpop.f32.mrb[35].mxu1  ;;  %v7779_v60 = vadd.f32 %v4624_v40, %v9834_v34 }
0x12d3   :  { %v7764_v10 = vadd.f32 %v4555_v1, %v9825_v45  ;;  %v7780_v33 = vadd.f32 %v4626_v46, %v9830_v7 }
0x12d4   :  { %v5871_v47 = vmul.f32 -1.442695, %v7763_v18 }
0x12d5   :  { %v5872_v27 = vmul.f32 -1.442695, %v7764_v10  ;;  %v5873_v31 = vmul.f32 -1.442695, %v7780_v33 }
0x12d6   :  { %8177 = vpow2.f32 %v5871_v47 }
0x12d7   :  { %8179 = vpow2.f32 %v5872_v27 }
0x12d8   :  { %8181 = vpow2.f32 %v5873_v31 }
0x12d9   :  { %8183 = vtanh.f32 %v7779_v60 }
0x12e0   :  { %v8178_v19 = vpop.eup %8177 }
0x12e1   :  { %v8180_v36 = vpop.eup %8179  ;;  %v4636_v12 = vadd.f32 1.0, %v8178_v19 }
0x12e2   :  { %v4642_v11 = vadd.f32 1.0, %v8180_v36  ;;  %v8182_v15 = vpop.eup %8181 }
0x12e3   :  { %8185 = vrcp.f32 %v4636_v12  ;;  %v8184_v42 = vpop.eup %8183  ;;  %v4649_v13 = vadd.f32 1.0, %v8182_v15 }
0x12e4   :  { %8187 = vrcp.f32 %v4642_v11 }
0x12e5   :  { %8189 = vrcp.f32 %v4649_v13 }
0x12ed   :  { %v8186_v20 = vpop.eup %8185 }
0x12ee   :  { %v8188_v41 = vpop.eup %8187  ;;  %v4653_v53 = vmul.f32 %v8186_v20, %v8184_v42 }
0x12ef   :  { %v4652_v24 = vmul.f32 %v8188_v41, %v9837_v59  ;;  %v8190_v16 = vpop.eup %8189 }
0x12f1   :  { %v9879_v3 = vadd.f32 %v4653_v53, %v4652_v24 }
0x12f3   :  { %8191 = vtanh.f32 %v9879_v3 }
0x12fd   :  { %v8192_v58 = vpop.eup %8191 }
0x12fe   :  { %v4656_v52 = vmul.f32 %v8192_v58, %v8190_v16 }
0x1300   :  { %4726 = vmatmul.mubr.f32.vlgmr.msra.gmra.mrb[36].mxu0 %v4656_v52  ;;  %4797 = vmatmul.mubr.f32.vlgmr.msra.gmra.mrb[36].mxu1 %v4656_v52 }
0x1301   :  { %7356 = vmatpush1.bf16.msra.mxu0 %v9681_v39  ;;  %7388 = vmatpush1.bf16.msra.mxu1 %v9684_v4 }
0x1302   :  { %7358 = vmatprep.subr.bf16.mxu0 %v9689_v21  ;;  %7390 = vmatprep.subr.bf16.mxu1 %v9691_v51 }
0x1303   :  { %4899 = vmatprep.mubr.f32.mxu0 %v8513_v0  ;;  %4970 = vmatprep.mubr.f32.mxu1 %v8513_v0 }
0x1305   :  { %7360 = vmatpush1.bf16.msra.mxu0 %v9693_v28  ;;  %7392 = vmatpush1.bf16.msra.mxu1 %v9696_v25 }
0x1306   :  { %7362 = vmatprep.subr.bf16.mxu0 %v9701_v35  ;;  %7394 = vmatprep.subr.bf16.mxu1 %v9703_v30 }
0x1309   :  { %7364 = vmatpush1.bf16.msra.mxu0 %v9705_v43  ;;  %7396 = vmatpush1.bf16.msra.mxu1 %v9708_v56 }
0x130a   :  { %7366 = vmatprep.subr.bf16.mxu0 %v9713_v32  ;;  %7398 = vmatprep.subr.bf16.mxu1 %v9715_v14 }
0x130d   :  { %7368 = vmatpush1.bf16.msra.mxu0 %v9717_v49  ;;  %7400 = vmatpush1.bf16.msra.mxu1 %v9720_v2 }
0x130e   :  { %7370 = vmatprep.subr.bf16.mxu0 %v9724_v26  ;;  %7402 = vmatprep.subr.bf16.mxu1 %v9726_v29 }
0x1311   :  { %7372 = vmatpush1.bf16.msra.mxu0 %v9729_v61  ;;  %7404 = vmatpush1.bf16.msra.mxu1 %v9733_v48 }
0x1312   :  { %7374 = vmatprep.subr.bf16.mxu0 %v9735_v62  ;;  %7406 = vmatprep.subr.bf16.mxu1 %v9737_v22 }
0x1315   :  { %7376 = vmatpush1.bf16.msra.mxu0 %v9740_v23  ;;  %7408 = vmatpush1.bf16.msra.mxu1 %v9744_v17 }
0x1316   :  { %7378 = vmatprep.subr.bf16.mxu0 %v9746_v38  ;;  %7410 = vmatprep.subr.bf16.mxu1 %v9749_v6 }
0x1319   :  { %7380 = vmatpush1.bf16.msra.mxu0 %v9752_v54  ;;  %7412 = vmatpush1.bf16.msra.mxu1 %v9756_v9 }
0x131a   :  { %7382 = vmatprep.subr.bf16.mxu0 %v9761_v50  ;;  %7414 = vmatprep.subr.bf16.mxu1 %v9763_v63 }
0x131d   :  { %7384 = vmatpush1.bf16.msra.mxu0 %v9765_v44  ;;  %7416 = vmatpush1.bf16.msra.mxu1 %v9768_v5 }
0x131e   :  { %7418 = vmatprep.subr.bf16.mxu0 %v9677_v57  ;;  %7450 = vmatprep.subr.bf16.mxu1 %v9679_v55 }
0x13d3   :  { %v4727_v59 = vpop.f32.mrb[36].mxu0  ;;  %v4798_v8 = vpop.f32.mrb[36].mxu1 }
0x13d4   :  { %v7765_v40 = vadd.f32 %v4727_v59, %v9822_v37  ;;  %v4729_v18 = vpop.f32.mrb[37].mxu0  ;;  %v4800_v1 = vpop.f32.mrb[37].mxu1  ;;  %v7781_v31 = vadd.f32 %v4798_v8, %v9834_v34 }
0x13d5   :  { %v7766_v46 = vadd.f32 %v4729_v18, %v9825_v45  ;;  %v7782_v27 = vadd.f32 %v4800_v1, %v9830_v7 }
0x13d6   :  { %v5874_v10 = vmul.f32 -1.442695, %v7765_v40 }
0x13d7   :  { %v5875_v47 = vmul.f32 -1.442695, %v7766_v46  ;;  %v5876_v33 = vmul.f32 -1.442695, %v7782_v27 }
0x13d8   :  { %8193 = vpow2.f32 %v5874_v10 }
0x13d9   :  { %8195 = vpow2.f32 %v5875_v47 }
0x13da   :  { %8197 = vpow2.f32 %v5876_v33 }
0x13db   :  { %8199 = vtanh.f32 %v7781_v31 }
0x13e2   :  { %v8194_v60 = vpop.eup %8193 }
0x13e3   :  { %v8196_v19 = vpop.eup %8195  ;;  %v4810_v36 = vadd.f32 1.0, %v8194_v60 }
0x13e4   :  { %v4816_v12 = vadd.f32 1.0, %v8196_v19  ;;  %v8198_v11 = vpop.eup %8197 }
0x13e5   :  { %8201 = vrcp.f32 %v4810_v36  ;;  %v8200_v15 = vpop.eup %8199  ;;  %v4823_v53 = vadd.f32 1.0, %v8198_v11 }
0x13e6   :  { %8203 = vrcp.f32 %v4816_v12 }
0x13e7   :  { %8205 = vrcp.f32 %v4823_v53 }
0x13ef   :  { %v8202_v42 = vpop.eup %8201 }
0x13f0   :  { %v8204_v20 = vpop.eup %8203  ;;  %v4827_v41 = vmul.f32 %v8202_v42, %v8200_v15 }
0x13f1   :  { %v4826_v13 = vmul.f32 %v8204_v20, %v9879_v3  ;;  %v8206_v16 = vpop.eup %8205 }
0x13f3   :  { %v9921_v24 = vadd.f32 %v4827_v41, %v4826_v13 }
0x13f5   :  { %8207 = vtanh.f32 %v9921_v24 }
0x13ff   :  { %v8208_v58 = vpop.eup %8207 }
0x1400   :  { %v4830_v52 = vmul.f32 %v8208_v58, %v8206_v16 }
0x1402   :  { %4900 = vmatmul.mubr.f32.vlgmr.msra.gmra.mrb[38].mxu0 %v4830_v52  ;;  %4971 = vmatmul.mubr.f32.vlgmr.msra.gmra.mrb[38].mxu1 %v4830_v52 }
0x1403   :  { %7420 = vmatpush1.bf16.msra.mxu0 %v9681_v39  ;;  %7452 = vmatpush1.bf16.msra.mxu1 %v9684_v4 }
0x1404   :  { %7422 = vmatprep.subr.bf16.mxu0 %v9689_v21  ;;  %7454 = vmatprep.subr.bf16.mxu1 %v9691_v51 }
0x1405   :  { %5073 = vmatprep.mubr.f32.mxu0 %v8513_v0  ;;  %5144 = vmatprep.mubr.f32.mxu1 %v8513_v0 }
0x1407   :  { %7424 = vmatpush1.bf16.msra.mxu0 %v9693_v28  ;;  %7456 = vmatpush1.bf16.msra.mxu1 %v9696_v25 }
0x1408   :  { %7426 = vmatprep.subr.bf16.mxu0 %v9701_v35  ;;  %7458 = vmatprep.subr.bf16.mxu1 %v9703_v30 }
0x140b   :  { %7428 = vmatpush1.bf16.msra.mxu0 %v9705_v43  ;;  %7460 = vmatpush1.bf16.msra.mxu1 %v9708_v56 }
0x140c   :  { %7430 = vmatprep.subr.bf16.mxu0 %v9713_v32  ;;  %7462 = vmatprep.subr.bf16.mxu1 %v9715_v14 }
0x140f   :  { %7432 = vmatpush1.bf16.msra.mxu0 %v9717_v49  ;;  %7464 = vmatpush1.bf16.msra.mxu1 %v9720_v2 }
0x1410   :  { %7434 = vmatprep.subr.bf16.mxu0 %v9724_v26  ;;  %7466 = vmatprep.subr.bf16.mxu1 %v9726_v29 }
0x1413   :  { %7436 = vmatpush1.bf16.msra.mxu0 %v9729_v61  ;;  %7468 = vmatpush1.bf16.msra.mxu1 %v9733_v48 }
0x1414   :  { %7438 = vmatprep.subr.bf16.mxu0 %v9735_v62  ;;  %7470 = vmatprep.subr.bf16.mxu1 %v9737_v22 }
0x1417   :  { %7440 = vmatpush1.bf16.msra.mxu0 %v9740_v23  ;;  %7472 = vmatpush1.bf16.msra.mxu1 %v9744_v17 }
0x1418   :  { %7442 = vmatprep.subr.bf16.mxu0 %v9746_v38  ;;  %7474 = vmatprep.subr.bf16.mxu1 %v9749_v6 }
0x141b   :  { %7444 = vmatpush1.bf16.msra.mxu0 %v9752_v54  ;;  %7476 = vmatpush1.bf16.msra.mxu1 %v9756_v9 }
0x141c   :  { %7446 = vmatprep.subr.bf16.mxu0 %v9761_v50  ;;  %7478 = vmatprep.subr.bf16.mxu1 %v9763_v63 }
0x141f   :  { %7448 = vmatpush1.bf16.msra.mxu0 %v9765_v44  ;;  %7480 = vmatpush1.bf16.msra.mxu1 %v9768_v5 }
0x1420   :  { %7482 = vmatprep.subr.bf16.mxu0 %v9677_v57  ;;  %7514 = vmatprep.subr.bf16.mxu1 %v9679_v55 }
0x14d5   :  { %v4901_v3 = vpop.f32.mrb[38].mxu0  ;;  %v4972_v59 = vpop.f32.mrb[38].mxu1 }
0x14d6   :  { %v7767_v8 = vadd.f32 %v4901_v3, %v9822_v37  ;;  %v4903_v40 = vpop.f32.mrb[39].mxu0  ;;  %v4974_v18 = vpop.f32.mrb[39].mxu1  ;;  %v7783_v33 = vadd.f32 %v4972_v59, %v9834_v34 }
0x14d7   :  { %v7768_v1 = vadd.f32 %v4903_v40, %v9825_v45  ;;  %v7784_v47 = vadd.f32 %v4974_v18, %v9830_v7 }
0x14d8   :  { %v5877_v46 = vmul.f32 -1.442695, %v7767_v8 }
0x14d9   :  { %v5878_v10 = vmul.f32 -1.442695, %v7768_v1  ;;  %v5879_v27 = vmul.f32 -1.442695, %v7784_v47 }
0x14da   :  { %8209 = vpow2.f32 %v5877_v46 }
0x14db   :  { %8211 = vpow2.f32 %v5878_v10 }
0x14dc   :  { %8213 = vpow2.f32 %v5879_v27 }
0x14dd   :  { %8215 = vtanh.f32 %v7783_v33 }
0x14e4   :  { %v8210_v31 = vpop.eup %8209 }
0x14e5   :  { %v8212_v60 = vpop.eup %8211  ;;  %v4984_v19 = vadd.f32 1.0, %v8210_v31 }
0x14e6   :  { %v4990_v36 = vadd.f32 1.0, %v8212_v60  ;;  %v8214_v12 = vpop.eup %8213 }
0x14e7   :  { %8217 = vrcp.f32 %v4984_v19  ;;  %v8216_v11 = vpop.eup %8215  ;;  %v4997_v41 = vadd.f32 1.0, %v8214_v12 }
0x14e8   :  { %8219 = vrcp.f32 %v4990_v36 }
0x14e9   :  { %8221 = vrcp.f32 %v4997_v41 }
0x14f1   :  { %v8218_v15 = vpop.eup %8217 }
0x14f2   :  { %v8220_v42 = vpop.eup %8219  ;;  %v5001_v20 = vmul.f32 %v8218_v15, %v8216_v11 }
0x14f3   :  { %v5000_v53 = vmul.f32 %v8220_v42, %v9921_v24  ;;  %v8222_v16 = vpop.eup %8221 }
0x14f5   :  { %v9963_v13 = vadd.f32 %v5001_v20, %v5000_v53 }
0x14f7   :  { %8223 = vtanh.f32 %v9963_v13 }
0x1501   :  { %v8224_v58 = vpop.eup %8223 }
0x1502   :  { %v5004_v52 = vmul.f32 %v8224_v58, %v8222_v16 }
0x1504   :  { %5074 = vmatmul.mubr.f32.vlgmr.msra.gmra.mrb[40].mxu0 %v5004_v52  ;;  %5145 = vmatmul.mubr.f32.vlgmr.msra.gmra.mrb[40].mxu1 %v5004_v52 }
0x1505   :  { %7484 = vmatpush1.bf16.msra.mxu0 %v9681_v39  ;;  %7516 = vmatpush1.bf16.msra.mxu1 %v9684_v4 }
0x1506   :  { %7486 = vmatprep.subr.bf16.mxu0 %v9689_v21  ;;  %7518 = vmatprep.subr.bf16.mxu1 %v9691_v51 }
0x1507   :  { %5247 = vmatprep.mubr.f32.mxu0 %v8513_v0  ;;  %5318 = vmatprep.mubr.f32.mxu1 %v8513_v0 }
0x1509   :  { %7488 = vmatpush1.bf16.msra.mxu0 %v9693_v28  ;;  %7520 = vmatpush1.bf16.msra.mxu1 %v9696_v25 }
0x150a   :  { %7490 = vmatprep.subr.bf16.mxu0 %v9701_v35  ;;  %7522 = vmatprep.subr.bf16.mxu1 %v9703_v30 }
0x150d   :  { %7492 = vmatpush1.bf16.msra.mxu0 %v9705_v43  ;;  %7524 = vmatpush1.bf16.msra.mxu1 %v9708_v56 }
0x150e   :  { %7494 = vmatprep.subr.bf16.mxu0 %v9713_v32  ;;  %7526 = vmatprep.subr.bf16.mxu1 %v9715_v14 }
0x1511   :  { %7496 = vmatpush1.bf16.msra.mxu0 %v9717_v49  ;;  %7528 = vmatpush1.bf16.msra.mxu1 %v9720_v2 }
0x1512   :  { %7498 = vmatprep.subr.bf16.mxu0 %v9724_v26  ;;  %7530 = vmatprep.subr.bf16.mxu1 %v9726_v29 }
0x1515   :  { %7500 = vmatpush1.bf16.msra.mxu0 %v9729_v61  ;;  %7532 = vmatpush1.bf16.msra.mxu1 %v9733_v48 }
0x1516   :  { %7502 = vmatprep.subr.bf16.mxu0 %v9735_v62  ;;  %7534 = vmatprep.subr.bf16.mxu1 %v9737_v22 }
0x1519   :  { %7504 = vmatpush1.bf16.msra.mxu0 %v9740_v23  ;;  %7536 = vmatpush1.bf16.msra.mxu1 %v9744_v17 }
0x151a   :  { %7506 = vmatprep.subr.bf16.mxu0 %v9746_v38  ;;  %7538 = vmatprep.subr.bf16.mxu1 %v9749_v6 }
0x151d   :  { %7508 = vmatpush1.bf16.msra.mxu0 %v9752_v54  ;;  %7540 = vmatpush1.bf16.msra.mxu1 %v9756_v9 }
0x151e   :  { %7510 = vmatprep.subr.bf16.mxu0 %v9761_v50  ;;  %7542 = vmatprep.subr.bf16.mxu1 %v9763_v63 }
0x1521   :  { %7512 = vmatpush1.bf16.msra.mxu0 %v9765_v44  ;;  %7544 = vmatpush1.bf16.msra.mxu1 %v9768_v5 }
0x1522   :  { %7546 = vmatprep.subr.bf16.mxu0 %v9677_v57  ;;  %7578 = vmatprep.subr.bf16.mxu1 %v9679_v55 }
0x15d7   :  { %v5075_v24 = vpop.f32.mrb[40].mxu0  ;;  %v5146_v3 = vpop.f32.mrb[40].mxu1 }
0x15d8   :  { %v7769_v59 = vadd.f32 %v5075_v24, %v9822_v37  ;;  %v5077_v8 = vpop.f32.mrb[41].mxu0  ;;  %v5148_v40 = vpop.f32.mrb[41].mxu1  ;;  %v7785_v27 = vadd.f32 %v5146_v3, %v9834_v34 }
0x15d9   :  { %v7770_v18 = vadd.f32 %v5077_v8, %v9825_v45  ;;  %v7786_v10 = vadd.f32 %v5148_v40, %v9830_v7 }
0x15da   :  { %v5880_v1 = vmul.f32 -1.442695, %v7769_v59 }
0x15db   :  { %v5881_v46 = vmul.f32 -1.442695, %v7770_v18  ;;  %v5882_v47 = vmul.f32 -1.442695, %v7786_v10 }
0x15dc   :  { %8225 = vpow2.f32 %v5880_v1 }
0x15dd   :  { %8227 = vpow2.f32 %v5881_v46 }
0x15de   :  { %8229 = vpow2.f32 %v5882_v47 }
0x15df   :  { %8231 = vtanh.f32 %v7785_v27 }
0x15e6   :  { %v8226_v33 = vpop.eup %8225 }
0x15e7   :  { %v8228_v31 = vpop.eup %8227  ;;  %v5158_v60 = vadd.f32 1.0, %v8226_v33 }
0x15e8   :  { %v5164_v19 = vadd.f32 1.0, %v8228_v31  ;;  %v8230_v36 = vpop.eup %8229 }
0x15e9   :  { %8233 = vrcp.f32 %v5158_v60  ;;  %v8232_v12 = vpop.eup %8231  ;;  %v5171_v20 = vadd.f32 1.0, %v8230_v36 }
0x15ea   :  { %8235 = vrcp.f32 %v5164_v19 }
0x15eb   :  { %8237 = vrcp.f32 %v5171_v20 }
0x15f3   :  { %v8234_v11 = vpop.eup %8233 }
0x15f4   :  { %v8236_v15 = vpop.eup %8235  ;;  %v5175_v42 = vmul.f32 %v8234_v11, %v8232_v12 }
0x15f5   :  { %v5174_v41 = vmul.f32 %v8236_v15, %v9963_v13  ;;  %v8238_v16 = vpop.eup %8237 }
0x15f7   :  { %v10005_v53 = vadd.f32 %v5175_v42, %v5174_v41 }
0x15f9   :  { %8239 = vtanh.f32 %v10005_v53 }
0x1603   :  { %v8240_v58 = vpop.eup %8239 }
0x1604   :  { %v5178_v52 = vmul.f32 %v8240_v58, %v8238_v16  ;;  %v5704_v58 = vld [vmem:[#allocation16 + $0x18] sm:$0xff] }
0x1606   :  { %5248 = vmatmul.mubr.f32.vlgmr.msra.gmra.mrb[42].mxu0 %v5178_v52  ;;  %5319 = vmatmul.mubr.f32.vlgmr.msra.gmra.mrb[42].mxu1 %v5178_v52 }
0x1607   :  { %7548 = vmatpush1.bf16.msra.mxu0 %v9681_v39  ;;  %7580 = vmatpush1.bf16.msra.mxu1 %v9684_v4 }
0x1608   :  { %7550 = vmatprep.subr.bf16.mxu0 %v9689_v21  ;;  %7582 = vmatprep.subr.bf16.mxu1 %v9691_v51 }
0x1609   :  { %5421 = vmatprep.mubr.f32.mxu0 %v8513_v0  ;;  %5492 = vmatprep.mubr.f32.mxu1 %v8513_v0 }
0x160b   :  { %7552 = vmatpush1.bf16.msra.mxu0 %v9693_v28  ;;  %7584 = vmatpush1.bf16.msra.mxu1 %v9696_v25 }
0x160c   :  { %7554 = vmatprep.subr.bf16.mxu0 %v9701_v35  ;;  %7586 = vmatprep.subr.bf16.mxu1 %v9703_v30 }
0x160f   :  { %7556 = vmatpush1.bf16.msra.mxu0 %v9705_v43  ;;  %7588 = vmatpush1.bf16.msra.mxu1 %v9708_v56 }
0x1610   :  { %7558 = vmatprep.subr.bf16.mxu0 %v9713_v32  ;;  %7590 = vmatprep.subr.bf16.mxu1 %v9715_v14 }
0x1613   :  { %7560 = vmatpush1.bf16.msra.mxu0 %v9717_v49  ;;  %7592 = vmatpush1.bf16.msra.mxu1 %v9720_v2 }
0x1614   :  { %7562 = vmatprep.subr.bf16.mxu0 %v9724_v26  ;;  %7594 = vmatprep.subr.bf16.mxu1 %v9726_v29 }
0x1617   :  { %7564 = vmatpush1.bf16.msra.mxu0 %v9729_v61  ;;  %7596 = vmatpush1.bf16.msra.mxu1 %v9733_v48 }
0x1618   :  { %7566 = vmatprep.subr.bf16.mxu0 %v9735_v62  ;;  %7598 = vmatprep.subr.bf16.mxu1 %v9737_v22 }
0x161b   :  { %7568 = vmatpush1.bf16.msra.mxu0 %v9740_v23  ;;  %7600 = vmatpush1.bf16.msra.mxu1 %v9744_v17 }
0x161c   :  { %7570 = vmatprep.subr.bf16.mxu0 %v9746_v38  ;;  %7602 = vmatprep.subr.bf16.mxu1 %v9749_v6 }
0x161f   :  { %7572 = vmatpush1.bf16.msra.mxu0 %v9752_v54  ;;  %7604 = vmatpush1.bf16.msra.mxu1 %v9756_v9 }
0x1620   :  { %7574 = vmatprep.subr.bf16.mxu0 %v9761_v50  ;;  %7606 = vmatprep.subr.bf16.mxu1 %v9763_v63 }
0x1623   :  { %7576 = vmatpush1.bf16.msra.mxu0 %v9765_v44  ;;  %7608 = vmatpush1.bf16.msra.mxu1 %v9768_v5 }
0x1624   :  { %7610 = vmatprep.subr.bf16.mxu0 %v9677_v57  ;;  %7642 = vmatprep.subr.bf16.mxu1 %v9679_v55 }
0x16d9   :  { %v5249_v13 = vpop.f32.mrb[42].mxu0  ;;  %v5320_v24 = vpop.f32.mrb[42].mxu1 }
0x16da   :  { %v7771_v3 = vadd.f32 %v5249_v13, %v9822_v37  ;;  %v5251_v59 = vpop.f32.mrb[43].mxu0  ;;  %v5322_v8 = vpop.f32.mrb[43].mxu1  ;;  %v7787_v47 = vadd.f32 %v5320_v24, %v9834_v34  ;;  %v5705_v13 = vld [vmem:[#allocation16 + $0x20] sm:$0xff]  ;;  %v5706_v24 = vld [vmem:[#allocation16 + $0x28] sm:$0xff] }
0x16db   :  { %v7772_v40 = vadd.f32 %v5251_v59, %v9825_v45  ;;  %v7788_v46 = vadd.f32 %v5322_v8, %v9830_v7  ;;  %v5707_v59 = vld [vmem:[#allocation16 + $0x30] sm:$0xff]  ;;  %v5708_v8 = vld [vmem:[#allocation16 + $0x38] sm:$0xff] }
0x16dc   :  { %v5883_v18 = vmul.f32 -1.442695, %v7771_v3  ;;  %v7680_v3 = vpack.c.bf16 %v5706_v24, %v5705_v13 }
0x16dd   :  { %v5884_v1 = vmul.f32 -1.442695, %v7772_v40  ;;  %v5885_v10 = vmul.f32 -1.442695, %v7788_v46  ;;  %v7683_v40 = vpack.c.bf16 %v5708_v8, %v5707_v59 }
0x16de   :  { %8241 = vpow2.f32 %v5883_v18  ;;  %v5709_v18 = vld [vmem:[#allocation16 + $0x40] sm:$0xff] }
0x16df   :  { %8243 = vpow2.f32 %v5884_v1  ;;  %v5710_v1 = vld [vmem:[#allocation16 + $0x48] sm:$0xff] }
0x16e0   :  { %8245 = vpow2.f32 %v5885_v10  ;;  %v7686_v46 = vpack.c.bf16 %v5710_v1, %v5709_v18  ;;  %v5711_v10 = vld [vmem:[#allocation16 + $0x50] sm:$0xff] }
0x16e1   :  { %8247 = vtanh.f32 %v7787_v47  ;;  %v5712_v47 = vld [vmem:[#allocation16 + $0x58] sm:$0xff] }
0x16e8   :  { %v8242_v57 = vpop.eup %8241 }
0x16e9   :  { %v8244_v27 = vpop.eup %8243  ;;  %v5332_v55 = vadd.f32 1.0, %v8242_v57  ;;  %v5713_v57 = vld [vmem:[#allocation16 + $0x60] sm:$0xff] }
0x16ea   :  { %v5338_v33 = vadd.f32 1.0, %v8244_v27  ;;  %v8246_v31 = vpop.eup %8245  ;;  %v7689_v27 = vpack.c.bf16 %v5712_v47, %v5711_v10 }
0x16eb   :  { %8249 = vrcp.f32 %v5332_v55  ;;  %v8248_v60 = vpop.eup %8247  ;;  %v5345_v11 = vadd.f32 1.0, %v8246_v31  ;;  %v5714_v55 = vld [vmem:[#allocation16 + $0x68] sm:$0xff]  ;;  %v5715_v31 = vld [vmem:[#allocation16 + $0x70] sm:$0xff] }
0x16ec   :  { %8251 = vrcp.f32 %v5338_v33  ;;  %v7692_v33 = vpack.c.bf16 %v5714_v55, %v5713_v57 }
0x16ed   :  { %8253 = vrcp.f32 %v5345_v11 }
0x16f5   :  { %v8250_v19 = vpop.eup %8249 }
0x16f6   :  { %v8252_v36 = vpop.eup %8251  ;;  %v5349_v12 = vmul.f32 %v8250_v19, %v8248_v60  ;;  %v5716_v60 = vld [vmem:[#allocation16 + $0x78] sm:$0xff] }
0x16f7   :  { %v5348_v15 = vmul.f32 %v8252_v36, %v10005_v53  ;;  %v8254_v20 = vpop.eup %8253  ;;  %v5703_v53 = vld [vmem:[#allocation16 + $0x10] sm:$0xff]  ;;  %v7695_v19 = vpack.c.bf16 %v5716_v60, %v5715_v31 }
0x16f8   :  { %v7677_v52 = vpack.c.bf16 %v5704_v58, %v5703_v53 }
0x16f9   :  { %v10047_v42 = vadd.f32 %v5349_v12, %v5348_v15 }
0x16fb   :  { %8255 = vtanh.f32 %v10047_v42 }
0x1705   :  { %v8256_v41 = vpop.eup %8255 }
0x1706   :  { %v5352_v16 = vmul.f32 %v8256_v41, %v8254_v20 }
0x1708   :  { %5422 = vmatmul.mubr.f32.vlgmr.msra.gmra.mrb[44].mxu0 %v5352_v16  ;;  %5493 = vmatmul.mubr.f32.vlgmr.msra.gmra.mrb[44].mxu1 %v5352_v16 }
0x1709   :  { %7612 = vmatpush1.bf16.msra.mxu0 %v9681_v39  ;;  %7644 = vmatpush1.bf16.msra.mxu1 %v9684_v4 }
0x170a   :  { %7614 = vmatprep.subr.bf16.mxu0 %v9689_v21  ;;  %7646 = vmatprep.subr.bf16.mxu1 %v9691_v51 }
0x170b   :  { %5595 = vmatprep.mubr.f32.mxu0 %v8513_v0  ;;  %5666 = vmatprep.mubr.f32.mxu1 %v8513_v0 }
0x170d   :  { %7616 = vmatpush1.bf16.msra.mxu0 %v9693_v28  ;;  %7648 = vmatpush1.bf16.msra.mxu1 %v9696_v25 }
0x170e   :  { %7618 = vmatprep.subr.bf16.mxu0 %v9701_v35  ;;  %7650 = vmatprep.subr.bf16.mxu1 %v9703_v30 }
0x1711   :  { %7620 = vmatpush1.bf16.msra.mxu0 %v9705_v43  ;;  %7652 = vmatpush1.bf16.msra.mxu1 %v9708_v56 }
0x1712   :  { %7622 = vmatprep.subr.bf16.mxu0 %v9713_v32  ;;  %7654 = vmatprep.subr.bf16.mxu1 %v9715_v14 }
0x1715   :  { %7624 = vmatpush1.bf16.msra.mxu0 %v9717_v49  ;;  %7656 = vmatpush1.bf16.msra.mxu1 %v9720_v2 }
0x1716   :  { %7626 = vmatprep.subr.bf16.mxu0 %v9724_v26  ;;  %7658 = vmatprep.subr.bf16.mxu1 %v9726_v29 }
0x1719   :  { %7628 = vmatpush1.bf16.msra.mxu0 %v9729_v61  ;;  %7660 = vmatpush1.bf16.msra.mxu1 %v9733_v48 }
0x171a   :  { %7630 = vmatprep.subr.bf16.mxu0 %v9735_v62  ;;  %7662 = vmatprep.subr.bf16.mxu1 %v9737_v22 }
0x171d   :  { %7632 = vmatpush1.bf16.msra.mxu0 %v9740_v23  ;;  %7664 = vmatpush1.bf16.msra.mxu1 %v9744_v17 }
0x171e   :  { %7634 = vmatprep.subr.bf16.mxu0 %v9746_v38  ;;  %7666 = vmatprep.subr.bf16.mxu1 %v9749_v6 }
0x1721   :  { %7636 = vmatpush1.bf16.msra.mxu0 %v9752_v54  ;;  %7668 = vmatpush1.bf16.msra.mxu1 %v9756_v9 }
0x1722   :  { %7638 = vmatprep.subr.bf16.mxu0 %v9761_v50  ;;  %7670 = vmatprep.subr.bf16.mxu1 %v9763_v63  ;;  %v5701_v50 = vld [vmem:[#allocation16] sm:$0xff]  ;;  %v5702_v63 = vld [vmem:[#allocation16 + $0x8] sm:$0xff] }
0x1725   :  { %7640 = vmatpush1.bf16.msra.mxu0 %v9765_v44  ;;  %7672 = vmatpush1.bf16.msra.mxu1 %v9768_v5  ;;  %v7674_v44 = vpack.c.bf16 %v5702_v63, %v5701_v50  ;;  %v8514_v5 = vmov 0.0|0.0  }
0x1726   :  { %7673 = vmatprep.subr.bf16.mxu0 %v8514_v5 }
0x17db   :  { %v5423_v39 = vpop.f32.mrb[44].mxu0  ;;  %v5494_v4 = vpop.f32.mrb[44].mxu1 }
0x17dc   :  { %v7773_v21 = vadd.f32 %v5423_v39, %v9822_v37  ;;  %v5425_v51 = vpop.f32.mrb[45].mxu0  ;;  %v5496_v28 = vpop.f32.mrb[45].mxu1  ;;  %v7789_v32 = vadd.f32 %v5494_v4, %v9834_v34 }
0x17dd   :  { %v7774_v25 = vadd.f32 %v5425_v51, %v9825_v45  ;;  %v7790_v43 = vadd.f32 %v5496_v28, %v9830_v7 }
0x17de   :  { %v5886_v35 = vmul.f32 -1.442695, %v7773_v21 }
0x17df   :  { %v5887_v30 = vmul.f32 -1.442695, %v7774_v25  ;;  %v5888_v56 = vmul.f32 -1.442695, %v7790_v43 }
0x17e0   :  { %8257 = vpow2.f32 %v5886_v35 }
0x17e1   :  { %8259 = vpow2.f32 %v5887_v30 }
0x17e2   :  { %8261 = vpow2.f32 %v5888_v56 }
0x17e3   :  { %8263 = vtanh.f32 %v7789_v32 }
0x17ea   :  { %v8258_v14 = vpop.eup %8257 }
0x17eb   :  { %v8260_v49 = vpop.eup %8259  ;;  %v5506_v2 = vadd.f32 1.0, %v8258_v14 }
0x17ec   :  { %v5512_v26 = vadd.f32 1.0, %v8260_v49  ;;  %v8262_v29 = vpop.eup %8261 }
0x17ed   :  { %8265 = vrcp.f32 %v5506_v2  ;;  %v8264_v61 = vpop.eup %8263  ;;  %v5519_v23 = vadd.f32 1.0, %v8262_v29  ;;  %v5892_v2 = vld [vmem:[%s10122_s11] ss:$0 sm:$0xff] }
0x17ee   :  { %8267 = vrcp.f32 %v5512_v26 }
0x17ef   :  { %8269 = vrcp.f32 %v5519_v23 }
0x17f7   :  { %v8266_v48 = vpop.eup %8265 }
0x17f8   :  { %v8268_v62 = vpop.eup %8267  ;;  %v5523_v22 = vmul.f32 %v8266_v48, %v8264_v61 }
0x17f9   :  { %v5522_v17 = vmul.f32 %v8268_v62, %v10047_v42  ;;  %v8270_v6 = vpop.eup %8269 }
0x17fb   :  { %v10087_v38 = vadd.f32 %v5523_v22, %v5522_v17 }
0x17fd   :  { %8271 = vtanh.f32 %v10087_v38 }
0x1807   :  { %v8272_v54 = vpop.eup %8271 }
0x1808   :  { %v5526_v9 = vmul.f32 %v8272_v54, %v8270_v6 }
0x180a   :  { %5596 = vmatmul.mubr.f32.vlgmr.msra.gmra.mrb[46].mxu0 %v5526_v9  ;;  %5667 = vmatmul.mubr.f32.vlgmr.msra.gmra.mrb[46].mxu1 %v5526_v9 }
0x180b   :  { %7675 = vmatpush3.bf16.msra.mxu0 %v7674_v44  ;;  %5942 = vmatprep.mubr.msk.f32.mxu0 %vm8515_vm0, %v8513_v0 }
0x180c   :  { %7676 = vmatprep.subr.bf16.mxu0 %v8514_v5 }
0x180f   :  { %7678 = vmatpush3.bf16.msra.mxu0 %v7677_v52 }
0x1810   :  { %7679 = vmatprep.subr.bf16.mxu0 %v8514_v5 }
0x1813   :  { %7681 = vmatpush3.bf16.msra.mxu0 %v7680_v3 }
0x1814   :  { %7682 = vmatprep.subr.bf16.mxu0 %v8514_v5 }
0x1817   :  { %7684 = vmatpush3.bf16.msra.mxu0 %v7683_v40 }
0x1818   :  { %7685 = vmatprep.subr.bf16.mxu0 %v8514_v5 }
0x181b   :  { %7687 = vmatpush3.bf16.msra.mxu0 %v7686_v46 }
0x181c   :  { %7688 = vmatprep.subr.bf16.mxu0 %v8514_v5 }
0x181f   :  { %7690 = vmatpush3.bf16.msra.mxu0 %v7689_v27 }
0x1820   :  { %7691 = vmatprep.subr.bf16.mxu0 %v8514_v5 }
0x1823   :  { %7693 = vmatpush3.bf16.msra.mxu0 %v7692_v33 }
0x1824   :  { %7694 = vmatprep.subr.bf16.mxu0 %v8514_v5 }
0x1827   :  { %7696 = vmatpush3.bf16.msra.mxu0 %v7695_v19 }
0x18dd   :  { %v5597_v36 = vpop.f32.mrb[46].mxu0  ;;  %v5668_v12 = vpop.f32.mrb[46].mxu1 }
0x18de   :  { %v7775_v11 = vadd.f32 %v5597_v36, %v9822_v37  ;;  %v5599_v15 = vpop.f32.mrb[47].mxu0  ;;  %v5670_v42 = vpop.f32.mrb[47].mxu1  ;;  %v7791_v4 = vadd.f32 %v5668_v12, %v9834_v34 }
0x18df   :  { %v7776_v20 = vadd.f32 %v5599_v15, %v9825_v45  ;;  %v7792_v0 = vadd.f32 %v5670_v42, %v9830_v7 }
0x18e0   :  { %v5889_v41 = vmul.f32 -1.442695, %v7775_v11 }
0x18e1   :  { %v5890_v16 = vmul.f32 -1.442695, %v7776_v20  ;;  %v5891_v39 = vmul.f32 -1.442695, %v7792_v0 }
0x18e2   :  { %8273 = vpow2.f32 %v5889_v41 }
0x18e3   :  { %8275 = vpow2.f32 %v5890_v16 }
0x18e4   :  { %8277 = vpow2.f32 %v5891_v39 }
0x18e5   :  { %8279 = vtanh.f32 %v7791_v4 }
0x18ec   :  { %v8274_v21 = vpop.eup %8273 }
0x18ed   :  { %v8276_v51 = vpop.eup %8275  ;;  %v5680_v28 = vadd.f32 1.0, %v8274_v21 }
0x18ee   :  { %v5686_v25 = vadd.f32 1.0, %v8276_v51  ;;  %v8278_v37 = vpop.eup %8277 }
0x18ef   :  { %8281 = vrcp.f32 %v5680_v28  ;;  %v8280_v35 = vpop.eup %8279  ;;  %v5693_v56 = vadd.f32 1.0, %v8278_v37 }
0x18f0   :  { %8283 = vrcp.f32 %v5686_v25 }
0x18f1   :  { %8285 = vrcp.f32 %v5693_v56 }
0x18f9   :  { %v8282_v45 = vpop.eup %8281 }
0x18fa   :  { %v8284_v30 = vpop.eup %8283  ;;  %v5697_v43 = vmul.f32 %v8282_v45, %v8280_v35 }
0x18fb   :  { %v5696_v32 = vmul.f32 %v8284_v30, %v10087_v38  ;;  %v8286_v34 = vpop.eup %8285 }
0x18fd   :  { %v5698_v7 = vadd.f32 %v5697_v43, %v5696_v32 }
0x18ff   :  { %8287 = vtanh.f32 %v5698_v7 }
0x1909   :  { %v8288_v14 = vpop.eup %8287 }
0x190a   :  { %v5700_v49 = vmul.f32 %v8288_v14, %v8286_v34 }
0x190c   :  { %5943 = vmatmul.mubr.f32.vlgmr.msra.gmra.mrb[48].mxu0 %v5700_v49 }
0x19df   :  { %v5790_v26 = vpop.f32.mrb[48].mxu0 }
0x19e0   :  { %v5791_v29 = vadd.f32 %v5892_v2, %v5790_v26  ;;  %v5944_v61 = vpop.f32.mrb[49].mxu0 }
0x19e2   :  { %v5794_v48 = vmul.f32 %v5791_v29, %v5791_v29 }
0x19e4   :  { %5795 = vadd.xlane.f32.xlu0 %v5794_v48 }
0x1a71   :  { %v5796_v62 = vpop.xlane.xlu0 %5795 }
0x1a72   :  { %v5797_v22 = vmax.f32 %v5796_v62, 1e-30 }
0x1a74   :  { %8289 = vrsqrt.f32 %v5797_v22 }
0x1a7e   :  { %v8290_v23 = vpop.eup %8289 }
0x1a7f   :  { %v5799_v17 = vmul.f32 %v8290_v23, %v5791_v29 }
0x1a81   :  { %5800 = vst [vmem:[#allocation18] sm:$0xff] %v5799_v17 }
0x1a82   :  { %8478 = shalt.err (!%p8475_p12)
}
0x1a83   :  { %s8479_s30 = scalar_lea.hbm %s10123_s12, 128 }
0x1a84   :  { %p8480_p13 = scmp.ne.s32.totalorder %s10123_s12, %s8479_s30  ;;  %p8483_p0 = scmp.lt.u32.totalorder %s8479_s30, %s10123_s12 }
0x1a86   :  { %p8485_p1 = pnand %p8483_p0, %p8480_p13 }
0x1a88   :  { %8488 = shalt.err (!%p8485_p1)
}
0x1a89   :  { %5810 = dma.vmem_to_hbm [thread:$0]  %s5808_s29, 128, %s10123_s12, [#allocation6]  }
0x1a8a   :  { %8499 = dma.done.wait [#allocation6], 128  }
0x1a8b   :  { %8500 = vsyncadd [#allocation6], 4294967168 }
0x1a8c   :  { %5814 = vsyncpa [#allocation5], 1 }
0x1a8d   :  { %5815 = vsyncpa [#allocation8], 1 }
0x1a8e   :  { %5816 = vsyncpa [#allocation11], 1 }
0x1a8f   :  { %5817 = vsyncpa [#allocation14], 1 }
0x1a90   :  { %5818 = vsyncpa [#allocation17], 1 }
0x1a91   :  { %5819 = vsyncpa [#allocation6], 1 }

</bundles_post_ra>
